<compile_context>
chip_gen: v7x
topology: tpu7x:2x2x1
jax: 0.10.0
libtpu: 0.0.40
codegen_flags: <defaults>
</compile_context>

<pallas_src>
import functools
import math

import jax
import jax.numpy as jnp
import numpy as np
from jax.experimental import pallas as pl
from jax.experimental.pallas import tpu as pltpu


def _mha_kernel(q_ref, k_ref, v_ref, wq_ref, wk_ref, wv_ref, wfc_ref, bfc_ref,
                gamma_ref, beta_ref, *rest, n_head, d_k, d_v, eps, write_attn,
                bf16_exp):
    if write_attn:
        out_ref, attn_ref, k_scr, v_scr, ctx_scr = rest
    else:
        out_ref, k_scr, v_scr, ctx_scr = rest
        attn_ref = None

    qt = pl.program_id(1)

    # --- K/V projections: once per batch element, cached in VMEM scratch ----
    # Two MXU-saturating matmuls: (Lk, D) @ (D, H*d_k) and (Lk, D) @ (D, H*d_v).
    @pl.when(qt == 0)
    def _():
        kx = k_ref[0]                                            # (Lk, D) bf16
        vx = v_ref[0]                                            # (Lk, D) bf16
        k_scr[...] = jnp.dot(kx, wk_ref[...],
                             preferred_element_type=jnp.float32).astype(jnp.bfloat16)
        v_scr[...] = jnp.dot(vx, wv_ref[...],
                             preferred_element_type=jnp.float32).astype(jnp.bfloat16)

    # --- pre-LayerNorm on q (f32 stats); raw q kept for the residual ---------
    q = q_ref[0].astype(jnp.float32)                             # (TQ, D)
    mean = jnp.mean(q, axis=-1, keepdims=True)
    var = jnp.mean(jnp.square(q - mean), axis=-1, keepdims=True)
    qn = (q - mean) * jax.lax.rsqrt(var + eps)
    qn = qn * gamma_ref[...] + beta_ref[...]
    qn16 = qn.astype(jnp.bfloat16)

    # --- fused Q projection: one (TQ, D) @ (D, H*d_k) matmul -----------------
    # (1/sqrt(d_k) already folded into W_q host-side.)
    qh_all = jnp.dot(qn16, wq_ref[...],
                     preferred_element_type=jnp.float32).astype(jnp.bfloat16)

    # --- per-head attention; context staged into (TQ, H*d_v) bf16 scratch ----
    # Static Python loop: every per-head intermediate is stored to VMEM (ctx /
    # attn) inside the iteration, so live ranges stay bounded without fori_loop
    # (which would force dynamic lane-slices of in-register values).
    qk_dims = (((1,), (1,)), ((), ()))                           # contract last dims
    for h in range(n_head):
        qh = qh_all[:, h * d_k:(h + 1) * d_k]                    # (TQ, d_k) bf16
        kh = k_scr[:, h * d_k:(h + 1) * d_k]                     # (Lk, d_k) bf16
        vh = v_scr[:, h * d_v:(h + 1) * d_v]                     # (Lk, d_v) bf16

        s = jax.lax.dot_general(qh, kh, qk_dims,
                                preferred_element_type=jnp.float32)   # (TQ, Lk)
        m = jnp.max(s, axis=-1, keepdims=True)
        arg = s - m                                              # <= 0
        if bf16_exp:
            e = jnp.exp(arg.astype(jnp.bfloat16))                # bf16 EUP path
        else:
            e = jnp.exp(arg).astype(jnp.bfloat16)
        denom = jnp.sum(e.astype(jnp.float32), axis=-1, keepdims=True)

        if attn_ref is not None:
            inv = 1.0 / denom                                    # exact probs
            p = e.astype(jnp.float32) * inv
            attn_ref[0, h] = p.astype(attn_ref.dtype)
        else:
            # deferred normalization: scale after the PV matmul (d_v << Lk)
            inv = pl.reciprocal(denom, approx=True)

        ctx = jnp.dot(e, vh, preferred_element_type=jnp.float32) * inv  # (TQ, d_v)
        ctx_scr[:, h * d_v:(h + 1) * d_v] = ctx.astype(jnp.bfloat16)

    # --- single fused output projection + bias + residual --------------------
    out = jnp.dot(ctx_scr[...], wfc_ref[...],
                  preferred_element_type=jnp.float32)            # (TQ, D)
    out = out + bfc_ref[...] + q
    out_ref[0] = out.astype(out_ref.dtype)


def _vmem_estimate_bytes(TQ, Lk, D, n_head, d_k, d_v, attn_bytes, write_attn,
                         out_bytes, single_buffer_resident=True):
    Hk, Hv = n_head * d_k, n_head * d_v
    nres = 1 if single_buffer_resident else 2
    b = 0
    b += 2 * TQ * D * 4                               # q block (f32, double-buffered)
    b += nres * 2 * Lk * D * 2                        # k + v blocks (bf16)
    b += nres * (2 * D * Hk + D * Hv + Hv * D) * 2    # wq, wk, wv, fc (bf16)
    b += nres * 3 * D * 4                             # bias / gamma / beta
    b += 2 * TQ * D * out_bytes                       # out block (double-buffered)
    if write_attn:
        b += 2 * n_head * TQ * Lk * attn_bytes        # attn block (double-buffered)
    b += (Lk * (Hk + Hv) + TQ * Hv) * 2               # K/V/ctx VMEM scratch (bf16)
    b += 4 * TQ * Lk * 4                              # score/exp intermediates (approx)
    b += TQ * Hk * 4                                  # fused-Q activation
    return b


def _pick_tile_q(Lq, tile_q, budget, est_fn):
    """Largest q-tile that (a) divides Lq, (b) keeps (8,128)-friendly sublanes,
    and (c) fits the VMEM budget. Never silently collapses to a huge tile."""
    cands = [t for t in range(min(tile_q, Lq), 0, -1)
             if Lq % t == 0 and (t % 8 == 0 or t == Lq)]
    if not cands:
        cands = [Lq]
    for t in cands:
        if est_fn(t) <= budget:
            return t
    return cands[-1]


def multi_head_attention(q, k, v, params, *, n_head, d_k, d_v, eps=1e-6,
                         tile_q=256, attn_dtype=jnp.bfloat16, return_attn=True,
                         bf16_exp=True, single_buffer_resident=True):
    """q, k, v: (B, L, d_model) f32. Returns (output (B, Lq, D), attn or None)."""
    B, Lq, D = q.shape
    Lk = k.shape[1]
    wq, wk_, wv, wfc_t, bfc, gamma, beta = params
    Hk, Hv = n_head * d_k, n_head * d_v

    # --- one-time host-side weight prep: fold 1/sqrt(d_k) into W_q; keep all
    # projection weights 2-D and lane-dense; bf16 for every MXU operand --------
    wq2 = (wq * (1.0 / math.sqrt(d_k))).astype(jnp.bfloat16)     # (D, H*d_k)
    wk2 = wk_.astype(jnp.bfloat16)                               # (D, H*d_k)
    wv2 = wv.astype(jnp.bfloat16)                                # (D, H*d_v)
    wfc2 = wfc_t.astype(jnp.bfloat16)                            # (H*d_v, D)
    k16 = k.astype(jnp.bfloat16)
    v16 = v.astype(jnp.bfloat16)

    # --- VMEM budget / tile size derived from the actual chip -----------------
    try:
        vmem_cap = int(pltpu.get_tpu_info().vmem_capacity_bytes)
    except Exception:
        vmem_cap = 64 * 1024 * 1024                   # conservative (v7x per-TC)
    budget = max(vmem_cap - 8 * 1024 * 1024, 16 * 1024 * 1024)

    attn_bytes = jnp.dtype(attn_dtype).itemsize
    out_bytes = jnp.dtype(q.dtype).itemsize
    est_fn = lambda t: _vmem_estimate_bytes(t, Lk, D, n_head, d_k, d_v,
                                            attn_bytes, return_attn, out_bytes,
                                            single_buffer_resident)
    TQ = _pick_tile_q(Lq, tile_q, budget, est_fn)
    n_qt = Lq // TQ
    est = est_fn(TQ)
    vmem_limit = int(min(max(2 * est, 32 * 1024 * 1024), budget))

    kernel = functools.partial(_mha_kernel, n_head=n_head, d_k=d_k, d_v=d_v,
                               eps=eps, write_attn=return_attn, bf16_exp=bf16_exp)

    def build_and_call(single_buffer):
        def resident(shape, imap):
            # Blocks whose index is (near) constant across the grid: request a
            # single buffer — double-buffering them only wastes VMEM.
            if single_buffer:
                return pl.BlockSpec(shape, imap,
                                    pipeline_mode=pl.Buffered(buffer_count=1))
            return pl.BlockSpec(shape, imap)

        in_specs = [
            pl.BlockSpec((1, TQ, D), lambda b, t: (b, t, 0)),    # q (Lq-tiled, f32)
            resident((1, Lk, D), lambda b, t: (b, 0, 0)),        # k (bf16)
            resident((1, Lk, D), lambda b, t: (b, 0, 0)),        # v (bf16)
            resident((D, Hk), lambda b, t: (0, 0)),              # w_qs (scaled, bf16)
            resident((D, Hk), lambda b, t: (0, 0)),              # w_ks (bf16)
            resident((D, Hv), lambda b, t: (0, 0)),              # w_vs (bf16)
            resident((Hv, D), lambda b, t: (0, 0)),              # fc weight (bf16)
            resident((1, D), lambda b, t: (0, 0)),               # fc bias
            resident((1, D), lambda b, t: (0, 0)),               # ln gamma
            resident((1, D), lambda b, t: (0, 0)),               # ln beta
        ]
        out_spec = pl.BlockSpec((1, TQ, D), lambda b, t: (b, t, 0))
        if return_attn:
            out_shape = (jax.ShapeDtypeStruct((B, Lq, D), q.dtype),
                         jax.ShapeDtypeStruct((B, n_head, Lq, Lk), attn_dtype))
            out_specs = [out_spec,
                         pl.BlockSpec((1, n_head, TQ, Lk),
                                      lambda b, t: (b, 0, t, 0))]
        else:
            out_shape = jax.ShapeDtypeStruct((B, Lq, D), q.dtype)
            out_specs = out_spec

        grid_spec = pltpu.PrefetchScalarGridSpec(
            num_scalar_prefetch=0,
            grid=(B, n_qt),
            in_specs=in_specs,
            out_specs=out_specs,
            scratch_shapes=[
                pltpu.VMEM((Lk, Hk), jnp.bfloat16),   # projected K (lane-dense)
                pltpu.VMEM((Lk, Hv), jnp.bfloat16),   # projected V (lane-dense)
                pltpu.VMEM((TQ, Hv), jnp.bfloat16),   # per-tile context staging
            ],
        )
        return pl.pallas_call(
            kernel,
            out_shape=out_shape,
            grid_spec=grid_spec,
            compiler_params=pltpu.CompilerParams(
                dimension_semantics=("parallel", "arbitrary"),
                vmem_limit_bytes=vmem_limit),
        )(q, k16, v16, wq2, wk2, wv2, wfc2, bfc, gamma, beta)

    try:
        result = build_and_call(single_buffer_resident)
    except Exception:
        if not single_buffer_resident:
            raise
        # pipeline_mode=pl.Buffered not available on this jax/Mosaic version ->
        # fall back to default double-buffered resident blocks.
        result = build_and_call(False)

    if return_attn:
        out, attn = result
        return out, attn
    return result, None


def _reference(q, k, v, params, *, n_head, d_k, d_v, eps=1e-6):
    """Pure-JAX f32 reference mirroring the PyTorch module (eval mode)."""
    wq, wk_, wv, wfc_t, bfc, gamma, beta = params
    B, Lq, D = q.shape
    Lk = k.shape[1]
    mean = jnp.mean(q, axis=-1, keepdims=True)
    var = jnp.mean(jnp.square(q - mean), axis=-1, keepdims=True)
    qn = (q - mean) / jnp.sqrt(var + eps) * gamma[0] + beta[0]
    Q = (qn @ wq).reshape(B, Lq, n_head, d_k).transpose(0, 2, 1, 3)
    K = (k @ wk_).reshape(B, Lk, n_head, d_k).transpose(0, 2, 1, 3)
    V = (v @ wv).reshape(B, Lk, n_head, d_v).transpose(0, 2, 1, 3)
    scores = jnp.einsum('bhqd,bhkd->bhqk', Q / (d_k ** 0.5), K)
    attn = jax.nn.softmax(scores, axis=-1)
    ctx = jnp.einsum('bhqk,bhkd->bhqd', attn, V).transpose(0, 2, 1, 3).reshape(B, Lq, -1)
    out = ctx @ wfc_t + bfc[0]
    out = out + q
    return out, attn


def _init_params(key, d_model, n_head, d_k, d_v):
    """Deterministic synthetic init matching the PyTorch module's shapes."""
    ks = jax.random.split(key, 5)
    Hk, Hv = n_head * d_k, n_head * d_v

    def xavier(k_, fan_in, fan_out, shape):
        bound = float(np.sqrt(6.0 / (fan_in + fan_out)))
        return jax.random.uniform(k_, shape, jnp.float32, -bound, bound)

    wq = xavier(ks[0], d_model, Hk, (d_model, Hk))       # w_qs (stored transposed)
    wk_ = xavier(ks[1], d_model, Hk, (d_model, Hk))      # w_ks
    wv = xavier(ks[2], d_model, Hv, (d_model, Hv))       # w_vs
    wfc_t = xavier(ks[3], Hv, d_model, (Hv, d_model))    # fc weight, stored as (Hv, D)
    b_bound = 1.0 / float(np.sqrt(Hv))
    bfc = jax.random.uniform(ks[4], (1, d_model), jnp.float32, -b_bound, b_bound)
    gamma = jnp.ones((1, d_model), jnp.float32)
    beta = jnp.zeros((1, d_model), jnp.float32)
    return (wq, wk_, wv, wfc_t, bfc, gamma, beta)


if __name__ == "__main__":
    # small shapes: batch=2, seq=64, d_model=32, n_head=4, d_k=d_v=8
    B, L, D = 2, 64, 32
    n_head, d_k, d_v = 4, 8, 8

    key = jax.random.PRNGKey(0)
    kq, kk, kv, kp = jax.random.split(key, 4)
    q = jax.random.normal(kq, (B, L, D), jnp.float32)
    k = jax.random.normal(kk, (B, L, D), jnp.float32)
    v = jax.random.normal(kv, (B, L, D), jnp.float32)
    params = _init_params(kp, D, n_head, d_k, d_v)

    # tile_q=32 -> grid (B=2, q-tiles=2) exercises Lq tiling + K/V scratch caching
    out, attn = multi_head_attention(q, k, v, params, n_head=n_head, d_k=d_k,
                                     d_v=d_v, tile_q=32)
    out = jax.block_until_ready(out)
    attn = jax.block_until_ready(attn)

    ref_out, ref_attn = _reference(q, k, v, params, n_head=n_head, d_k=d_k, d_v=d_v)
    # bf16 MXU operands / bf16 attn storage vs. pure-f32 reference -> ~3e-2 tolerance
    np.testing.assert_allclose(np.asarray(out), np.asarray(ref_out),
                               rtol=3e-2, atol=3e-2)
    np.testing.assert_allclose(np.asarray(attn.astype(jnp.float32)),
                               np.asarray(ref_attn), rtol=3e-2, atol=3e-2)

    # attn-free fast path (deferred softmax normalization, no attn HBM writeback)
    out2, _ = multi_head_attention(q, k, v, params, n_head=n_head, d_k=d_k,
                                   d_v=d_v, return_attn=False)
    out2 = jax.block_until_ready(out2)
    np.testing.assert_allclose(np.asarray(out2), np.asarray(ref_out),
                               rtol=3e-2, atol=3e-2)

    print("KERNEL_OK")
</pallas_src>

<mosaic_0001>
module attributes {stable_mosaic.version = 11 : i64} {
  func.func @_mha_kernel(%arg0: i32, %arg1: i32, %arg2: memref<1x32x32xf32, #tpu.memory_space<vmem>>, %arg3: memref<1x64x32xbf16, #tpu.memory_space<vmem>>, %arg4: memref<1x64x32xbf16, #tpu.memory_space<vmem>>, %arg5: memref<32x32xbf16, #tpu.memory_space<vmem>>, %arg6: memref<32x32xbf16, #tpu.memory_space<vmem>>, %arg7: memref<32x32xbf16, #tpu.memory_space<vmem>>, %arg8: memref<32x32xbf16, #tpu.memory_space<vmem>>, %arg9: memref<1x32xf32, #tpu.memory_space<vmem>>, %arg10: memref<1x32xf32, #tpu.memory_space<vmem>>, %arg11: memref<1x32xf32, #tpu.memory_space<vmem>>, %arg12: memref<1x32x32xf32, #tpu.memory_space<vmem>>, %arg13: memref<1x4x32x64xbf16, #tpu.memory_space<vmem>>, %arg14: memref<64x32xbf16, #tpu.memory_space<vmem>>, %arg15: memref<64x32xbf16, #tpu.memory_space<vmem>>, %arg16: memref<32x32xbf16, #tpu.memory_space<vmem>>) attributes {dimension_semantics = [#tpu.dimension_semantics<parallel>, #tpu.dimension_semantics<arbitrary>], iteration_bounds = array<i64: 2, 2>, scalar_prefetch = 0 : i64, scratch_operands = 3 : i64, tpu.core_type = #tpu.core_type<tc>, window_params = [{transform_indices = @transform_0, window_bounds = array<i64: 1, 32, 32>}, {pipeline_mode = #tpu.pipeline_mode<synchronous>, transform_indices = @transform_1, window_bounds = array<i64: 1, 64, 32>}, {pipeline_mode = #tpu.pipeline_mode<synchronous>, transform_indices = @transform_2, window_bounds = array<i64: 1, 64, 32>}, {pipeline_mode = #tpu.pipeline_mode<synchronous>, transform_indices = @transform_3, window_bounds = array<i64: 32, 32>}, {pipeline_mode = #tpu.pipeline_mode<synchronous>, transform_indices = @transform_4, window_bounds = array<i64: 32, 32>}, {pipeline_mode = #tpu.pipeline_mode<synchronous>, transform_indices = @transform_5, window_bounds = array<i64: 32, 32>}, {pipeline_mode = #tpu.pipeline_mode<synchronous>, transform_indices = @transform_6, window_bounds = array<i64: 32, 32>}, {pipeline_mode = #tpu.pipeline_mode<synchronous>, transform_indices = @transform_7, window_bounds = array<i64: 1, 32>}, {pipeline_mode = #tpu.pipeline_mode<synchronous>, transform_indices = @transform_8, window_bounds = array<i64: 1, 32>}, {pipeline_mode = #tpu.pipeline_mode<synchronous>, transform_indices = @transform_9, window_bounds = array<i64: 1, 32>}, {transform_indices = @transform_10, window_bounds = array<i64: 1, 32, 32>}, {transform_indices = @transform_11, window_bounds = array<i64: 1, 4, 32, 64>}]} {
    %c0_i32 = arith.constant 0 : i32
    %0 = arith.cmpi eq, %arg1, %c0_i32 : i32
    %1 = arith.extui %0 : i1 to i32
    %c0_i32_0 = arith.constant 0 : i32
    %2 = arith.cmpi ne, %1, %c0_i32_0 : i32
    scf.if %2 {
      %c0_78 = arith.constant 0 : index
      %c0_79 = arith.constant 0 : index
      %c0_80 = arith.constant 0 : index
      %151 = vector.load %arg3[%c0_78, %c0_79, %c0_80] : memref<1x64x32xbf16, #tpu.memory_space<vmem>>, vector<1x64x32xbf16>
      %152 = vector.shape_cast %151 : vector<1x64x32xbf16> to vector<64x32xbf16>
      %c0_81 = arith.constant 0 : index
      %c0_82 = arith.constant 0 : index
      %c0_83 = arith.constant 0 : index
      %153 = vector.load %arg4[%c0_81, %c0_82, %c0_83] : memref<1x64x32xbf16, #tpu.memory_space<vmem>>, vector<1x64x32xbf16>
      %154 = vector.shape_cast %153 : vector<1x64x32xbf16> to vector<64x32xbf16>
      %c0_84 = arith.constant 0 : index
      %c0_85 = arith.constant 0 : index
      %155 = vector.load %arg6[%c0_84, %c0_85] : memref<32x32xbf16, #tpu.memory_space<vmem>>, vector<32x32xbf16>
      %cst_86 = arith.constant dense<0.000000e+00> : vector<64x32xf32>
      %156 = tpu.matmul %152, %155, %cst_86 {dimension_numbers = #tpu.dot_dimension_numbers<[1], [0], [0], [1], [0, 0, 1, 1], [], []>} : vector<64x32xbf16>, vector<32x32xbf16>, vector<64x32xf32> -> vector<64x32xf32>
      %157 = arith.truncf %156 : vector<64x32xf32> to vector<64x32xbf16>
      %c0_87 = arith.constant 0 : index
      %c0_88 = arith.constant 0 : index
      %158 = vector.load %arg14[%c0_87, %c0_88] : memref<64x32xbf16, #tpu.memory_space<vmem>>, vector<64x32xbf16>
      tpu.vector_store %arg14[%c0_87, %c0_88], %157 {strides = array<i32>} : memref<64x32xbf16, #tpu.memory_space<vmem>>, vector<64x32xbf16>,
      %c0_89 = arith.constant 0 : index
      %c0_90 = arith.constant 0 : index
      %159 = vector.load %arg7[%c0_89, %c0_90] : memref<32x32xbf16, #tpu.memory_space<vmem>>, vector<32x32xbf16>
      %cst_91 = arith.constant dense<0.000000e+00> : vector<64x32xf32>
      %160 = tpu.matmul %154, %159, %cst_91 {dimension_numbers = #tpu.dot_dimension_numbers<[1], [0], [0], [1], [0, 0, 1, 1], [], []>} : vector<64x32xbf16>, vector<32x32xbf16>, vector<64x32xf32> -> vector<64x32xf32>
      %161 = arith.truncf %160 : vector<64x32xf32> to vector<64x32xbf16>
      %c0_92 = arith.constant 0 : index
      %c0_93 = arith.constant 0 : index
      %162 = vector.load %arg15[%c0_92, %c0_93] : memref<64x32xbf16, #tpu.memory_space<vmem>>, vector<64x32xbf16>
      tpu.vector_store %arg15[%c0_92, %c0_93], %161 {strides = array<i32>} : memref<64x32xbf16, #tpu.memory_space<vmem>>, vector<64x32xbf16>,
    } else {
    }
    %c0 = arith.constant 0 : index
    %c0_1 = arith.constant 0 : index
    %c0_2 = arith.constant 0 : index
    %3 = vector.load %arg2[%c0, %c0_1, %c0_2] : memref<1x32x32xf32, #tpu.memory_space<vmem>>, vector<1x32x32xf32>
    %4 = vector.shape_cast %3 : vector<1x32x32xf32> to vector<32x32xf32>
    %cst = arith.constant dense<0.000000e+00> : vector<32xf32>
    %5 = vector.multi_reduction <add>, %4, %cst [1] : vector<32x32xf32> to vector<32xf32>
    %6 = vector.shape_cast %5 : vector<32xf32> to vector<32x1xf32>
    %cst_3 = arith.constant 3.200000e+01 : f32
    %7 = vector.broadcast %cst_3 : f32 to vector<32x1xf32>
    %8 = arith.divf %6, %7 : vector<32x1xf32>
    %9 = vector.broadcast %8 : vector<32x1xf32> to vector<32x32xf32>
    %10 = arith.subf %4, %9 : vector<32x32xf32>
    %11 = arith.mulf %10, %10 : vector<32x32xf32>
    %cst_4 = arith.constant dense<0.000000e+00> : vector<32xf32>
    %12 = vector.multi_reduction <add>, %11, %cst_4 [1] : vector<32x32xf32> to vector<32xf32>
    %13 = vector.shape_cast %12 : vector<32xf32> to vector<32x1xf32>
    %cst_5 = arith.constant 3.200000e+01 : f32
    %14 = vector.broadcast %cst_5 : f32 to vector<32x1xf32>
    %15 = arith.divf %13, %14 : vector<32x1xf32>
    %16 = vector.broadcast %8 : vector<32x1xf32> to vector<32x32xf32>
    %17 = arith.subf %4, %16 : vector<32x32xf32>
    %cst_6 = arith.constant 9.99999997E-7 : f32
    %18 = vector.broadcast %cst_6 : f32 to vector<32x1xf32>
    %19 = arith.addf %15, %18 : vector<32x1xf32>
    %20 = math.rsqrt %19 : vector<32x1xf32>
    %21 = vector.broadcast %20 : vector<32x1xf32> to vector<32x32xf32>
    %22 = arith.mulf %17, %21 : vector<32x32xf32>
    %c0_7 = arith.constant 0 : index
    %c0_8 = arith.constant 0 : index
    %23 = vector.load %arg10[%c0_7, %c0_8] : memref<1x32xf32, #tpu.memory_space<vmem>>, vector<1x32xf32>
    %24 = vector.broadcast %23 : vector<1x32xf32> to vector<32x32xf32>
    %25 = arith.mulf %22, %24 : vector<32x32xf32>
    %c0_9 = arith.constant 0 : index
    %c0_10 = arith.constant 0 : index
    %26 = vector.load %arg11[%c0_9, %c0_10] : memref<1x32xf32, #tpu.memory_space<vmem>>, vector<1x32xf32>
    %27 = vector.broadcast %26 : vector<1x32xf32> to vector<32x32xf32>
    %28 = arith.addf %25, %27 : vector<32x32xf32>
    %29 = arith.truncf %28 : vector<32x32xf32> to vector<32x32xbf16>
    %c0_11 = arith.constant 0 : index
    %c0_12 = arith.constant 0 : index
    %30 = vector.load %arg5[%c0_11, %c0_12] : memref<32x32xbf16, #tpu.memory_space<vmem>>, vector<32x32xbf16>
    %cst_13 = arith.constant dense<0.000000e+00> : vector<32x32xf32>
    %31 = tpu.matmul %29, %30, %cst_13 {dimension_numbers = #tpu.dot_dimension_numbers<[1], [0], [0], [1], [0, 0, 1, 1], [], []>} : vector<32x32xbf16>, vector<32x32xbf16>, vector<32x32xf32> -> vector<32x32xf32>
    %32 = arith.truncf %31 : vector<32x32xf32> to vector<32x32xbf16>
    %33 = vector.extract_strided_slice %32 {offsets = [0, 0], sizes = [32, 8], strides = [1, 1]} : vector<32x32xbf16> to vector<32x8xbf16>
    %c0_14 = arith.constant 0 : index
    %c0_15 = arith.constant 0 : index
    %34 = vector.load %arg14[%c0_14, %c0_15] : memref<64x32xbf16, #tpu.memory_space<vmem>>, vector<64x8xbf16>
    %c0_16 = arith.constant 0 : index
    %c0_17 = arith.constant 0 : index
    %35 = vector.load %arg15[%c0_16, %c0_17] : memref<64x32xbf16, #tpu.memory_space<vmem>>, vector<64x8xbf16>
    %cst_18 = arith.constant dense<0.000000e+00> : vector<32x64xf32>
    %36 = tpu.matmul %33, %34, %cst_18 {dimension_numbers = #tpu.dot_dimension_numbers<[1], [1], [0], [0], [0, 0, 1, 0], [], []>} : vector<32x8xbf16>, vector<64x8xbf16>, vector<32x64xf32> -> vector<32x64xf32>
    %cst_19 = arith.constant dense<0xFF800000> : vector<32xf32>
    %37 = vector.multi_reduction <maximumf>, %36, %cst_19 [1] : vector<32x64xf32> to vector<32xf32>
    %38 = vector.shape_cast %37 : vector<32xf32> to vector<32x1xf32>
    %39 = vector.broadcast %38 : vector<32x1xf32> to vector<32x64xf32>
    %40 = arith.subf %36, %39 : vector<32x64xf32>
    %41 = arith.truncf %40 : vector<32x64xf32> to vector<32x64xbf16>
    %42 = math.exp %41 : vector<32x64xbf16>
    %43 = arith.extf %42 : vector<32x64xbf16> to vector<32x64xf32>
    %cst_20 = arith.constant dense<0.000000e+00> : vector<32xf32>
    %44 = vector.multi_reduction <add>, %43, %cst_20 [1] : vector<32x64xf32> to vector<32xf32>
    %45 = vector.shape_cast %44 : vector<32xf32> to vector<32x1xf32>
    %cst_21 = arith.constant 1.000000e+00 : f32
    %46 = vector.broadcast %cst_21 : f32 to vector<32x1xf32>
    %47 = arith.divf %46, %45 : vector<32x1xf32>
    %48 = arith.extf %42 : vector<32x64xbf16> to vector<32x64xf32>
    %49 = vector.broadcast %47 : vector<32x1xf32> to vector<32x64xf32>
    %50 = arith.mulf %48, %49 : vector<32x64xf32>
    %51 = arith.truncf %50 : vector<32x64xf32> to vector<32x64xbf16>
    %c0_22 = arith.constant 0 : index
    %c0_23 = arith.constant 0 : index
    %c0_24 = arith.constant 0 : index
    %c0_25 = arith.constant 0 : index
    %52 = vector.load %arg13[%c0_22, %c0_23, %c0_24, %c0_25] : memref<1x4x32x64xbf16, #tpu.memory_space<vmem>>, vector<1x1x32x64xbf16>
    %53 = vector.shape_cast %52 : vector<1x1x32x64xbf16> to vector<32x64xbf16>
    %54 = vector.shape_cast %51 : vector<32x64xbf16> to vector<1x1x32x64xbf16>
    tpu.vector_store %arg13[%c0_22, %c0_23, %c0_24, %c0_25], %54 {strides = array<i32>} : memref<1x4x32x64xbf16, #tpu.memory_space<vmem>>, vector<1x1x32x64xbf16>,
    %cst_26 = arith.constant dense<0.000000e+00> : vector<32x8xf32>
    %55 = tpu.matmul %42, %35, %cst_26 {dimension_numbers = #tpu.dot_dimension_numbers<[1], [0], [0], [1], [0, 0, 1, 1], [], []>} : vector<32x64xbf16>, vector<64x8xbf16>, vector<32x8xf32> -> vector<32x8xf32>
    %56 = vector.broadcast %47 : vector<32x1xf32> to vector<32x8xf32>
    %57 = arith.mulf %55, %56 : vector<32x8xf32>
    %58 = arith.truncf %57 : vector<32x8xf32> to vector<32x8xbf16>
    %c0_27 = arith.constant 0 : index
    %c0_28 = arith.constant 0 : index
    %59 = vector.load %arg16[%c0_27, %c0_28] : memref<32x32xbf16, #tpu.memory_space<vmem>>, vector<32x8xbf16>
    tpu.vector_store %arg16[%c0_27, %c0_28], %58 {strides = array<i32>} : memref<32x32xbf16, #tpu.memory_space<vmem>>, vector<32x8xbf16>,
    %60 = vector.extract_strided_slice %32 {offsets = [0, 8], sizes = [32, 8], strides = [1, 1]} : vector<32x32xbf16> to vector<32x8xbf16>
    %c0_29 = arith.constant 0 : index
    %c8 = arith.constant 8 : index
    %61 = vector.load %arg14[%c0_29, %c8] : memref<64x32xbf16, #tpu.memory_space<vmem>>, vector<64x8xbf16>
    %c0_30 = arith.constant 0 : index
    %c8_31 = arith.constant 8 : index
    %62 = vector.load %arg15[%c0_30, %c8_31] : memref<64x32xbf16, #tpu.memory_space<vmem>>, vector<64x8xbf16>
    %cst_32 = arith.constant dense<0.000000e+00> : vector<32x64xf32>
    %63 = tpu.matmul %60, %61, %cst_32 {dimension_numbers = #tpu.dot_dimension_numbers<[1], [1], [0], [0], [0, 0, 1, 0], [], []>} : vector<32x8xbf16>, vector<64x8xbf16>, vector<32x64xf32> -> vector<32x64xf32>
    %cst_33 = arith.constant dense<0xFF800000> : vector<32xf32>
    %64 = vector.multi_reduction <maximumf>, %63, %cst_33 [1] : vector<32x64xf32> to vector<32xf32>
    %65 = vector.shape_cast %64 : vector<32xf32> to vector<32x1xf32>
    %66 = vector.broadcast %65 : vector<32x1xf32> to vector<32x64xf32>
    %67 = arith.subf %63, %66 : vector<32x64xf32>
    %68 = arith.truncf %67 : vector<32x64xf32> to vector<32x64xbf16>
    %69 = math.exp %68 : vector<32x64xbf16>
    %70 = arith.extf %69 : vector<32x64xbf16> to vector<32x64xf32>
    %cst_34 = arith.constant dense<0.000000e+00> : vector<32xf32>
    %71 = vector.multi_reduction <add>, %70, %cst_34 [1] : vector<32x64xf32> to vector<32xf32>
    %72 = vector.shape_cast %71 : vector<32xf32> to vector<32x1xf32>
    %cst_35 = arith.constant 1.000000e+00 : f32
    %73 = vector.broadcast %cst_35 : f32 to vector<32x1xf32>
    %74 = arith.divf %73, %72 : vector<32x1xf32>
    %75 = arith.extf %69 : vector<32x64xbf16> to vector<32x64xf32>
    %76 = vector.broadcast %74 : vector<32x1xf32> to vector<32x64xf32>
    %77 = arith.mulf %75, %76 : vector<32x64xf32>
    %78 = arith.truncf %77 : vector<32x64xf32> to vector<32x64xbf16>
    %c0_36 = arith.constant 0 : index
    %c1 = arith.constant 1 : index
    %c0_37 = arith.constant 0 : index
    %c0_38 = arith.constant 0 : index
    %79 = vector.load %arg13[%c0_36, %c1, %c0_37, %c0_38] : memref<1x4x32x64xbf16, #tpu.memory_space<vmem>>, vector<1x1x32x64xbf16>
    %80 = vector.shape_cast %79 : vector<1x1x32x64xbf16> to vector<32x64xbf16>
    %81 = vector.shape_cast %78 : vector<32x64xbf16> to vector<1x1x32x64xbf16>
    tpu.vector_store %arg13[%c0_36, %c1, %c0_37, %c0_38], %81 {strides = array<i32>} : memref<1x4x32x64xbf16, #tpu.memory_space<vmem>>, vector<1x1x32x64xbf16>,
    %cst_39 = arith.constant dense<0.000000e+00> : vector<32x8xf32>
    %82 = tpu.matmul %69, %62, %cst_39 {dimension_numbers = #tpu.dot_dimension_numbers<[1], [0], [0], [1], [0, 0, 1, 1], [], []>} : vector<32x64xbf16>, vector<64x8xbf16>, vector<32x8xf32> -> vector<32x8xf32>
    %83 = vector.broadcast %74 : vector<32x1xf32> to vector<32x8xf32>
    %84 = arith.mulf %82, %83 : vector<32x8xf32>
    %85 = arith.truncf %84 : vector<32x8xf32> to vector<32x8xbf16>
    %c0_40 = arith.constant 0 : index
    %c8_41 = arith.constant 8 : index
    %86 = vector.load %arg16[%c0_40, %c8_41] : memref<32x32xbf16, #tpu.memory_space<vmem>>, vector<32x8xbf16>
    tpu.vector_store %arg16[%c0_40, %c8_41], %85 {strides = array<i32>} : memref<32x32xbf16, #tpu.memory_space<vmem>>, vector<32x8xbf16>,
    %87 = vector.extract_strided_slice %32 {offsets = [0, 16], sizes = [32, 8], strides = [1, 1]} : vector<32x32xbf16> to vector<32x8xbf16>
    %c0_42 = arith.constant 0 : index
    %c16 = arith.constant 16 : index
    %88 = vector.load %arg14[%c0_42, %c16] : memref<64x32xbf16, #tpu.memory_space<vmem>>, vector<64x8xbf16>
    %c0_43 = arith.constant 0 : index
    %c16_44 = arith.constant 16 : index
    %89 = vector.load %arg15[%c0_43, %c16_44] : memref<64x32xbf16, #tpu.memory_space<vmem>>, vector<64x8xbf16>
    %cst_45 = arith.constant dense<0.000000e+00> : vector<32x64xf32>
    %90 = tpu.matmul %87, %88, %cst_45 {dimension_numbers = #tpu.dot_dimension_numbers<[1], [1], [0], [0], [0, 0, 1, 0], [], []>} : vector<32x8xbf16>, vector<64x8xbf16>, vector<32x64xf32> -> vector<32x64xf32>
    %cst_46 = arith.constant dense<0xFF800000> : vector<32xf32>
    %91 = vector.multi_reduction <maximumf>, %90, %cst_46 [1] : vector<32x64xf32> to vector<32xf32>
    %92 = vector.shape_cast %91 : vector<32xf32> to vector<32x1xf32>
    %93 = vector.broadcast %92 : vector<32x1xf32> to vector<32x64xf32>
    %94 = arith.subf %90, %93 : vector<32x64xf32>
    %95 = arith.truncf %94 : vector<32x64xf32> to vector<32x64xbf16>
    %96 = math.exp %95 : vector<32x64xbf16>
    %97 = arith.extf %96 : vector<32x64xbf16> to vector<32x64xf32>
    %cst_47 = arith.constant dense<0.000000e+00> : vector<32xf32>
    %98 = vector.multi_reduction <add>, %97, %cst_47 [1] : vector<32x64xf32> to vector<32xf32>
    %99 = vector.shape_cast %98 : vector<32xf32> to vector<32x1xf32>
    %cst_48 = arith.constant 1.000000e+00 : f32
    %100 = vector.broadcast %cst_48 : f32 to vector<32x1xf32>
    %101 = arith.divf %100, %99 : vector<32x1xf32>
    %102 = arith.extf %96 : vector<32x64xbf16> to vector<32x64xf32>
    %103 = vector.broadcast %101 : vector<32x1xf32> to vector<32x64xf32>
    %104 = arith.mulf %102, %103 : vector<32x64xf32>
    %105 = arith.truncf %104 : vector<32x64xf32> to vector<32x64xbf16>
    %c0_49 = arith.constant 0 : index
    %c2 = arith.constant 2 : index
    %c0_50 = arith.constant 0 : index
    %c0_51 = arith.constant 0 : index
    %106 = vector.load %arg13[%c0_49, %c2, %c0_50, %c0_51] : memref<1x4x32x64xbf16, #tpu.memory_space<vmem>>, vector<1x1x32x64xbf16>
    %107 = vector.shape_cast %106 : vector<1x1x32x64xbf16> to vector<32x64xbf16>
    %108 = vector.shape_cast %105 : vector<32x64xbf16> to vector<1x1x32x64xbf16>
    tpu.vector_store %arg13[%c0_49, %c2, %c0_50, %c0_51], %108 {strides = array<i32>} : memref<1x4x32x64xbf16, #tpu.memory_space<vmem>>, vector<1x1x32x64xbf16>,
    %cst_52 = arith.constant dense<0.000000e+00> : vector<32x8xf32>
    %109 = tpu.matmul %96, %89, %cst_52 {dimension_numbers = #tpu.dot_dimension_numbers<[1], [0], [0], [1], [0, 0, 1, 1], [], []>} : vector<32x64xbf16>, vector<64x8xbf16>, vector<32x8xf32> -> vector<32x8xf32>
    %110 = vector.broadcast %101 : vector<32x1xf32> to vector<32x8xf32>
    %111 = arith.mulf %109, %110 : vector<32x8xf32>
    %112 = arith.truncf %111 : vector<32x8xf32> to vector<32x8xbf16>
    %c0_53 = arith.constant 0 : index
    %c16_54 = arith.constant 16 : index
    %113 = vector.load %arg16[%c0_53, %c16_54] : memref<32x32xbf16, #tpu.memory_space<vmem>>, vector<32x8xbf16>
    tpu.vector_store %arg16[%c0_53, %c16_54], %112 {strides = array<i32>} : memref<32x32xbf16, #tpu.memory_space<vmem>>, vector<32x8xbf16>,
    %114 = vector.extract_strided_slice %32 {offsets = [0, 24], sizes = [32, 8], strides = [1, 1]} : vector<32x32xbf16> to vector<32x8xbf16>
    %c0_55 = arith.constant 0 : index
    %c24 = arith.constant 24 : index
    %115 = vector.load %arg14[%c0_55, %c24] : memref<64x32xbf16, #tpu.memory_space<vmem>>, vector<64x8xbf16>
    %c0_56 = arith.constant 0 : index
    %c24_57 = arith.constant 24 : index
    %116 = vector.load %arg15[%c0_56, %c24_57] : memref<64x32xbf16, #tpu.memory_space<vmem>>, vector<64x8xbf16>
    %cst_58 = arith.constant dense<0.000000e+00> : vector<32x64xf32>
    %117 = tpu.matmul %114, %115, %cst_58 {dimension_numbers = #tpu.dot_dimension_numbers<[1], [1], [0], [0], [0, 0, 1, 0], [], []>} : vector<32x8xbf16>, vector<64x8xbf16>, vector<32x64xf32> -> vector<32x64xf32>
    %cst_59 = arith.constant dense<0xFF800000> : vector<32xf32>
    %118 = vector.multi_reduction <maximumf>, %117, %cst_59 [1] : vector<32x64xf32> to vector<32xf32>
    %119 = vector.shape_cast %118 : vector<32xf32> to vector<32x1xf32>
    %120 = vector.broadcast %119 : vector<32x1xf32> to vector<32x64xf32>
    %121 = arith.subf %117, %120 : vector<32x64xf32>
    %122 = arith.truncf %121 : vector<32x64xf32> to vector<32x64xbf16>
    %123 = math.exp %122 : vector<32x64xbf16>
    %124 = arith.extf %123 : vector<32x64xbf16> to vector<32x64xf32>
    %cst_60 = arith.constant dense<0.000000e+00> : vector<32xf32>
    %125 = vector.multi_reduction <add>, %124, %cst_60 [1] : vector<32x64xf32> to vector<32xf32>
    %126 = vector.shape_cast %125 : vector<32xf32> to vector<32x1xf32>
    %cst_61 = arith.constant 1.000000e+00 : f32
    %127 = vector.broadcast %cst_61 : f32 to vector<32x1xf32>
    %128 = arith.divf %127, %126 : vector<32x1xf32>
    %129 = arith.extf %123 : vector<32x64xbf16> to vector<32x64xf32>
    %130 = vector.broadcast %128 : vector<32x1xf32> to vector<32x64xf32>
    %131 = arith.mulf %129, %130 : vector<32x64xf32>
    %132 = arith.truncf %131 : vector<32x64xf32> to vector<32x64xbf16>
    %c0_62 = arith.constant 0 : index
    %c3 = arith.constant 3 : index
    %c0_63 = arith.constant 0 : index
    %c0_64 = arith.constant 0 : index
    %133 = vector.load %arg13[%c0_62, %c3, %c0_63, %c0_64] : memref<1x4x32x64xbf16, #tpu.memory_space<vmem>>, vector<1x1x32x64xbf16>
    %134 = vector.shape_cast %133 : vector<1x1x32x64xbf16> to vector<32x64xbf16>
    %135 = vector.shape_cast %132 : vector<32x64xbf16> to vector<1x1x32x64xbf16>
    tpu.vector_store %arg13[%c0_62, %c3, %c0_63, %c0_64], %135 {strides = array<i32>} : memref<1x4x32x64xbf16, #tpu.memory_space<vmem>>, vector<1x1x32x64xbf16>,
    %cst_65 = arith.constant dense<0.000000e+00> : vector<32x8xf32>
    %136 = tpu.matmul %123, %116, %cst_65 {dimension_numbers = #tpu.dot_dimension_numbers<[1], [0], [0], [1], [0, 0, 1, 1], [], []>} : vector<32x64xbf16>, vector<64x8xbf16>, vector<32x8xf32> -> vector<32x8xf32>
    %137 = vector.broadcast %128 : vector<32x1xf32> to vector<32x8xf32>
    %138 = arith.mulf %136, %137 : vector<32x8xf32>
    %139 = arith.truncf %138 : vector<32x8xf32> to vector<32x8xbf16>
    %c0_66 = arith.constant 0 : index
    %c24_67 = arith.constant 24 : index
    %140 = vector.load %arg16[%c0_66, %c24_67] : memref<32x32xbf16, #tpu.memory_space<vmem>>, vector<32x8xbf16>
    tpu.vector_store %arg16[%c0_66, %c24_67], %139 {strides = array<i32>} : memref<32x32xbf16, #tpu.memory_space<vmem>>, vector<32x8xbf16>,
    %c0_68 = arith.constant 0 : index
    %c0_69 = arith.constant 0 : index
    %141 = vector.load %arg16[%c0_68, %c0_69] : memref<32x32xbf16, #tpu.memory_space<vmem>>, vector<32x32xbf16>
    %c0_70 = arith.constant 0 : index
    %c0_71 = arith.constant 0 : index
    %142 = vector.load %arg8[%c0_70, %c0_71] : memref<32x32xbf16, #tpu.memory_space<vmem>>, vector<32x32xbf16>
    %cst_72 = arith.constant dense<0.000000e+00> : vector<32x32xf32>
    %143 = tpu.matmul %141, %142, %cst_72 {dimension_numbers = #tpu.dot_dimension_numbers<[1], [0], [0], [1], [0, 0, 1, 1], [], []>} : vector<32x32xbf16>, vector<32x32xbf16>, vector<32x32xf32> -> vector<32x32xf32>
    %c0_73 = arith.constant 0 : index
    %c0_74 = arith.constant 0 : index
    %144 = vector.load %arg9[%c0_73, %c0_74] : memref<1x32xf32, #tpu.memory_space<vmem>>, vector<1x32xf32>
    %145 = vector.broadcast %144 : vector<1x32xf32> to vector<32x32xf32>
    %146 = arith.addf %143, %145 : vector<32x32xf32>
    %147 = arith.addf %146, %4 : vector<32x32xf32>
    %c0_75 = arith.constant 0 : index
    %c0_76 = arith.constant 0 : index
    %c0_77 = arith.constant 0 : index
    %148 = vector.load %arg12[%c0_75, %c0_76, %c0_77] : memref<1x32x32xf32, #tpu.memory_space<vmem>>, vector<1x32x32xf32>
    %149 = vector.shape_cast %148 : vector<1x32x32xf32> to vector<32x32xf32>
    %150 = vector.shape_cast %147 : vector<32x32xf32> to vector<1x32x32xf32>
    tpu.vector_store %arg12[%c0_75, %c0_76, %c0_77], %150 {strides = array<i32>} : memref<1x32x32xf32, #tpu.memory_space<vmem>>, vector<1x32x32xf32>,
    return
  }
  func.func @transform_0(%arg0: i32, %arg1: i32) -> (i32, i32, i32) {
    %c0_i32 = arith.constant 0 : i32
    %c0_i32_0 = arith.constant 0 : i32
    return %arg0, %arg1, %c0_i32 : i32, i32, i32
  }
  func.func @transform_1(%arg0: i32, %arg1: i32) -> (i32, i32, i32) {
    %c0_i32 = arith.constant 0 : i32
    %c0_i32_0 = arith.constant 0 : i32
    %c0_i32_1 = arith.constant 0 : i32
    return %arg0, %c0_i32, %c0_i32_0 : i32, i32, i32
  }
  func.func @transform_2(%arg0: i32, %arg1: i32) -> (i32, i32, i32) {
    %c0_i32 = arith.constant 0 : i32
    %c0_i32_0 = arith.constant 0 : i32
    %c0_i32_1 = arith.constant 0 : i32
    return %arg0, %c0_i32, %c0_i32_0 : i32, i32, i32
  }
  func.func @transform_3(%arg0: i32, %arg1: i32) -> (i32, i32) {
    %c0_i32 = arith.constant 0 : i32
    %c0_i32_0 = arith.constant 0 : i32
    %c0_i32_1 = arith.constant 0 : i32
    return %c0_i32, %c0_i32_0 : i32, i32
  }
  func.func @transform_4(%arg0: i32, %arg1: i32) -> (i32, i32) {
    %c0_i32 = arith.constant 0 : i32
    %c0_i32_0 = arith.constant 0 : i32
    %c0_i32_1 = arith.constant 0 : i32
    return %c0_i32, %c0_i32_0 : i32, i32
  }
  func.func @transform_5(%arg0: i32, %arg1: i32) -> (i32, i32) {
    %c0_i32 = arith.constant 0 : i32
    %c0_i32_0 = arith.constant 0 : i32
    %c0_i32_1 = arith.constant 0 : i32
    return %c0_i32, %c0_i32_0 : i32, i32
  }
  func.func @transform_6(%arg0: i32, %arg1: i32) -> (i32, i32) {
    %c0_i32 = arith.constant 0 : i32
    %c0_i32_0 = arith.constant 0 : i32
    %c0_i32_1 = arith.constant 0 : i32
    return %c0_i32, %c0_i32_0 : i32, i32
  }
  func.func @transform_7(%arg0: i32, %arg1: i32) -> (i32, i32) {
    %c0_i32 = arith.constant 0 : i32
    %c0_i32_0 = arith.constant 0 : i32
    %c0_i32_1 = arith.constant 0 : i32
    return %c0_i32, %c0_i32_0 : i32, i32
  }
  func.func @transform_8(%arg0: i32, %arg1: i32) -> (i32, i32) {
    %c0_i32 = arith.constant 0 : i32
    %c0_i32_0 = arith.constant 0 : i32
    %c0_i32_1 = arith.constant 0 : i32
    return %c0_i32, %c0_i32_0 : i32, i32
  }
  func.func @transform_9(%arg0: i32, %arg1: i32) -> (i32, i32) {
    %c0_i32 = arith.constant 0 : i32
    %c0_i32_0 = arith.constant 0 : i32
    %c0_i32_1 = arith.constant 0 : i32
    return %c0_i32, %c0_i32_0 : i32, i32
  }
  func.func @transform_10(%arg0: i32, %arg1: i32) -> (i32, i32, i32) {
    %c0_i32 = arith.constant 0 : i32
    %c0_i32_0 = arith.constant 0 : i32
    return %arg0, %arg1, %c0_i32 : i32, i32, i32
  }
  func.func @transform_11(%arg0: i32, %arg1: i32) -> (i32, i32, i32, i32) {
    %c0_i32 = arith.constant 0 : i32
    %c0_i32_0 = arith.constant 0 : i32
    %c0_i32_1 = arith.constant 0 : i32
    return %arg0, %c0_i32, %arg1, %c0_i32_0 : i32, i32, i32, i32
  }
}

module attributes {stable_mosaic.version = 11 : i64} {
  func.func @_mha_kernel(%arg0: i32, %arg1: i32, %arg2: memref<1x32x32xf32, #tpu.memory_space<vmem>>, %arg3: memref<1x64x32xbf16, #tpu.memory_space<vmem>>, %arg4: memref<1x64x32xbf16, #tpu.memory_space<vmem>>, %arg5: memref<32x32xbf16, #tpu.memory_space<vmem>>, %arg6: memref<32x32xbf16, #tpu.memory_space<vmem>>, %arg7: memref<32x32xbf16, #tpu.memory_space<vmem>>, %arg8: memref<32x32xbf16, #tpu.memory_space<vmem>>, %arg9: memref<1x32xf32, #tpu.memory_space<vmem>>, %arg10: memref<1x32xf32, #tpu.memory_space<vmem>>, %arg11: memref<1x32xf32, #tpu.memory_space<vmem>>, %arg12: memref<1x32x32xf32, #tpu.memory_space<vmem>>, %arg13: memref<1x4x32x64xbf16, #tpu.memory_space<vmem>>, %arg14: memref<64x32xbf16, #tpu.memory_space<vmem>>, %arg15: memref<64x32xbf16, #tpu.memory_space<vmem>>, %arg16: memref<32x32xbf16, #tpu.memory_space<vmem>>) attributes {dimension_semantics = [#tpu.dimension_semantics<parallel>, #tpu.dimension_semantics<arbitrary>], iteration_bounds = array<i64: 2, 2>, scalar_prefetch = 0 : i64, scratch_operands = 3 : i64, tpu.core_type = #tpu.core_type<tc>, window_params = [{transform_indices = @transform_0, window_bounds = array<i64: 1, 32, 32>}, {transform_indices = @transform_1, window_bounds = array<i64: 1, 64, 32>}, {transform_indices = @transform_2, window_bounds = array<i64: 1, 64, 32>}, {pipeline_mode = #tpu.pipeline_mode<synchronous>, transform_indices = @transform_3, window_bounds = array<i64: 32, 32>}, {pipeline_mode = #tpu.pipeline_mode<synchronous>, transform_indices = @transform_4, window_bounds = array<i64: 32, 32>}, {pipeline_mode = #tpu.pipeline_mode<synchronous>, transform_indices = @transform_5, window_bounds = array<i64: 32, 32>}, {pipeline_mode = #tpu.pipeline_mode<synchronous>, transform_indices = @transform_6, window_bounds = array<i64: 32, 32>}, {pipeline_mode = #tpu.pipeline_mode<synchronous>, transform_indices = @transform_7, window_bounds = array<i64: 1, 32>}, {pipeline_mode = #tpu.pipeline_mode<synchronous>, transform_indices = @transform_8, window_bounds = array<i64: 1, 32>}, {pipeline_mode = #tpu.pipeline_mode<synchronous>, transform_indices = @transform_9, window_bounds = array<i64: 1, 32>}, {transform_indices = @transform_10, window_bounds = array<i64: 1, 32, 32>}, {transform_indices = @transform_11, window_bounds = array<i64: 1, 4, 32, 64>}]} {
    %c0_i32 = arith.constant 0 : i32
    %0 = arith.cmpi eq, %arg1, %c0_i32 : i32
    %1 = arith.extui %0 : i1 to i32
    %c0_i32_0 = arith.constant 0 : i32
    %2 = arith.cmpi ne, %1, %c0_i32_0 : i32
    scf.if %2 {
      %c0_78 = arith.constant 0 : index
      %c0_79 = arith.constant 0 : index
      %c0_80 = arith.constant 0 : index
      %151 = vector.load %arg3[%c0_78, %c0_79, %c0_80] : memref<1x64x32xbf16, #tpu.memory_space<vmem>>, vector<1x64x32xbf16>
      %152 = vector.shape_cast %151 : vector<1x64x32xbf16> to vector<64x32xbf16>
      %c0_81 = arith.constant 0 : index
      %c0_82 = arith.constant 0 : index
      %c0_83 = arith.constant 0 : index
      %153 = vector.load %arg4[%c0_81, %c0_82, %c0_83] : memref<1x64x32xbf16, #tpu.memory_space<vmem>>, vector<1x64x32xbf16>
      %154 = vector.shape_cast %153 : vector<1x64x32xbf16> to vector<64x32xbf16>
      %c0_84 = arith.constant 0 : index
      %c0_85 = arith.constant 0 : index
      %155 = vector.load %arg6[%c0_84, %c0_85] : memref<32x32xbf16, #tpu.memory_space<vmem>>, vector<32x32xbf16>
      %cst_86 = arith.constant dense<0.000000e+00> : vector<64x32xf32>
      %156 = tpu.matmul %152, %155, %cst_86 {dimension_numbers = #tpu.dot_dimension_numbers<[1], [0], [0], [1], [0, 0, 1, 1], [], []>} : vector<64x32xbf16>, vector<32x32xbf16>, vector<64x32xf32> -> vector<64x32xf32>
      %157 = arith.truncf %156 : vector<64x32xf32> to vector<64x32xbf16>
      %c0_87 = arith.constant 0 : index
      %c0_88 = arith.constant 0 : index
      %158 = vector.load %arg14[%c0_87, %c0_88] : memref<64x32xbf16, #tpu.memory_space<vmem>>, vector<64x32xbf16>
      tpu.vector_store %arg14[%c0_87, %c0_88], %157 {strides = array<i32>} : memref<64x32xbf16, #tpu.memory_space<vmem>>, vector<64x32xbf16>,
      %c0_89 = arith.constant 0 : index
      %c0_90 = arith.constant 0 : index
      %159 = vector.load %arg7[%c0_89, %c0_90] : memref<32x32xbf16, #tpu.memory_space<vmem>>, vector<32x32xbf16>
      %cst_91 = arith.constant dense<0.000000e+00> : vector<64x32xf32>
      %160 = tpu.matmul %154, %159, %cst_91 {dimension_numbers = #tpu.dot_dimension_numbers<[1], [0], [0], [1], [0, 0, 1, 1], [], []>} : vector<64x32xbf16>, vector<32x32xbf16>, vector<64x32xf32> -> vector<64x32xf32>
      %161 = arith.truncf %160 : vector<64x32xf32> to vector<64x32xbf16>
      %c0_92 = arith.constant 0 : index
      %c0_93 = arith.constant 0 : index
      %162 = vector.load %arg15[%c0_92, %c0_93] : memref<64x32xbf16, #tpu.memory_space<vmem>>, vector<64x32xbf16>
      tpu.vector_store %arg15[%c0_92, %c0_93], %161 {strides = array<i32>} : memref<64x32xbf16, #tpu.memory_space<vmem>>, vector<64x32xbf16>,
    } else {
    }
    %c0 = arith.constant 0 : index
    %c0_1 = arith.constant 0 : index
    %c0_2 = arith.constant 0 : index
    %3 = vector.load %arg2[%c0, %c0_1, %c0_2] : memref<1x32x32xf32, #tpu.memory_space<vmem>>, vector<1x32x32xf32>
    %4 = vector.shape_cast %3 : vector<1x32x32xf32> to vector<32x32xf32>
    %cst = arith.constant dense<0.000000e+00> : vector<32xf32>
    %5 = vector.multi_reduction <add>, %4, %cst [1] : vector<32x32xf32> to vector<32xf32>
    %6 = vector.shape_cast %5 : vector<32xf32> to vector<32x1xf32>
    %cst_3 = arith.constant 3.200000e+01 : f32
    %7 = vector.broadcast %cst_3 : f32 to vector<32x1xf32>
    %8 = arith.divf %6, %7 : vector<32x1xf32>
    %9 = vector.broadcast %8 : vector<32x1xf32> to vector<32x32xf32>
    %10 = arith.subf %4, %9 : vector<32x32xf32>
    %11 = arith.mulf %10, %10 : vector<32x32xf32>
    %cst_4 = arith.constant dense<0.000000e+00> : vector<32xf32>
    %12 = vector.multi_reduction <add>, %11, %cst_4 [1] : vector<32x32xf32> to vector<32xf32>
    %13 = vector.shape_cast %12 : vector<32xf32> to vector<32x1xf32>
    %cst_5 = arith.constant 3.200000e+01 : f32
    %14 = vector.broadcast %cst_5 : f32 to vector<32x1xf32>
    %15 = arith.divf %13, %14 : vector<32x1xf32>
    %16 = vector.broadcast %8 : vector<32x1xf32> to vector<32x32xf32>
    %17 = arith.subf %4, %16 : vector<32x32xf32>
    %cst_6 = arith.constant 9.99999997E-7 : f32
    %18 = vector.broadcast %cst_6 : f32 to vector<32x1xf32>
    %19 = arith.addf %15, %18 : vector<32x1xf32>
    %20 = math.rsqrt %19 : vector<32x1xf32>
    %21 = vector.broadcast %20 : vector<32x1xf32> to vector<32x32xf32>
    %22 = arith.mulf %17, %21 : vector<32x32xf32>
    %c0_7 = arith.constant 0 : index
    %c0_8 = arith.constant 0 : index
    %23 = vector.load %arg10[%c0_7, %c0_8] : memref<1x32xf32, #tpu.memory_space<vmem>>, vector<1x32xf32>
    %24 = vector.broadcast %23 : vector<1x32xf32> to vector<32x32xf32>
    %25 = arith.mulf %22, %24 : vector<32x32xf32>
    %c0_9 = arith.constant 0 : index
    %c0_10 = arith.constant 0 : index
    %26 = vector.load %arg11[%c0_9, %c0_10] : memref<1x32xf32, #tpu.memory_space<vmem>>, vector<1x32xf32>
    %27 = vector.broadcast %26 : vector<1x32xf32> to vector<32x32xf32>
    %28 = arith.addf %25, %27 : vector<32x32xf32>
    %29 = arith.truncf %28 : vector<32x32xf32> to vector<32x32xbf16>
    %c0_11 = arith.constant 0 : index
    %c0_12 = arith.constant 0 : index
    %30 = vector.load %arg5[%c0_11, %c0_12] : memref<32x32xbf16, #tpu.memory_space<vmem>>, vector<32x32xbf16>
    %cst_13 = arith.constant dense<0.000000e+00> : vector<32x32xf32>
    %31 = tpu.matmul %29, %30, %cst_13 {dimension_numbers = #tpu.dot_dimension_numbers<[1], [0], [0], [1], [0, 0, 1, 1], [], []>} : vector<32x32xbf16>, vector<32x32xbf16>, vector<32x32xf32> -> vector<32x32xf32>
    %32 = arith.truncf %31 : vector<32x32xf32> to vector<32x32xbf16>
    %33 = vector.extract_strided_slice %32 {offsets = [0, 0], sizes = [32, 8], strides = [1, 1]} : vector<32x32xbf16> to vector<32x8xbf16>
    %c0_14 = arith.constant 0 : index
    %c0_15 = arith.constant 0 : index
    %34 = vector.load %arg14[%c0_14, %c0_15] : memref<64x32xbf16, #tpu.memory_space<vmem>>, vector<64x8xbf16>
    %c0_16 = arith.constant 0 : index
    %c0_17 = arith.constant 0 : index
    %35 = vector.load %arg15[%c0_16, %c0_17] : memref<64x32xbf16, #tpu.memory_space<vmem>>, vector<64x8xbf16>
    %cst_18 = arith.constant dense<0.000000e+00> : vector<32x64xf32>
    %36 = tpu.matmul %33, %34, %cst_18 {dimension_numbers = #tpu.dot_dimension_numbers<[1], [1], [0], [0], [0, 0, 1, 0], [], []>} : vector<32x8xbf16>, vector<64x8xbf16>, vector<32x64xf32> -> vector<32x64xf32>
    %cst_19 = arith.constant dense<0xFF800000> : vector<32xf32>
    %37 = vector.multi_reduction <maximumf>, %36, %cst_19 [1] : vector<32x64xf32> to vector<32xf32>
    %38 = vector.shape_cast %37 : vector<32xf32> to vector<32x1xf32>
    %39 = vector.broadcast %38 : vector<32x1xf32> to vector<32x64xf32>
    %40 = arith.subf %36, %39 : vector<32x64xf32>
    %41 = arith.truncf %40 : vector<32x64xf32> to vector<32x64xbf16>
    %42 = math.exp %41 : vector<32x64xbf16>
    %43 = arith.extf %42 : vector<32x64xbf16> to vector<32x64xf32>
    %cst_20 = arith.constant dense<0.000000e+00> : vector<32xf32>
    %44 = vector.multi_reduction <add>, %43, %cst_20 [1] : vector<32x64xf32> to vector<32xf32>
    %45 = vector.shape_cast %44 : vector<32xf32> to vector<32x1xf32>
    %cst_21 = arith.constant 1.000000e+00 : f32
    %46 = vector.broadcast %cst_21 : f32 to vector<32x1xf32>
    %47 = arith.divf %46, %45 : vector<32x1xf32>
    %48 = arith.extf %42 : vector<32x64xbf16> to vector<32x64xf32>
    %49 = vector.broadcast %47 : vector<32x1xf32> to vector<32x64xf32>
    %50 = arith.mulf %48, %49 : vector<32x64xf32>
    %51 = arith.truncf %50 : vector<32x64xf32> to vector<32x64xbf16>
    %c0_22 = arith.constant 0 : index
    %c0_23 = arith.constant 0 : index
    %c0_24 = arith.constant 0 : index
    %c0_25 = arith.constant 0 : index
    %52 = vector.load %arg13[%c0_22, %c0_23, %c0_24, %c0_25] : memref<1x4x32x64xbf16, #tpu.memory_space<vmem>>, vector<1x1x32x64xbf16>
    %53 = vector.shape_cast %52 : vector<1x1x32x64xbf16> to vector<32x64xbf16>
    %54 = vector.shape_cast %51 : vector<32x64xbf16> to vector<1x1x32x64xbf16>
    tpu.vector_store %arg13[%c0_22, %c0_23, %c0_24, %c0_25], %54 {strides = array<i32>} : memref<1x4x32x64xbf16, #tpu.memory_space<vmem>>, vector<1x1x32x64xbf16>,
    %cst_26 = arith.constant dense<0.000000e+00> : vector<32x8xf32>
    %55 = tpu.matmul %42, %35, %cst_26 {dimension_numbers = #tpu.dot_dimension_numbers<[1], [0], [0], [1], [0, 0, 1, 1], [], []>} : vector<32x64xbf16>, vector<64x8xbf16>, vector<32x8xf32> -> vector<32x8xf32>
    %56 = vector.broadcast %47 : vector<32x1xf32> to vector<32x8xf32>
    %57 = arith.mulf %55, %56 : vector<32x8xf32>
    %58 = arith.truncf %57 : vector<32x8xf32> to vector<32x8xbf16>
    %c0_27 = arith.constant 0 : index
    %c0_28 = arith.constant 0 : index
    %59 = vector.load %arg16[%c0_27, %c0_28] : memref<32x32xbf16, #tpu.memory_space<vmem>>, vector<32x8xbf16>
    tpu.vector_store %arg16[%c0_27, %c0_28], %58 {strides = array<i32>} : memref<32x32xbf16, #tpu.memory_space<vmem>>, vector<32x8xbf16>,
    %60 = vector.extract_strided_slice %32 {offsets = [0, 8], sizes = [32, 8], strides = [1, 1]} : vector<32x32xbf16> to vector<32x8xbf16>
    %c0_29 = arith.constant 0 : index
    %c8 = arith.constant 8 : index
    %61 = vector.load %arg14[%c0_29, %c8] : memref<64x32xbf16, #tpu.memory_space<vmem>>, vector<64x8xbf16>
    %c0_30 = arith.constant 0 : index
    %c8_31 = arith.constant 8 : index
    %62 = vector.load %arg15[%c0_30, %c8_31] : memref<64x32xbf16, #tpu.memory_space<vmem>>, vector<64x8xbf16>
    %cst_32 = arith.constant dense<0.000000e+00> : vector<32x64xf32>
    %63 = tpu.matmul %60, %61, %cst_32 {dimension_numbers = #tpu.dot_dimension_numbers<[1], [1], [0], [0], [0, 0, 1, 0], [], []>} : vector<32x8xbf16>, vector<64x8xbf16>, vector<32x64xf32> -> vector<32x64xf32>
    %cst_33 = arith.constant dense<0xFF800000> : vector<32xf32>
    %64 = vector.multi_reduction <maximumf>, %63, %cst_33 [1] : vector<32x64xf32> to vector<32xf32>
    %65 = vector.shape_cast %64 : vector<32xf32> to vector<32x1xf32>
    %66 = vector.broadcast %65 : vector<32x1xf32> to vector<32x64xf32>
    %67 = arith.subf %63, %66 : vector<32x64xf32>
    %68 = arith.truncf %67 : vector<32x64xf32> to vector<32x64xbf16>
    %69 = math.exp %68 : vector<32x64xbf16>
    %70 = arith.extf %69 : vector<32x64xbf16> to vector<32x64xf32>
    %cst_34 = arith.constant dense<0.000000e+00> : vector<32xf32>
    %71 = vector.multi_reduction <add>, %70, %cst_34 [1] : vector<32x64xf32> to vector<32xf32>
    %72 = vector.shape_cast %71 : vector<32xf32> to vector<32x1xf32>
    %cst_35 = arith.constant 1.000000e+00 : f32
    %73 = vector.broadcast %cst_35 : f32 to vector<32x1xf32>
    %74 = arith.divf %73, %72 : vector<32x1xf32>
    %75 = arith.extf %69 : vector<32x64xbf16> to vector<32x64xf32>
    %76 = vector.broadcast %74 : vector<32x1xf32> to vector<32x64xf32>
    %77 = arith.mulf %75, %76 : vector<32x64xf32>
    %78 = arith.truncf %77 : vector<32x64xf32> to vector<32x64xbf16>
    %c0_36 = arith.constant 0 : index
    %c1 = arith.constant 1 : index
    %c0_37 = arith.constant 0 : index
    %c0_38 = arith.constant 0 : index
    %79 = vector.load %arg13[%c0_36, %c1, %c0_37, %c0_38] : memref<1x4x32x64xbf16, #tpu.memory_space<vmem>>, vector<1x1x32x64xbf16>
    %80 = vector.shape_cast %79 : vector<1x1x32x64xbf16> to vector<32x64xbf16>
    %81 = vector.shape_cast %78 : vector<32x64xbf16> to vector<1x1x32x64xbf16>
    tpu.vector_store %arg13[%c0_36, %c1, %c0_37, %c0_38], %81 {strides = array<i32>} : memref<1x4x32x64xbf16, #tpu.memory_space<vmem>>, vector<1x1x32x64xbf16>,
    %cst_39 = arith.constant dense<0.000000e+00> : vector<32x8xf32>
    %82 = tpu.matmul %69, %62, %cst_39 {dimension_numbers = #tpu.dot_dimension_numbers<[1], [0], [0], [1], [0, 0, 1, 1], [], []>} : vector<32x64xbf16>, vector<64x8xbf16>, vector<32x8xf32> -> vector<32x8xf32>
    %83 = vector.broadcast %74 : vector<32x1xf32> to vector<32x8xf32>
    %84 = arith.mulf %82, %83 : vector<32x8xf32>
    %85 = arith.truncf %84 : vector<32x8xf32> to vector<32x8xbf16>
    %c0_40 = arith.constant 0 : index
    %c8_41 = arith.constant 8 : index
    %86 = vector.load %arg16[%c0_40, %c8_41] : memref<32x32xbf16, #tpu.memory_space<vmem>>, vector<32x8xbf16>
    tpu.vector_store %arg16[%c0_40, %c8_41], %85 {strides = array<i32>} : memref<32x32xbf16, #tpu.memory_space<vmem>>, vector<32x8xbf16>,
    %87 = vector.extract_strided_slice %32 {offsets = [0, 16], sizes = [32, 8], strides = [1, 1]} : vector<32x32xbf16> to vector<32x8xbf16>
    %c0_42 = arith.constant 0 : index
    %c16 = arith.constant 16 : index
    %88 = vector.load %arg14[%c0_42, %c16] : memref<64x32xbf16, #tpu.memory_space<vmem>>, vector<64x8xbf16>
    %c0_43 = arith.constant 0 : index
    %c16_44 = arith.constant 16 : index
    %89 = vector.load %arg15[%c0_43, %c16_44] : memref<64x32xbf16, #tpu.memory_space<vmem>>, vector<64x8xbf16>
    %cst_45 = arith.constant dense<0.000000e+00> : vector<32x64xf32>
    %90 = tpu.matmul %87, %88, %cst_45 {dimension_numbers = #tpu.dot_dimension_numbers<[1], [1], [0], [0], [0, 0, 1, 0], [], []>} : vector<32x8xbf16>, vector<64x8xbf16>, vector<32x64xf32> -> vector<32x64xf32>
    %cst_46 = arith.constant dense<0xFF800000> : vector<32xf32>
    %91 = vector.multi_reduction <maximumf>, %90, %cst_46 [1] : vector<32x64xf32> to vector<32xf32>
    %92 = vector.shape_cast %91 : vector<32xf32> to vector<32x1xf32>
    %93 = vector.broadcast %92 : vector<32x1xf32> to vector<32x64xf32>
    %94 = arith.subf %90, %93 : vector<32x64xf32>
    %95 = arith.truncf %94 : vector<32x64xf32> to vector<32x64xbf16>
    %96 = math.exp %95 : vector<32x64xbf16>
    %97 = arith.extf %96 : vector<32x64xbf16> to vector<32x64xf32>
    %cst_47 = arith.constant dense<0.000000e+00> : vector<32xf32>
    %98 = vector.multi_reduction <add>, %97, %cst_47 [1] : vector<32x64xf32> to vector<32xf32>
    %99 = vector.shape_cast %98 : vector<32xf32> to vector<32x1xf32>
    %cst_48 = arith.constant 1.000000e+00 : f32
    %100 = vector.broadcast %cst_48 : f32 to vector<32x1xf32>
    %101 = arith.divf %100, %99 : vector<32x1xf32>
    %102 = arith.extf %96 : vector<32x64xbf16> to vector<32x64xf32>
    %103 = vector.broadcast %101 : vector<32x1xf32> to vector<32x64xf32>
    %104 = arith.mulf %102, %103 : vector<32x64xf32>
    %105 = arith.truncf %104 : vector<32x64xf32> to vector<32x64xbf16>
    %c0_49 = arith.constant 0 : index
    %c2 = arith.constant 2 : index
    %c0_50 = arith.constant 0 : index
    %c0_51 = arith.constant 0 : index
    %106 = vector.load %arg13[%c0_49, %c2, %c0_50, %c0_51] : memref<1x4x32x64xbf16, #tpu.memory_space<vmem>>, vector<1x1x32x64xbf16>
    %107 = vector.shape_cast %106 : vector<1x1x32x64xbf16> to vector<32x64xbf16>
    %108 = vector.shape_cast %105 : vector<32x64xbf16> to vector<1x1x32x64xbf16>
    tpu.vector_store %arg13[%c0_49, %c2, %c0_50, %c0_51], %108 {strides = array<i32>} : memref<1x4x32x64xbf16, #tpu.memory_space<vmem>>, vector<1x1x32x64xbf16>,
    %cst_52 = arith.constant dense<0.000000e+00> : vector<32x8xf32>
    %109 = tpu.matmul %96, %89, %cst_52 {dimension_numbers = #tpu.dot_dimension_numbers<[1], [0], [0], [1], [0, 0, 1, 1], [], []>} : vector<32x64xbf16>, vector<64x8xbf16>, vector<32x8xf32> -> vector<32x8xf32>
    %110 = vector.broadcast %101 : vector<32x1xf32> to vector<32x8xf32>
    %111 = arith.mulf %109, %110 : vector<32x8xf32>
    %112 = arith.truncf %111 : vector<32x8xf32> to vector<32x8xbf16>
    %c0_53 = arith.constant 0 : index
    %c16_54 = arith.constant 16 : index
    %113 = vector.load %arg16[%c0_53, %c16_54] : memref<32x32xbf16, #tpu.memory_space<vmem>>, vector<32x8xbf16>
    tpu.vector_store %arg16[%c0_53, %c16_54], %112 {strides = array<i32>} : memref<32x32xbf16, #tpu.memory_space<vmem>>, vector<32x8xbf16>,
    %114 = vector.extract_strided_slice %32 {offsets = [0, 24], sizes = [32, 8], strides = [1, 1]} : vector<32x32xbf16> to vector<32x8xbf16>
    %c0_55 = arith.constant 0 : index
    %c24 = arith.constant 24 : index
    %115 = vector.load %arg14[%c0_55, %c24] : memref<64x32xbf16, #tpu.memory_space<vmem>>, vector<64x8xbf16>
    %c0_56 = arith.constant 0 : index
    %c24_57 = arith.constant 24 : index
    %116 = vector.load %arg15[%c0_56, %c24_57] : memref<64x32xbf16, #tpu.memory_space<vmem>>, vector<64x8xbf16>
    %cst_58 = arith.constant dense<0.000000e+00> : vector<32x64xf32>
    %117 = tpu.matmul %114, %115, %cst_58 {dimension_numbers = #tpu.dot_dimension_numbers<[1], [1], [0], [0], [0, 0, 1, 0], [], []>} : vector<32x8xbf16>, vector<64x8xbf16>, vector<32x64xf32> -> vector<32x64xf32>
    %cst_59 = arith.constant dense<0xFF800000> : vector<32xf32>
    %118 = vector.multi_reduction <maximumf>, %117, %cst_59 [1] : vector<32x64xf32> to vector<32xf32>
    %119 = vector.shape_cast %118 : vector<32xf32> to vector<32x1xf32>
    %120 = vector.broadcast %119 : vector<32x1xf32> to vector<32x64xf32>
    %121 = arith.subf %117, %120 : vector<32x64xf32>
    %122 = arith.truncf %121 : vector<32x64xf32> to vector<32x64xbf16>
    %123 = math.exp %122 : vector<32x64xbf16>
    %124 = arith.extf %123 : vector<32x64xbf16> to vector<32x64xf32>
    %cst_60 = arith.constant dense<0.000000e+00> : vector<32xf32>
    %125 = vector.multi_reduction <add>, %124, %cst_60 [1] : vector<32x64xf32> to vector<32xf32>
    %126 = vector.shape_cast %125 : vector<32xf32> to vector<32x1xf32>
    %cst_61 = arith.constant 1.000000e+00 : f32
    %127 = vector.broadcast %cst_61 : f32 to vector<32x1xf32>
    %128 = arith.divf %127, %126 : vector<32x1xf32>
    %129 = arith.extf %123 : vector<32x64xbf16> to vector<32x64xf32>
    %130 = vector.broadcast %128 : vector<32x1xf32> to vector<32x64xf32>
    %131 = arith.mulf %129, %130 : vector<32x64xf32>
    %132 = arith.truncf %131 : vector<32x64xf32> to vector<32x64xbf16>
    %c0_62 = arith.constant 0 : index
    %c3 = arith.constant 3 : index
    %c0_63 = arith.constant 0 : index
    %c0_64 = arith.constant 0 : index
    %133 = vector.load %arg13[%c0_62, %c3, %c0_63, %c0_64] : memref<1x4x32x64xbf16, #tpu.memory_space<vmem>>, vector<1x1x32x64xbf16>
    %134 = vector.shape_cast %133 : vector<1x1x32x64xbf16> to vector<32x64xbf16>
    %135 = vector.shape_cast %132 : vector<32x64xbf16> to vector<1x1x32x64xbf16>
    tpu.vector_store %arg13[%c0_62, %c3, %c0_63, %c0_64], %135 {strides = array<i32>} : memref<1x4x32x64xbf16, #tpu.memory_space<vmem>>, vector<1x1x32x64xbf16>,
    %cst_65 = arith.constant dense<0.000000e+00> : vector<32x8xf32>
    %136 = tpu.matmul %123, %116, %cst_65 {dimension_numbers = #tpu.dot_dimension_numbers<[1], [0], [0], [1], [0, 0, 1, 1], [], []>} : vector<32x64xbf16>, vector<64x8xbf16>, vector<32x8xf32> -> vector<32x8xf32>
    %137 = vector.broadcast %128 : vector<32x1xf32> to vector<32x8xf32>
    %138 = arith.mulf %136, %137 : vector<32x8xf32>
    %139 = arith.truncf %138 : vector<32x8xf32> to vector<32x8xbf16>
    %c0_66 = arith.constant 0 : index
    %c24_67 = arith.constant 24 : index
    %140 = vector.load %arg16[%c0_66, %c24_67] : memref<32x32xbf16, #tpu.memory_space<vmem>>, vector<32x8xbf16>
    tpu.vector_store %arg16[%c0_66, %c24_67], %139 {strides = array<i32>} : memref<32x32xbf16, #tpu.memory_space<vmem>>, vector<32x8xbf16>,
    %c0_68 = arith.constant 0 : index
    %c0_69 = arith.constant 0 : index
    %141 = vector.load %arg16[%c0_68, %c0_69] : memref<32x32xbf16, #tpu.memory_space<vmem>>, vector<32x32xbf16>
    %c0_70 = arith.constant 0 : index
    %c0_71 = arith.constant 0 : index
    %142 = vector.load %arg8[%c0_70, %c0_71] : memref<32x32xbf16, #tpu.memory_space<vmem>>, vector<32x32xbf16>
    %cst_72 = arith.constant dense<0.000000e+00> : vector<32x32xf32>
    %143 = tpu.matmul %141, %142, %cst_72 {dimension_numbers = #tpu.dot_dimension_numbers<[1], [0], [0], [1], [0, 0, 1, 1], [], []>} : vector<32x32xbf16>, vector<32x32xbf16>, vector<32x32xf32> -> vector<32x32xf32>
    %c0_73 = arith.constant 0 : index
    %c0_74 = arith.constant 0 : index
    %144 = vector.load %arg9[%c0_73, %c0_74] : memref<1x32xf32, #tpu.memory_space<vmem>>, vector<1x32xf32>
    %145 = vector.broadcast %144 : vector<1x32xf32> to vector<32x32xf32>
    %146 = arith.addf %143, %145 : vector<32x32xf32>
    %147 = arith.addf %146, %4 : vector<32x32xf32>
    %c0_75 = arith.constant 0 : index
    %c0_76 = arith.constant 0 : index
    %c0_77 = arith.constant 0 : index
    %148 = vector.load %arg12[%c0_75, %c0_76, %c0_77] : memref<1x32x32xf32, #tpu.memory_space<vmem>>, vector<1x32x32xf32>
    %149 = vector.shape_cast %148 : vector<1x32x32xf32> to vector<32x32xf32>
    %150 = vector.shape_cast %147 : vector<32x32xf32> to vector<1x32x32xf32>
    tpu.vector_store %arg12[%c0_75, %c0_76, %c0_77], %150 {strides = array<i32>} : memref<1x32x32xf32, #tpu.memory_space<vmem>>, vector<1x32x32xf32>,
    return
  }
  func.func @transform_0(%arg0: i32, %arg1: i32) -> (i32, i32, i32) {
    %c0_i32 = arith.constant 0 : i32
    %c0_i32_0 = arith.constant 0 : i32
    return %arg0, %arg1, %c0_i32 : i32, i32, i32
  }
  func.func @transform_1(%arg0: i32, %arg1: i32) -> (i32, i32, i32) {
    %c0_i32 = arith.constant 0 : i32
    %c0_i32_0 = arith.constant 0 : i32
    %c0_i32_1 = arith.constant 0 : i32
    return %arg0, %c0_i32, %c0_i32_0 : i32, i32, i32
  }
  func.func @transform_2(%arg0: i32, %arg1: i32) -> (i32, i32, i32) {
    %c0_i32 = arith.constant 0 : i32
    %c0_i32_0 = arith.constant 0 : i32
    %c0_i32_1 = arith.constant 0 : i32
    return %arg0, %c0_i32, %c0_i32_0 : i32, i32, i32
  }
  func.func @transform_3(%arg0: i32, %arg1: i32) -> (i32, i32) {
    %c0_i32 = arith.constant 0 : i32
    %c0_i32_0 = arith.constant 0 : i32
    %c0_i32_1 = arith.constant 0 : i32
    return %c0_i32, %c0_i32_0 : i32, i32
  }
  func.func @transform_4(%arg0: i32, %arg1: i32) -> (i32, i32) {
    %c0_i32 = arith.constant 0 : i32
    %c0_i32_0 = arith.constant 0 : i32
    %c0_i32_1 = arith.constant 0 : i32
    return %c0_i32, %c0_i32_0 : i32, i32
  }
  func.func @transform_5(%arg0: i32, %arg1: i32) -> (i32, i32) {
    %c0_i32 = arith.constant 0 : i32
    %c0_i32_0 = arith.constant 0 : i32
    %c0_i32_1 = arith.constant 0 : i32
    return %c0_i32, %c0_i32_0 : i32, i32
  }
  func.func @transform_6(%arg0: i32, %arg1: i32) -> (i32, i32) {
    %c0_i32 = arith.constant 0 : i32
    %c0_i32_0 = arith.constant 0 : i32
    %c0_i32_1 = arith.constant 0 : i32
    return %c0_i32, %c0_i32_0 : i32, i32
  }
  func.func @transform_7(%arg0: i32, %arg1: i32) -> (i32, i32) {
    %c0_i32 = arith.constant 0 : i32
    %c0_i32_0 = arith.constant 0 : i32
    %c0_i32_1 = arith.constant 0 : i32
    return %c0_i32, %c0_i32_0 : i32, i32
  }
  func.func @transform_8(%arg0: i32, %arg1: i32) -> (i32, i32) {
    %c0_i32 = arith.constant 0 : i32
    %c0_i32_0 = arith.constant 0 : i32
    %c0_i32_1 = arith.constant 0 : i32
    return %c0_i32, %c0_i32_0 : i32, i32
  }
  func.func @transform_9(%arg0: i32, %arg1: i32) -> (i32, i32) {
    %c0_i32 = arith.constant 0 : i32
    %c0_i32_0 = arith.constant 0 : i32
    %c0_i32_1 = arith.constant 0 : i32
    return %c0_i32, %c0_i32_0 : i32, i32
  }
  func.func @transform_10(%arg0: i32, %arg1: i32) -> (i32, i32, i32) {
    %c0_i32 = arith.constant 0 : i32
    %c0_i32_0 = arith.constant 0 : i32
    return %arg0, %arg1, %c0_i32 : i32, i32, i32
  }
  func.func @transform_11(%arg0: i32, %arg1: i32) -> (i32, i32, i32, i32) {
    %c0_i32 = arith.constant 0 : i32
    %c0_i32_0 = arith.constant 0 : i32
    %c0_i32_1 = arith.constant 0 : i32
    return %arg0, %c0_i32, %arg1, %c0_i32_0 : i32, i32, i32, i32
  }
}

</mosaic_0001>

<bundles_post_ra>
// kernel: tpu_custom_call.1
= control target key start
LH: loop header
LB: loop body
LE: loop exit
PB: predicated region body
PF: predicated region fallthrough
CT: control target
= control target key end

     0   :  { %s3412_s0 = inlined_call_operand.vmem [shape: f32[2,64,32], index: 0, kind: input, shape index: {}]   ;;  %s3413_s1 = inlined_call_operand.vmem [shape: bf16[2,64,32], index: 1, kind: input, shape index: {}]   ;;  %s3414_s2 = inlined_call_operand.vmem [shape: bf16[2,64,32], index: 2, kind: input, shape index: {}]   ;;  %s3415_s3 = inlined_call_operand.vmem [shape: bf16[32,32], index: 3, kind: input, shape index: {}]   ;;  %s3416_s4 = inlined_call_operand.vmem [shape: bf16[32,32], index: 4, kind: input, shape index: {}]   ;;  %s3417_s5 = inlined_call_operand.vmem [shape: bf16[32,32], index: 5, kind: input, shape index: {}]   ;;  %s3418_s6 = inlined_call_operand.vmem [shape: bf16[32,32], index: 6, kind: input, shape index: {}]   ;;  %s3419_s7 = inlined_call_operand.vmem [shape: f32[1,32], index: 7, kind: input, shape index: {}]   ;;  %s3420_s8 = inlined_call_operand.vmem [shape: f32[1,32], index: 8, kind: input, shape index: {}]   ;;  %s3421_s9 = inlined_call_operand.vmem [shape: f32[1,32], index: 9, kind: input, shape index: {}]   ;;  %s3422_s10 = inlined_call_operand.vmem [shape: f32[2,64,32], index: 10, kind: output, shape index: {0}]   ;;  %s3423_s11 = inlined_call_operand.hbm [shape: bf16[2,4,64,64], index: 11, kind: output, shape index: {1}]  }
   0x1   :  { %3438 = sst [smem:[#allocation22_spill]] %s3423_s11 }
   0x2   :  { %17 = vsyncpa [#allocation6], 0 }
   0x3   :  { %19 = vsyncpa [#allocation6 + $0x1], 0  ;;  %s2806_s17 = smov 0   ;;  %s2808_s18 = smov 0  }
   0x4   :  { %s2810_s19 = smov 0   ;;  %s2812_s20 = smov 0  }
   0x5   :  { %s2814_s21 = smov 0   ;;  %s2816_s22 = smov 0  }
   0x6   :  { %s2818_s23 = smov 0   ;;  %s2820_s24 = smov 0  }
   0x7 LB: > { %3439 = sst [smem:[#allocation10_spill]] %s2704_s17  ;;  %s2165_s25 = sadd.s32 4294967295, %s2732_s24   ;;  %s2732_s24 = sphi %s2820_s24, %s25_s24   ;;  %s2728_s23 = sphi %s2818_s23, %s3466_s23   ;;  %s2724_s22 = sphi %s2816_s22, %s3465_s22   ;;  %s2720_s21 = sphi %s2814_s21, %s3464_s21   ;;  %s2716_s20 = sphi %s2812_s20, %s3463_s20   ;;  %s2712_s19 = sphi %s2810_s19, %s3462_s19   ;;  %s2708_s18 = sphi %s2808_s18, %s3468_s18   ;;  %s2704_s17 = sphi %s2806_s17, %s3467_s17  }
   0x8   : > { %3440 = sst [smem:[#allocation11_spill]] %s2712_s19  ;;  %s2166_s26 = sadd.s32 4294967294, %s2732_s24  }
   0x9   : > { %3441 = sst [smem:[#allocation12_spill]] %s2720_s21  ;;  %s34_s27 = sadd.s32 1, %s2724_s22 }
   0xa   : > { %3442 = sst [smem:[#allocation13_spill]] %s2724_s22  ;;  %p35_p0 = scmp.ge.s32.totalorder %s34_s27, 2 }
   0xb   : > { %3443 = sst [smem:[#allocation14_spill]] %s2728_s23  ;;  %s37_s28 = sadd.s32 1, %s2728_s23 }
   0xc   : > { %3444 = sst [smem:[#allocation15_spill]] %s2732_s24  ;;  %p311_p1 = scmp.ne.s32.totalorder %s2712_s19, %s2708_s18 }
   0xd   : > { %p312_p2 = scmp.eq.s32.totalorder %s2165_s25, 3  ;;  %s3470_s27 = smov (%p35_p0, %s34_s27), 0 }
   0xe   : > { %3445 = sst [smem:[#allocation16_spill]] %s3470_s27  ;;  %s3472_s28 = smov (!%p35_p0, %s37_s28), %s2728_s23 }
   0xf   : > { %s297_s29 = ssub.s32 %s2724_s22, %s3470_s27  ;;  %p2857_p3 = por %p312_p2, %p311_p1 }
  0x10   : > { %p39_p4 = scmp.ge.s32.totalorder %s3472_s28, 2  ;;  %p317_p5 = scmp.ne.s32.totalorder %s2708_s18, %s2704_s17 }
  0x11   : > { %s3446_s30 = scalar_select %p2857_p3, 1, 0 }
  0x12   : > { %p318_p6 = scmp.eq.s32.totalorder %s2166_s26, 3  ;;  %p2169_p7 = scmp.ge.s32.totalorder %s2732_s24, 1 }
  0x13   : > { %3447 = sst [smem:[#allocation17_spill]] %s3446_s30  ;;  %s3474_s28 = smov (%p39_p4, %s3472_s28), 0 }
  0x14   : > { %3448 = sst [smem:[#allocation18_spill]] %s3474_s28  ;;  %p2866_p8 = por %p318_p6, %p317_p5 }
  0x15   : > { %p386_p9 = scmp.lt.s32.totalorder %s2732_s24, 5  ;;  %s296_s13 = ssub.s32 %s2728_s23, %s3474_s28 }
  0x16   : > { %s3449_s12 = scalar_select %p2866_p8, 1, 0 }
  0x17   : > { %s301_s14 = sadd.s32 1, %s2712_s19  ;;  %s298_s15 = sor.u32 %s297_s29, %s296_s13 }
  0x18   : > { %3450 = sst [smem:[#allocation19_spill]] %s3449_s12  ;;  %p387_p10 = pnand %p2169_p7, %p386_p9 }
  0x19   : > { %p299_p11 = scmp.eq.s32.totalorder %s298_s15, 0 }
  0x1a   : > { %390 = sbr.rel (%p387_p10) target bundleno = 3013 (0xbc5), region = 60 }
  0x1b   : > { %s2875_s16 = scalar_select %p299_p11, %s2712_s19, %s301_s14  }
  0x1d   : > { %3451 = sst [smem:[#allocation20_spill]] %s2875_s16 }
  0x21   : > { %s3433_s25 = sand.u32 1, %s2708_s18   ;;  %s2879_s26 = sshll.u32 %s2716_s20, 2 }
  0x22   : > { %3452 = sst [smem:[#allocation21_spill]] %s2879_s26  ;;  %s2170_s27 = sshll.u32 %s3433_s25, 6 }
  0x23   : > { %p450_p12 = scmp.lt.s32.totalorder %s2720_s21, 1  ;;  %p452_p13 = scmp.lt.s32.totalorder %s2879_s26, 7 }
  0x24   : > { %p2181_p0 = scmp.ne.s32.totalorder %s2716_s20, 0 }
  0x25   : > { %s451_s29 = scalar_select %p450_p12, %s2720_s21, 1 }
  0x26   : > { %s453_s13 = scalar_select %p452_p13, %s2879_s26, 7 }
  0x27   : > { %s2172_s15 = sshll.u32 %s451_s29, 3  ;;  %s2263_s14 = sshll.u32 %s451_s29, 5  ;;  %v2590_v0 = vld [vmem:[%s3416_s4] sm:$0xff] (!%p2181_p0)   ;;  %v2592_v2 = vld [vmem:[%s3416_s4 + $0x8] sm:$0xff] (!%p2181_p0)   ;;  %vm537_vm0 = vcmask (!%p2181_p0), 261120  }
  0x28   : > { %s455_s28 = sadd.s32 %s2172_s15, %s453_s13  ;;  %s2890_s16 = scalar_lea.vmem %s3413_s1, %s2263_s14  ;;  %v2591_v1 = vld [vmem:[%s3417_s5] sm:$0xff] (!%p2181_p0)   ;;  %2349 = vmatprep.subr.bf16.mxu0 (!%p2181_p0), %v2590_v0  ;;  %v2593_v3 = vld [vmem:[%s3417_s5 + $0x8] sm:$0xff] (!%p2181_p0)  }
  0x29   : > { %s2173_s19 = sshll.u32 %s455_s28, 3  ;;  %s2895_s24 = scalar_lea.vmem %s3414_s2, %s2263_s14  ;;  %2361 = vmatprep.subr.bf16.mxu1 (!%p2181_p0), %v2591_v1  ;;  %2350 = vmatpush3.bf16.msra.mxu0 (!%p2181_p0), %v2590_v0  ;;  %v2594_v4 = vld [vmem:[%s2890_s16] sm:$0xff] (!%p2181_p0)   ;;  %v2596_v6 = vld [vmem:[%s2890_s16 + $0x8] sm:$0xff] (!%p2181_p0)   ;;  %v2598_v8 = vld [vmem:[%s2890_s16 + $0x10] sm:$0xff] (!%p2181_p0)  }
  0x2a   : > { %s2900_s30 = scalar_lea.vmem %s3412_s0, %s2173_s19  ;;  %s2905_s29 = scalar_lea.vmem %s3422_s10, %s2173_s19  ;;  %2362 = vmatpush3.bf16.msra.mxu1 (!%p2181_p0), %v2591_v1  ;;  %2351 = vmatprep.subr.bf16.mxu0 (!%p2181_p0), %v2592_v2  ;;  %v2595_v5 = vld [vmem:[%s2895_s24] sm:$0xff] (!%p2181_p0)   ;;  %v2597_v7 = vld [vmem:[%s2895_s24 + $0x8] sm:$0xff] (!%p2181_p0)   ;;  %v2599_v9 = vld [vmem:[%s2895_s24 + $0x10] sm:$0xff] (!%p2181_p0)  }
  0x2b   : > { %s2907_s13 = scalar_lea.vmem [#allocation5], %s2170_s27  ;;  %484 = sbr.rel (%p2181_p0) target bundleno = 275 (0x113), region = 64  ;;  %2363 = vmatprep.subr.bf16.mxu1 (!%p2181_p0), %v2593_v3  ;;  %2353 = vmatprep.mubr.msk.bf16.mxu0 (!%p2181_p0), %vm537_vm0, %v2594_v4  ;;  %v2600_v10 = vld [vmem:[%s2890_s16 + $0x18] sm:$0xff] (!%p2181_p0)  }
  0x2c   : > { %2365 = vmatprep.mubr.msk.bf16.mxu1 (!%p2181_p0), %vm537_vm0, %v2595_v5  ;;  %v2601_v11 = vld [vmem:[%s2895_s24 + $0x18] sm:$0xff] (!%p2181_p0)  }
  0x2d   : > { %2352 = vmatpush3.bf16.msra.mxu0 (!%p2181_p0), %v2592_v2 }
  0x2e   : > { %2364 = vmatpush3.bf16.msra.mxu1 (!%p2181_p0), %v2593_v3 }
  0x30   : > { %2354 = vmatmul.mubr.msk.bf16.vlgmr.msra.gmra.mrb[0].mxu0 (!%p2181_p0), %vm537_vm0, %v2596_v6 }
  0x31   : > { %2366 = vmatmul.mubr.msk.bf16.vlgmr.msra.gmra.mrb[0].mxu1 (!%p2181_p0), %vm537_vm0, %v2597_v7  ;;  %2357 = vmatprep.mubr.msk.bf16.mxu0 (!%p2181_p0), %vm537_vm0, %v2598_v8 }
  0x32   : > { %2369 = vmatprep.mubr.msk.bf16.mxu1 %vm537_vm0, %v2599_v9 }
  0x38   : > { %2358 = vmatmul.mubr.msk.bf16.gmra.mrb[4].mxu0 %vm537_vm0, %v2600_v10 }
  0x39   : > { %2370 = vmatmul.mubr.msk.bf16.gmra.mrb[4].mxu1 %vm537_vm0, %v2601_v11 }
 0x103   : > { %v2355_v12 = vpop.f32.mrb[0].mxu0 }
 0x104   : > { %v2367_v13 = vpop.f32.mrb[0].mxu1  ;;  %v584_v14 = vpop.f32.mrb[1].mxu0 }
 0x105   : > { %v705_v15 = vpop.f32.mrb[1].mxu1  ;;  %v2356_v16 = vpop.f32.mrb[2].mxu0 }
 0x106   : > { %v616_v17 = vpack.c.bf16 %v2356_v16, %v2355_v12  ;;  %v2368_v18 = vpop.f32.mrb[2].mxu1  ;;  %v587_v19 = vpop.f32.mrb[3].mxu0 }
 0x107   : > { %v737_v20 = vpack.c.bf16 %v2368_v18, %v2367_v13  ;;  %v615_v21 = vpack.c.bf16 %v587_v19, %v584_v14  ;;  %v708_v22 = vpop.f32.mrb[3].mxu1 }
 0x108   : > { %620 = vst.msk [vmem:[#allocation2 + $0x8] sm:$0xff] %vm537_vm0, %v616_v17  ;;  %v736_v23 = vpack.c.bf16 %v708_v22, %v705_v15 }
 0x109   : > { %741 = vst.msk [vmem:[#allocation3 + $0x8] sm:$0xff] %vm537_vm0, %v737_v20  ;;  %619 = vst.msk [vmem:[#allocation2] sm:$0xff] %vm537_vm0, %v615_v21 }
 0x10a   : > { %740 = vst.msk [vmem:[#allocation3] sm:$0xff] %vm537_vm0, %v736_v23 }
 0x10b   : > { %v2359_v24 = vpop.f32.mrb[4].mxu0 }
 0x10c   : > { %v2371_v25 = vpop.f32.mrb[4].mxu1  ;;  %v600_v26 = vpop.f32.mrb[5].mxu0 }
 0x10d   : > { %v721_v27 = vpop.f32.mrb[5].mxu1  ;;  %v2360_v28 = vpop.f32.mrb[6].mxu0 }
 0x10e   : > { %v618_v29 = vpack.c.bf16 %v2360_v28, %v2359_v24  ;;  %v2372_v30 = vpop.f32.mrb[6].mxu1  ;;  %v603_v31 = vpop.f32.mrb[7].mxu0 }
 0x10f   : > { %v739_v32 = vpack.c.bf16 %v2372_v30, %v2371_v25  ;;  %v617_v33 = vpack.c.bf16 %v603_v31, %v600_v26  ;;  %v724_v34 = vpop.f32.mrb[7].mxu1 }
 0x110   : > { %622 = vst.msk [vmem:[#allocation2 + $0x18] sm:$0xff] %vm537_vm0, %v618_v29  ;;  %v738_v35 = vpack.c.bf16 %v724_v34, %v721_v27 }
 0x111   : > { %743 = vst.msk [vmem:[#allocation3 + $0x18] sm:$0xff] %vm537_vm0, %v739_v32  ;;  %621 = vst.msk [vmem:[#allocation2 + $0x10] sm:$0xff] %vm537_vm0, %v617_v33 }
 0x112   : > { %742 = vst.msk [vmem:[#allocation3 + $0x10] sm:$0xff] %vm537_vm0, %v738_v35 }
 0x113 PF: > { %v744_v36 = vld [vmem:[%s2900_s30] sm:$0xff]  ;;  %vm748_vm1 = vcmask 261120   ;;  %v746_v37 = vld [vmem:[%s2900_s30 + $0x10] sm:$0xff]  ;;  %v745_v38 = vld [vmem:[%s2900_s30 + $0x8] sm:$0xff]  ;;  %vm907_vm2 = vcmask 64512   ;;  %vm975_vm3 = vcmask 523264  }
 0x114   : > { %v749_v39 = vsel %vm748_vm1, %v744_v36, 0.0  ;;  %v755_v40 = vsel %vm748_vm1, %v746_v37, 0.0  ;;  %v747_v41 = vld [vmem:[%s2900_s30 + $0x18] sm:$0xff]  ;;  %v752_v42 = vsel %vm748_vm1, %v745_v38, 0.0  ;;  %v2602_v0 = vld [vmem:[%s3415_s3] sm:$0xff]   ;;  %v2603_v1 = vld [vmem:[%s3415_s3 + $0x8] sm:$0xff]  }
 0x115   : > { %750 = vadd.xlane.f32.xlu0 %v749_v39  ;;  %756 = vadd.xlane.f32.xlu1 %v755_v40  ;;  %v758_v43 = vsel %vm748_vm1, %v747_v41, 0.0  ;;  %v2968_v2 = vld [vmem:[#allocation2] sm:$0xff]  ;;  %v2970_v3 = vld [vmem:[#allocation2 + $0x8] sm:$0xff]  ;;  %s2734_s22 = smov 120   ;;  %s2735_s23 = smov 112   ;;  %vm1044_vm4 = vcmask 519168  }
 0x116   : > { %2373 = vmatprep.subr.bf16.mxu0 %v2602_v0  ;;  %2485 = vmatprep.subr.msk.bf16.mxu1 %vm907_vm2, %v2968_v2  ;;  %v915_v4 = vsel %vm907_vm2, %v2968_v2, 0  ;;  %v918_v5 = vsel %vm907_vm2, %v2970_v3, 0  ;;  %v2202_v23 = vld [vmem:[%s3420_s8] ss:$0 sm:$0xff]  ;;  %s2736_s11 = smov 104   ;;  %s2737_s17 = smov 8  }
 0x117   : > { %2374 = vmatpush3.bf16.msra.mxu0 %v2602_v0  ;;  %2382 = vmatpush3.bf16.xpose.msra.mxu1 %v915_v4  ;;  %v2986_v8 = vld [vmem:[#allocation2 + $0x18] sm:$0xff]  ;;  %v2203_v29 = vld [vmem:[%s3421_s9] ss:$0 sm:$0xff]  ;;  %s2738_s19 = smov 16   ;;  %vm1363_vm5 = vcmask 130112   ;;  %vm1615_vm6 = vcmask 195712  }
 0x118   : > { %2375 = vmatprep.subr.bf16.mxu0 %v2603_v1  ;;  %2486 = vmatprep.subr.msk.bf16.mxu1 %vm907_vm2, %v2970_v3  ;;  %v2980_v6 = vld [vmem:[#allocation2 + $0x10] sm:$0xff]  ;;  %s2739_s28 = smov 24   ;;  %vm1867_vm7 = vcmask 261312   ;;  %s3453_s25 = sand.u32 1, %s2708_s18  }
 0x119   : > { %753 = vadd.xlane.f32.xlu0 %v752_v42  ;;  %759 = vadd.xlane.f32.xlu1 %v758_v43  ;;  %v921_v7 = vsel %vm907_vm2, %v2980_v6, 0  ;;  %s1968_s26 = scalar_lea.sflag [#allocation6], %s3453_s25 }
 0x11b   : > { %2376 = vmatpush3.bf16.msra.mxu0 %v2603_v1 }
 0x11f   : > { %2384 = vmatpush3.bf16.xpose.msra.mxu1 %v918_v5 }
 0x120   : > { %2487 = vmatprep.subr.msk.bf16.mxu1 %vm907_vm2, %v2980_v6 }
 0x127   : > { %2386 = vmatpush3.bf16.xpose.msra.mxu1 %v921_v7 }
 0x128   : > { %2488 = vmatprep.subr.msk.bf16.mxu1 %vm907_vm2, %v2986_v8 }
 0x1a2   : > { %v751_v44 = vpop.xlane.xlu0 %750  ;;  %v757_v45 = vpop.xlane.xlu1 %756 }
 0x1a3   : > { %v762_v46 = vmul.f32 0.03125, %v751_v44  ;;  %v764_v47 = vmul.f32 0.03125, %v757_v45 }
 0x1a5   : > { %v766_v48 = vsub.f32 %v744_v36, %v762_v46  ;;  %v2954_v49 = vsub.f32 %v746_v37, %v764_v47 }
 0x1a6   : > { %v754_v50 = vpop.xlane.xlu0 %753  ;;  %v760_v51 = vpop.xlane.xlu1 %759 }
 0x1a7   : > { %v763_v52 = vmul.f32 0.03125, %v754_v50  ;;  %v765_v53 = vmul.f32 0.03125, %v760_v51  ;;  %v770_v54 = vmul.f32 %v766_v48, %v766_v48  ;;  %v772_v55 = vmul.f32 %v2954_v49, %v2954_v49 }
 0x1a9   : > { %v767_v56 = vsub.f32 %v745_v38, %v763_v52  ;;  %v769_v57 = vsub.f32 %v747_v41, %v765_v53  ;;  %v774_v58 = vsel %vm748_vm1, %v770_v54, 0.0  ;;  %v780_v59 = vsel %vm748_vm1, %v772_v55, 0.0 }
 0x1aa   : > { %775 = vadd.xlane.f32.xlu0 %v774_v58  ;;  %v924_v41 = vsel %vm907_vm2, %v2986_v8, 0  ;;  %v3023_v58 = vld [vmem:[#allocation3 + $0x10] sm:$0xff] }
 0x1ab   : > { %v771_v60 = vmul.f32 %v767_v56, %v767_v56  ;;  %v773_v61 = vmul.f32 %v769_v57, %v769_v57  ;;  %2388 = vmatpush3.bf16.xpose.msra.mxu1 %v924_v41 }
 0x1ad   : > { %v777_v62 = vsel %vm748_vm1, %v771_v60, 0.0  ;;  %v783_v63 = vsel %vm748_vm1, %v773_v61, 0.0 }
 0x1ae   : > { %781 = vadd.xlane.f32.xlu0 %v780_v59  ;;  %778 = vadd.xlane.f32.xlu1 %v777_v62  ;;  %v3031_v59 = vld [vmem:[#allocation3 + $0x18] sm:$0xff] }
 0x1b2   : > { %784 = vadd.xlane.f32.xlu1 %v783_v63 }
 0x237   : > { %v776_v9 = vpop.xlane.xlu0 %775 }
 0x238   : > { %v786_v10 = vmul.f32 0.03125, %v776_v9 }
 0x23a   : > { %v790_v11 = vadd.f32 1e-06, %v786_v10 }
 0x23b   : > { %v779_v12 = vpop.xlane.xlu1 %778  ;;  %v782_v13 = vpop.xlane.xlu0 %781 }
 0x23c   : > { %2606 = vrsqrt.f32 %v790_v11  ;;  %v787_v14 = vmul.f32 0.03125, %v779_v12  ;;  %v788_v15 = vmul.f32 0.03125, %v782_v13 }
 0x23e   : > { %v791_v16 = vadd.f32 1e-06, %v787_v14  ;;  %v792_v17 = vadd.f32 1e-06, %v788_v15 }
 0x23f   : > { %v785_v18 = vpop.xlane.xlu1 %784 }
 0x240   : > { %2608 = vrsqrt.f32 %v791_v16  ;;  %v789_v19 = vmul.f32 0.03125, %v785_v18 }
 0x241   : > { %2610 = vrsqrt.f32 %v792_v17 }
 0x242   : > { %v793_v20 = vadd.f32 1e-06, %v789_v19 }
 0x244   : > { %2612 = vrsqrt.f32 %v793_v20 }
 0x246   : > { %v2607_v21 = vpop.eup %2606 }
 0x247   : > { %v798_v22 = vmul.f32 %v2607_v21, %v766_v48 }
 0x249   : > { %v809_v27 = vmul.f32 %v2202_v23, %v798_v22 }
 0x24a   : > { %v2609_v24 = vpop.eup %2608 }
 0x24b   : > { %v2611_v25 = vpop.eup %2610  ;;  %v799_v26 = vmul.f32 %v2609_v24, %v767_v56  ;;  %v820_v33 = vadd.f32 %v2203_v29, %v809_v27  ;;  %v3013_v56 = vld [vmem:[#allocation3] sm:$0xff] }
 0x24c   : > { %v800_v28 = vmul.f32 %v2611_v25, %v2954_v49  ;;  %2393 = vmatprep.subr.bf16.mxu0 %v3013_v56 }
 0x24d   : > { %v810_v30 = vmul.f32 %v2202_v23, %v799_v26 }
 0x24e   : > { %v2613_v31 = vpop.eup %2612  ;;  %v811_v35 = vmul.f32 %v2202_v23, %v800_v28 }
 0x24f   : > { %v801_v32 = vmul.f32 %v2613_v31, %v769_v57  ;;  %v821_v34 = vadd.f32 %v2203_v29, %v810_v30  ;;  %v3017_v57 = vld [vmem:[#allocation3 + $0x8] sm:$0xff] }
 0x250   : > { %v822_v38 = vadd.f32 %v2203_v29, %v811_v35 }
 0x251   : > { %v824_v36 = vpack.c.bf16 %v821_v34, %v820_v33  ;;  %v812_v37 = vmul.f32 %v2202_v23, %v801_v32 }
 0x253   : > { %2377 = vmatprep.mubr.msk.bf16.mxu0 %vm748_vm1, %v824_v36  ;;  %v823_v39 = vadd.f32 %v2203_v29, %v812_v37 }
 0x255   : > { %v825_v40 = vpack.c.bf16 %v823_v39, %v822_v38 }
 0x257   : > { %2378 = vmatmul.mubr.msk.bf16.vlgmr.msra.gmra.mrb[0].mxu0 %vm748_vm1, %v825_v40 }
 0x258   : > { %2394 = vmatpush3.bf16.msra.mxu0 %v3013_v56 }
 0x259   : > { %2395 = vmatprep.subr.bf16.mxu0 %v3017_v57 }
 0x25c   : > { %2396 = vmatpush3.bf16.msra.mxu0 %v3017_v57 }
 0x25d   : > { %2397 = vmatprep.subr.bf16.mxu0 %v3023_v58 }
 0x260   : > { %2398 = vmatpush3.bf16.msra.mxu0 %v3023_v58 }
 0x261   : > { %2399 = vmatprep.subr.bf16.mxu0 %v3031_v59 }
 0x264   : > { %2400 = vmatpush3.bf16.msra.mxu0 %v3031_v59 }
 0x32a   : > { %v2379_v42 = vpop.f32.mrb[0].mxu0 }
 0x32b   : > { %v882_v43 = vpop.f32.mrb[1].mxu0 }
 0x32c   : > { %v2380_v44 = vpop.f32.mrb[2].mxu0 }
 0x32d   : > { %v3001_v45 = vpack.c.bf16 %v2380_v44, %v2379_v42  ;;  %v885_v46 = vpop.f32.mrb[3].mxu0 }
 0x32e   : > { %v3003_v47 = vpack.c.bf16 %v885_v46, %v882_v43 }
 0x330   : > { %2389 = vmatprep.mubr.msk.bf16.mxu1 %vm907_vm2, %v3003_v47 }
 0x331   : > { %2390 = vmatmul.mubr.msk.bf16.vlgmr.msra.gmra.mrb[0].mxu1 %vm907_vm2, %v3001_v45 }
 0x404   : > { %v2391_v48 = vpop.f32.mrb[0].mxu1 }
 0x405   : > { %v960_v49 = vpop.f32.mrb[1].mxu1  ;;  %v982_v54 = vsel %vm975_vm3, %v2391_v48, -inf }
 0x406   : > { %v2392_v50 = vpop.f32.mrb[2].mxu1  ;;  %v976_v51 = vsel %vm975_vm3, %v960_v49, -inf }
 0x407   : > { %977 = vmax.xlane.f32.xlu0 %v976_v51  ;;  %v963_v52 = vpop.f32.mrb[3].mxu1  ;;  %v985_v55 = vsel %vm975_vm3, %v2392_v50, -inf }
 0x408   : > { %v979_v53 = vsel %vm975_vm3, %v963_v52, -inf }
 0x409   : > { %980 = vmax.xlane.f32.xlu1 %v979_v53 }
 0x40b   : > { %983 = vmax.xlane.f32.xlu0 %v982_v54 }
 0x40d   : > { %986 = vmax.xlane.f32.xlu1 %v985_v55 }
 0x41e   : > { %1132 = vrot.lane.b32.xlu1 %v2970_v3, %s2734_s22 }
 0x421   : > { %1130 = vrot.lane.b32.xlu0 %v2968_v2, %s2734_s22 }
 0x422   : > { %1134 = vrot.lane.b32.xlu1 %v2980_v6, %s2734_s22 }
 0x425   : > { %1122 = vrot.lane.b32.xlu0 %v3003_v47, %s2734_s22 }
 0x426   : > { %1136 = vrot.lane.b32.xlu1 %v2986_v8, %s2734_s22 }
 0x429   : > { %1282 = vrot.lane.b32.xlu0 %v3013_v56, %s2734_s22 }
 0x42a   : > { %1124 = vrot.lane.b32.xlu1 %v3001_v45, %s2734_s22 }
 0x42e   : > { %1284 = vrot.lane.b32.xlu1 %v3017_v57, %s2734_s22 }
 0x432   : > { %1286 = vrot.lane.b32.xlu1 %v3023_v58, %s2734_s22 }
 0x494   : > { %v978_v60 = vpop.xlane.xlu0 %977 }
 0x495   : > { %v988_v62 = vsub.f32 %v960_v49, %v978_v60 }
 0x496   : > { %v981_v61 = vpop.xlane.xlu1 %980 }
 0x497   : > { %v989_v63 = vsub.f32 %v963_v52, %v981_v61 }
 0x498   : > { %v984_v0 = vpop.xlane.xlu0 %983 }
 0x499   : > { %v992_v1 = vpack.c.bf16 %v989_v63, %v988_v62  ;;  %v990_v7 = vsub.f32 %v2391_v48, %v984_v0 }
 0x49a   : > { %v987_v4 = vpop.xlane.xlu1 %986 }
 0x49b   : > { %v995_v5 = vmul.bf16 1069105081, %v992_v1  ;;  %v991_v9 = vsub.f32 %v2392_v50, %v987_v4 }
 0x49c   : > { %v1131_v10 = vpop.permute.xlu0 %1130 }
 0x49d   : > { %2614 = vpow.bf16 %v995_v5  ;;  %v993_v11 = vpack.c.bf16 %v991_v9, %v990_v7  ;;  %2489 = vmatprep.subr.msk.bf16.mxu0 %vm907_vm2, %v1131_v10  ;;  %v1145_v14 = vsel %vm907_vm2, %v1131_v10, 0 }
 0x49e   : > { %v1133_v17 = vpop.permute.xlu1 %1132 }
 0x49f   : > { %v998_v12 = vmul.bf16 1069105081, %v993_v11  ;;  %v1148_v18 = vsel %vm907_vm2, %v1133_v17, 0 }
 0x4a0   : > { %v1123_v16 = vpop.permute.xlu0 %1122 }
 0x4a1   : > { %2616 = vpow.bf16 %v998_v12 }
 0x4a2   : > { %v1135_v19 = vpop.permute.xlu1 %1134 }
 0x4a3   : > { %v1151_v20 = vsel %vm907_vm2, %v1135_v19, 0 }
 0x4a4   : > { %v1283_v24 = vpop.permute.xlu0 %1282 }
 0x4a5   : > { %2417 = vmatprep.subr.bf16.mxu1 %v1283_v24 }
 0x4a6   : > { %v1137_v21 = vpop.permute.xlu1 %1136  ;;  %2418 = vmatpush3.bf16.msra.mxu1 %v1283_v24 }
 0x4a7   : > { %v1154_v22 = vsel %vm907_vm2, %v1137_v21, 0 }
 0x4a8   : > { %v3048_v13 = vpop.eup %2614 }
 0x4a9   : > { %2401 = vmatprep.mubr.msk.bf16.mxu0 %vm975_vm3, %v3048_v13 }
 0x4aa   : > { %v1125_v23 = vpop.permute.xlu1 %1124 }
 0x4ac   : > { %v3053_v15 = vpop.eup %2616 }
 0x4ad   : > { %2402 = vmatmul.mubr.msk.bf16.vlgmr.msra.gmra.mrb[4].mxu0 %vm975_vm3, %v3053_v15 }
 0x4ae   : > { %2406 = vmatpush3.bf16.xpose.msra.mxu0 %v1145_v14  ;;  %2413 = vmatprep.mubr.msk.bf16.mxu0 %vm907_vm2, %v1123_v16  ;;  %v1285_v25 = vpop.permute.xlu1 %1284 }
 0x4af   : > { %2490 = vmatprep.subr.msk.bf16.mxu0 %vm907_vm2, %v1133_v17  ;;  %2419 = vmatprep.subr.bf16.mxu1 %v1285_v25 }
 0x4b0   : > { %2420 = vmatpush3.bf16.msra.mxu1 %v1285_v25 }
 0x4b2   : > { %v1287_v26 = vpop.permute.xlu1 %1286 }
 0x4b3   : > { %2421 = vmatprep.subr.bf16.mxu1 %v1287_v26 }
 0x4b4   : > { %2422 = vmatpush3.bf16.msra.mxu1 %v1287_v26 }
 0x4b6   : > { %2408 = vmatpush3.bf16.xpose.msra.mxu0 %v1148_v18 }
 0x4b7   : > { %2491 = vmatprep.subr.msk.bf16.mxu0 %vm907_vm2, %v1135_v19 }
 0x4be   : > { %2410 = vmatpush3.bf16.xpose.msra.mxu0 %v1151_v20 }
 0x4bf   : > { %2492 = vmatprep.subr.msk.bf16.mxu0 %vm907_vm2, %v1137_v21 }
 0x4c6   : > { %2412 = vmatpush3.bf16.xpose.msra.mxu0 %v1154_v22 }
 0x4cd   : > { %2414 = vmatmul.mubr.msk.bf16.vlgmr.msra.gmra.mrb[8].mxu0 %vm907_vm2, %v1125_v23 }
 0x580   : > { %v3065_v27 = vpop.f32.mrb[4].mxu0 }
 0x581   : > { %v3067_v28 = vpop.f32.mrb[5].mxu0 }
 0x582   : > { %v3069_v29 = vpop.f32.mrb[6].mxu0 }
 0x583   : > { %v3071_v30 = vpop.f32.mrb[7].mxu0 }
 0x5a0   : > { %v2415_v31 = vpop.f32.mrb[8].mxu0 }
 0x5a1   : > { %v1190_v32 = vpop.f32.mrb[9].mxu0  ;;  %v1211_v33 = vsel %vm975_vm3, %v2415_v31, -inf }
 0x5a2   : > { %1212 = vmax.xlane.f32.xlu0 %v1211_v33  ;;  %v2416_v34 = vpop.f32.mrb[10].mxu0  ;;  %v1205_v37 = vsel %vm975_vm3, %v1190_v32, -inf }
 0x5a3   : > { %v1193_v35 = vpop.f32.mrb[11].mxu0  ;;  %v1214_v38 = vsel %vm975_vm3, %v2416_v34, -inf }
 0x5a4   : > { %v1208_v36 = vsel %vm975_vm3, %v1193_v35, -inf }
 0x5a5   : > { %1209 = vmax.xlane.f32.xlu1 %v1208_v36 }
 0x5a6   : > { %1206 = vmax.xlane.f32.xlu0 %v1205_v37 }
 0x5aa   : > { %1215 = vmax.xlane.f32.xlu0 %v1214_v38 }
 0x5b6   : > { %1288 = vrot.lane.b32.xlu1 %v3031_v59, %s2734_s22 }
 0x5ba   : > { %1384 = vrot.lane.b32.xlu1 %v2970_v3, %s2735_s23 }
 0x5be   : > { %1388 = vrot.lane.b32.xlu1 %v2986_v8, %s2735_s23 }
 0x5c0   : > { %1382 = vrot.lane.b32.xlu0 %v2968_v2, %s2735_s23 }
 0x5c2   : > { %1376 = vrot.lane.b32.xlu1 %v3001_v45, %s2735_s23 }
 0x5c4   : > { %1386 = vrot.lane.b32.xlu0 %v2980_v6, %s2735_s23 }
 0x5c6   : > { %1536 = vrot.lane.b32.xlu1 %v3017_v57, %s2735_s23 }
 0x5c8   : > { %1374 = vrot.lane.b32.xlu0 %v3003_v47, %s2735_s23 }
 0x5ca   : > { %1538 = vrot.lane.b32.xlu1 %v3023_v58, %s2735_s23 }
 0x5cc   : > { %1534 = vrot.lane.b32.xlu0 %v3013_v56, %s2735_s23 }
 0x62f   : > { %v1213_v39 = vpop.xlane.xlu0 %1212 }
 0x630   : > { %v1219_v49 = vsub.f32 %v2415_v31, %v1213_v39 }
 0x632   : > { %v1210_v40 = vpop.xlane.xlu1 %1209 }
 0x633   : > { %v1218_v41 = vsub.f32 %v1193_v35, %v1210_v40  ;;  %v1207_v42 = vpop.xlane.xlu0 %1206 }
 0x634   : > { %v1217_v43 = vsub.f32 %v1190_v32, %v1207_v42 }
 0x636   : > { %v1221_v44 = vpack.c.bf16 %v1218_v41, %v1217_v43  ;;  %v1289_v46 = vpop.permute.xlu1 %1288 }
 0x637   : > { %v1216_v48 = vpop.xlane.xlu0 %1215  ;;  %2423 = vmatprep.subr.bf16.mxu1 %v1289_v46 }
 0x638   : > { %v1224_v50 = vmul.bf16 1069105081, %v1221_v44  ;;  %v1220_v51 = vsub.f32 %v2416_v34, %v1216_v48  ;;  %2424 = vmatpush3.bf16.msra.mxu1 %v1289_v46 }
 0x63a   : > { %2618 = vpow.bf16 %v1224_v50  ;;  %v1222_v52 = vpack.c.bf16 %v1220_v51, %v1219_v49  ;;  %v1385_v0 = vpop.permute.xlu1 %1384 }
 0x63b   : > { %v1383_v53 = vpop.permute.xlu0 %1382  ;;  %v1400_v1 = vsel %vm907_vm2, %v1385_v0, 0 }
 0x63c   : > { %v1227_v54 = vmul.bf16 1069105081, %v1222_v52  ;;  %2493 = vmatprep.subr.msk.bf16.mxu1 %vm907_vm2, %v1383_v53  ;;  %v1397_v61 = vsel %vm907_vm2, %v1383_v53, 0 }
 0x63e   : > { %2620 = vpow.bf16 %v1227_v54  ;;  %v1389_v5 = vpop.permute.xlu1 %1388 }
 0x63f   : > { %v1387_v55 = vpop.permute.xlu0 %1386  ;;  %v1406_v7 = vsel %vm907_vm2, %v1389_v5, 0 }
 0x640   : > { %v1403_v4 = vsel %vm907_vm2, %v1387_v55, 0 }
 0x642   : > { %v1377_v9 = vpop.permute.xlu1 %1376 }
 0x643   : > { %v1375_v63 = vpop.permute.xlu0 %1374 }
 0x645   : > { %v3098_v60 = vpop.eup %2618 }
 0x646   : > { %2425 = vmatprep.mubr.msk.bf16.mxu1 %vm975_vm3, %v3098_v60  ;;  %v1537_v11 = vpop.permute.xlu1 %1536 }
 0x647   : > { %v1535_v10 = vpop.permute.xlu0 %1534 }
 0x648   : > { %2441 = vmatprep.subr.bf16.mxu0 %v1535_v10 }
 0x649   : > { %v3103_v62 = vpop.eup %2620  ;;  %2442 = vmatpush3.bf16.msra.mxu0 %v1535_v10 }
 0x64a   : > { %2426 = vmatmul.mubr.msk.bf16.vlgmr.msra.gmra.mrb[4].mxu1 %vm975_vm3, %v3103_v62  ;;  %2443 = vmatprep.subr.bf16.mxu0 %v1537_v11  ;;  %v1539_v12 = vpop.permute.xlu1 %1538 }
 0x64b   : > { %2430 = vmatpush3.bf16.xpose.msra.mxu1 %v1397_v61  ;;  %2437 = vmatprep.mubr.msk.bf16.mxu1 %vm907_vm2, %v1375_v63 }
 0x64c   : > { %2494 = vmatprep.subr.msk.bf16.mxu1 %vm907_vm2, %v1385_v0 }
 0x64d   : > { %2444 = vmatpush3.bf16.msra.mxu0 %v1537_v11  ;;  %v1229_v11 = vunpack.c.l.bf16 %v3098_v60 }
 0x64e   : > { %2445 = vmatprep.subr.bf16.mxu0 %v1539_v12 }
 0x651   : > { %2446 = vmatpush3.bf16.msra.mxu0 %v1539_v12 }
 0x653   : > { %2432 = vmatpush3.bf16.xpose.msra.mxu1 %v1400_v1 }
 0x654   : > { %2495 = vmatprep.subr.msk.bf16.mxu1 %vm907_vm2, %v1387_v55 }
 0x65b   : > { %2434 = vmatpush3.bf16.xpose.msra.mxu1 %v1403_v4 }
 0x65c   : > { %2496 = vmatprep.subr.msk.bf16.mxu1 %vm907_vm2, %v1389_v5 }
 0x663   : > { %2436 = vmatpush3.bf16.xpose.msra.mxu1 %v1406_v7  ;;  %v1230_v7 = vunpack.c.h.bf16 %v3098_v60 }
 0x66a   : > { %2438 = vmatmul.mubr.msk.bf16.vlgmr.msra.gmra.mrb[8].mxu1 %vm907_vm2, %v1377_v9  ;;  %v1236_v9 = vsel %vm975_vm3, %v1230_v7, 0.0 }
 0x71d   : > { %v3115_v14 = vpop.f32.mrb[4].mxu1 }
 0x71e   : > { %v3117_v16 = vpop.f32.mrb[5].mxu1 }
 0x71f   : > { %v3119_v17 = vpop.f32.mrb[6].mxu1 }
 0x720   : > { %v3121_v18 = vpop.f32.mrb[7].mxu1 }
 0x73d   : > { %v2439_v19 = vpop.f32.mrb[8].mxu1 }
 0x73e   : > { %v1442_v20 = vpop.f32.mrb[9].mxu1  ;;  %v1463_v21 = vsel %vm975_vm3, %v2439_v19, -inf }
 0x73f   : > { %1464 = vmax.xlane.f32.xlu0 %v1463_v21  ;;  %v2440_v22 = vpop.f32.mrb[10].mxu1  ;;  %v1457_v25 = vsel %vm975_vm3, %v1442_v20, -inf }
 0x740   : > { %v1445_v23 = vpop.f32.mrb[11].mxu1  ;;  %v1466_v26 = vsel %vm975_vm3, %v2440_v22, -inf }
 0x741   : > { %v1460_v24 = vsel %vm975_vm3, %v1445_v23, -inf }
 0x742   : > { %1461 = vmax.xlane.f32.xlu1 %v1460_v24 }
 0x743   : > { %1458 = vmax.xlane.f32.xlu0 %v1457_v25 }
 0x747   : > { %1467 = vmax.xlane.f32.xlu0 %v1466_v26 }
 0x753   : > { %1540 = vrot.lane.b32.xlu1 %v3031_v59, %s2735_s23 }
 0x757   : > { %1636 = vrot.lane.b32.xlu1 %v2970_v3, %s2736_s11 }
 0x75b   : > { %1640 = vrot.lane.b32.xlu1 %v2986_v8, %s2736_s11 }
 0x75d   : > { %1634 = vrot.lane.b32.xlu0 %v2968_v2, %s2736_s11 }
 0x75f   : > { %1628 = vrot.lane.b32.xlu1 %v3001_v45, %s2736_s11 }
 0x761   : > { %1638 = vrot.lane.b32.xlu0 %v2980_v6, %s2736_s11 }
 0x763   : > { %1788 = vrot.lane.b32.xlu1 %v3017_v57, %s2736_s11 }
 0x765   : > { %1626 = vrot.lane.b32.xlu0 %v3003_v47, %s2736_s11 }
 0x767   : > { %1790 = vrot.lane.b32.xlu1 %v3023_v58, %s2736_s11 }
 0x7cc   : > { %v1465_v3 = vpop.xlane.xlu0 %1464 }
 0x7cd   : > { %v1471_v35 = vsub.f32 %v2439_v19, %v1465_v3  ;;  %v1231_v19 = vunpack.c.l.bf16 %v3103_v62 }
 0x7cf   : > { %v1462_v8 = vpop.xlane.xlu1 %1461  ;;  %v1239_v21 = vsel %vm975_vm3, %v1231_v19, 0.0 }
 0x7d0   : > { %v1470_v31 = vsub.f32 %v1445_v23, %v1462_v8  ;;  %v1459_v32 = vpop.xlane.xlu0 %1458 }
 0x7d1   : > { %v1469_v2 = vsub.f32 %v1442_v20, %v1459_v32 }
 0x7d3   : > { %v1473_v33 = vpack.c.bf16 %v1470_v31, %v1469_v2  ;;  %v1541_v34 = vpop.permute.xlu1 %1540 }
 0x7d4   : > { %v1468_v45 = vpop.xlane.xlu0 %1467  ;;  %2447 = vmatprep.subr.bf16.mxu0 %v1541_v34 }
 0x7d5   : > { %v1476_v6 = vmul.bf16 1069105081, %v1473_v33  ;;  %v1472_v36 = vsub.f32 %v2440_v22, %v1468_v45  ;;  %2448 = vmatpush3.bf16.msra.mxu0 %v1541_v34  ;;  %v1232_v22 = vunpack.c.h.bf16 %v3103_v62 }
 0x7d7   : > { %2622 = vpow.bf16 %v1476_v6  ;;  %v1474_v57 = vpack.c.bf16 %v1472_v36, %v1471_v35  ;;  %v1637_v42 = vpop.permute.xlu1 %1636  ;;  %v1242_v23 = vsel %vm975_vm3, %v1232_v22, 0.0 }
 0x7d8   : > { %v1635_v37 = vpop.permute.xlu0 %1634  ;;  %v1652_v43 = vsel %vm907_vm2, %v1637_v42, 0 }
 0x7d9   : > { %v1479_v47 = vmul.bf16 1069105081, %v1474_v57  ;;  %2497 = vmatprep.subr.msk.bf16.mxu0 %vm907_vm2, %v1635_v37  ;;  %v1649_v39 = vsel %vm907_vm2, %v1635_v37, 0 }
 0x7db   : > { %2624 = vpow.bf16 %v1479_v47  ;;  %v1641_v46 = vpop.permute.xlu1 %1640 }
 0x7dc   : > { %v1639_v58 = vpop.permute.xlu0 %1638  ;;  %v1658_v48 = vsel %vm907_vm2, %v1641_v46, 0 }
 0x7dd   : > { %v1655_v44 = vsel %vm907_vm2, %v1639_v58, 0 }
 0x7df   : > { %v1629_v49 = vpop.permute.xlu1 %1628 }
 0x7e0   : > { %v1627_v41 = vpop.permute.xlu0 %1626 }
 0x7e2   : > { %v3146_v38 = vpop.eup %2622 }
 0x7e3   : > { %2449 = vmatprep.mubr.msk.bf16.mxu0 %vm975_vm3, %v3146_v38  ;;  %v1482_v10 = vunpack.c.h.bf16 %v3146_v38  ;;  %v1481_v24 = vunpack.c.l.bf16 %v3146_v38  ;;  %v1789_v8 = vpop.permute.xlu1 %1788 }
 0x7e5   : > { %v1488_v12 = vsel %vm975_vm3, %v1482_v10, 0.0  ;;  %v1485_v25 = vsel %vm975_vm3, %v1481_v24, 0.0 }
 0x7e6   : > { %v3151_v40 = vpop.eup %2624 }
 0x7e7   : > { %2450 = vmatmul.mubr.msk.bf16.vlgmr.msra.gmra.mrb[12].mxu0 %vm975_vm3, %v3151_v40  ;;  %v1483_v26 = vunpack.c.l.bf16 %v3151_v40  ;;  %v1791_v31 = vpop.permute.xlu1 %1790 }
 0x7e8   : > { %2454 = vmatpush3.bf16.xpose.msra.mxu0 %v1649_v39  ;;  %2461 = vmatprep.mubr.msk.bf16.mxu0 %vm907_vm2, %v1627_v41 }
 0x7e9   : > { %2498 = vmatprep.subr.msk.bf16.mxu0 %vm907_vm2, %v1637_v42  ;;  %v1491_v3 = vsel %vm975_vm3, %v1483_v26, 0.0 }
 0x7f0   : > { %2456 = vmatpush3.bf16.xpose.msra.mxu0 %v1652_v43 }
 0x7f1   : > { %2499 = vmatprep.subr.msk.bf16.mxu0 %vm907_vm2, %v1639_v58 }
 0x7f8   : > { %2458 = vmatpush3.bf16.xpose.msra.mxu0 %v1655_v44 }
 0x7f9   : > { %2500 = vmatprep.subr.msk.bf16.mxu0 %vm907_vm2, %v1641_v46 }
 0x800   : > { %2460 = vmatpush3.bf16.xpose.msra.mxu0 %v1658_v48 }
 0x807   : > { %2462 = vmatmul.mubr.msk.bf16.vlgmr.msra.gmra.mrb[16].mxu0 %vm907_vm2, %v1629_v49 }
 0x8ba   : > { %v3163_v50 = vpop.f32.mrb[12].mxu0 }
 0x8bb   : > { %v3165_v51 = vpop.f32.mrb[13].mxu0 }
 0x8bc   : > { %v3167_v52 = vpop.f32.mrb[14].mxu0 }
 0x8bd   : > { %v3169_v53 = vpop.f32.mrb[15].mxu0 }
 0x8da   : > { %v2463_v54 = vpop.f32.mrb[16].mxu0 }
 0x8db   : > { %v1694_v55 = vpop.f32.mrb[17].mxu0  ;;  %v1715_v61 = vsel %vm975_vm3, %v2463_v54, -inf }
 0x8dc   : > { %1716 = vmax.xlane.f32.xlu0 %v1715_v61  ;;  %v2464_v63 = vpop.f32.mrb[18].mxu0  ;;  %v1709_v4 = vsel %vm975_vm3, %v1694_v55, -inf }
 0x8dd   : > { %v1697_v0 = vpop.f32.mrb[19].mxu0  ;;  %v1718_v5 = vsel %vm975_vm3, %v2464_v63, -inf }
 0x8de   : > { %v1712_v1 = vsel %vm975_vm3, %v1697_v0, -inf }
 0x8df   : > { %1713 = vmax.xlane.f32.xlu1 %v1712_v1  ;;  %v1000_v1 = vunpack.c.l.bf16 %v3048_v13 }
 0x8e0   : > { %1710 = vmax.xlane.f32.xlu0 %v1709_v4 }
 0x8e4   : > { %1719 = vmax.xlane.f32.xlu0 %v1718_v5  ;;  %v1003_v5 = vunpack.c.h.bf16 %v3053_v15 }
 0x8f0   : > { %1792 = vrot.lane.b32.xlu1 %v3031_v59, %s2736_s11  ;;  %v1484_v59 = vunpack.c.h.bf16 %v3151_v40 }
 0x8f2   : > { %v1494_v20 = vsel %vm975_vm3, %v1484_v59, 0.0 }
 0x8fa   : > { %1786 = vrot.lane.b32.xlu0 %v3013_v56, %s2736_s11  ;;  %v1233_v56 = vsel %vm975_vm3, %v1229_v11, 0.0 }
 0x914   : > { %1237 = vadd.xlane.f32.xlu1 %v1236_v9  ;;  %v1004_v9 = vsel %vm975_vm3, %v1000_v1, 0.0 }
 0x918   : > { %1489 = vadd.xlane.f32.xlu1 %v1488_v12  ;;  %v1002_v12 = vunpack.c.l.bf16 %v3053_v15 }
 0x919   : > { %1234 = vadd.xlane.f32.xlu0 %v1233_v56  ;;  %v1013_v56 = vsel %vm975_vm3, %v1003_v5, 0.0 }
 0x91c   : > { %1495 = vadd.xlane.f32.xlu1 %v1494_v20  ;;  %v1010_v20 = vsel %vm975_vm3, %v1002_v12, 0.0 }
 0x91d   : > { %1240 = vadd.xlane.f32.xlu0 %v1239_v21 }
 0x921   : > { %1243 = vadd.xlane.f32.xlu0 %v1242_v23 }
 0x925   : > { %1486 = vadd.xlane.f32.xlu0 %v1485_v25 }
 0x929   : > { %1492 = vadd.xlane.f32.xlu0 %v1491_v3 }
 0x969   : > { %v1717_v32 = vpop.xlane.xlu0 %1716 }
 0x96a   : > { %v1723_v36 = vsub.f32 %v2463_v54, %v1717_v32 }
 0x96c   : > { %v1714_v2 = vpop.xlane.xlu1 %1713 }
 0x96d   : > { %v1722_v33 = vsub.f32 %v1697_v0, %v1714_v2  ;;  %v1711_v34 = vpop.xlane.xlu0 %1710  ;;  %v1001_v0 = vunpack.c.h.bf16 %v3048_v13 }
 0x96e   : > { %v1721_v45 = vsub.f32 %v1694_v55, %v1711_v34 }
 0x96f   : > { %v1007_v4 = vsel %vm975_vm3, %v1001_v0, 0.0 }
 0x970   : > { %v1725_v35 = vpack.c.bf16 %v1722_v33, %v1721_v45  ;;  %v1793_v41 = vpop.permute.xlu1 %1792 }
 0x971   : > { %v1720_v6 = vpop.xlane.xlu0 %1719 }
 0x972   : > { %v1728_v57 = vmul.bf16 1069105081, %v1725_v35  ;;  %v1724_v37 = vsub.f32 %v2464_v63, %v1720_v6 }
 0x974   : > { %2626 = vpow.bf16 %v1728_v57  ;;  %v1726_v47 = vpack.c.bf16 %v1724_v37, %v1723_v36 }
 0x975   : > { %v1787_v58 = vpop.permute.xlu0 %1786 }
 0x976   : > { %v1731_v39 = vmul.bf16 1069105081, %v1726_v47  ;;  %2465 = vmatprep.subr.bf16.mxu1 %v1787_v58 }
 0x977   : > { %2466 = vmatpush3.bf16.msra.mxu1 %v1787_v58 }
 0x978   : > { %2628 = vpow.bf16 %v1731_v39  ;;  %2467 = vmatprep.subr.bf16.mxu1 %v1789_v8 }
 0x97b   : > { %2468 = vmatpush3.bf16.msra.mxu1 %v1789_v8 }
 0x97c   : > { %2469 = vmatprep.subr.bf16.mxu1 %v1791_v31 }
 0x97f   : > { %v3211_v42 = vpop.eup %2626  ;;  %2470 = vmatpush3.bf16.msra.mxu1 %v1791_v31 }
 0x980   : > { %2473 = vmatprep.mubr.msk.bf16.mxu1 %vm975_vm3, %v3211_v42  ;;  %2471 = vmatprep.subr.bf16.mxu1 %v1793_v41  ;;  %v1734_v43 = vunpack.c.h.bf16 %v3211_v42  ;;  %v1733_v44 = vunpack.c.l.bf16 %v3211_v42 }
 0x982   : > { %v1740_v46 = vsel %vm975_vm3, %v1734_v43, 0.0  ;;  %v1737_v48 = vsel %vm975_vm3, %v1733_v44, 0.0 }
 0x983   : > { %v3223_v49 = vpop.eup %2628  ;;  %1741 = vadd.xlane.f32.xlu1 %v1740_v46  ;;  %1738 = vadd.xlane.f32.xlu0 %v1737_v48 }
 0x984   : > { %2472 = vmatpush3.bf16.msra.mxu1 %v1793_v41  ;;  %v1736_v54 = vunpack.c.h.bf16 %v3223_v49  ;;  %v1735_v55 = vunpack.c.l.bf16 %v3223_v49 }
 0x986   : > { %v1746_v61 = vsel %vm975_vm3, %v1736_v54, 0.0  ;;  %v1743_v63 = vsel %vm975_vm3, %v1735_v55, 0.0 }
 0x987   : > { %2474 = vmatmul.mubr.msk.bf16.vlgmr.msra.gmra.mrb[12].mxu1 %vm975_vm3, %v3223_v49  ;;  %1747 = vadd.xlane.f32.xlu1 %v1746_v61 }
 0x988   : > { %1744 = vadd.xlane.f32.xlu0 %v1743_v63 }
 0x98b   : > { %1008 = vadd.xlane.f32.xlu1 %v1007_v4 }
 0x98c   : > { %1005 = vadd.xlane.f32.xlu0 %v1004_v9 }
 0x98f   : > { %1014 = vadd.xlane.f32.xlu1 %v1013_v56 }
 0x990   : > { %1011 = vadd.xlane.f32.xlu0 %v1010_v20 }
 0x9a1   : > { %v1238_v21 = vpop.xlane.xlu1 %1237 }
 0x9a2   : > { %2630 = vrcp.f32 %v1238_v21 }
 0x9a5   : > { %v1490_v23 = vpop.xlane.xlu1 %1489 }
 0x9a6   : > { %2632 = vrcp.f32 %v1490_v23  ;;  %v1235_v25 = vpop.xlane.xlu0 %1234 }
 0x9a7   : > { %2634 = vrcp.f32 %v1235_v25 }
 0x9a9   : > { %v1496_v3 = vpop.xlane.xlu1 %1495 }
 0x9aa   : > { %2636 = vrcp.f32 %v1496_v3  ;;  %v1241_v8 = vpop.xlane.xlu0 %1240 }
 0x9ab   : > { %2638 = vrcp.f32 %v1241_v8 }
 0x9ac   : > { %v2631_v31 = vpop.eup %2630 }
 0x9ad   : > { %v1254_v32 = vmul.f32 %v2631_v31, %v1230_v7  ;;  %v1350_v7 = vmul.f32 %v2631_v31, %v3121_v18 }
 0x9ae   : > { %v1244_v2 = vpop.xlane.xlu0 %1243 }
 0x9af   : > { %v2270_v33 = vpack.c.bf16 %v1254_v32, %v1254_v32  ;;  %2640 = vrcp.f32 %v1244_v2 }
 0x9b0   : > { %v2633_v34 = vpop.eup %2632 }
 0x9b1   : > { %v2635_v45 = vpop.eup %2634  ;;  %2223 = vst.msk [vmem:[%s2907_s13 + $0x14] sm:$0xf] %vm1044_vm4, %v2270_v33  ;;  %v1506_v35 = vmul.f32 %v2633_v34, %v1482_v10  ;;  %v1602_v20 = vmul.f32 %v2633_v34, %v3169_v53 }
 0x9b2   : > { %v1253_v6 = vmul.f32 %v2635_v45, %v1229_v11  ;;  %v1487_v36 = vpop.xlane.xlu0 %1486  ;;  %v1349_v57 = vmul.f32 %v2635_v45, %v3117_v16 }
 0x9b3   : > { %v2274_v37 = vpack.c.bf16 %v1506_v35, %v1506_v35  ;;  %2642 = vrcp.f32 %v1487_v36 }
 0x9b4   : > { %v2637_v47 = vpop.eup %2636  ;;  %v2269_v58 = vpack.c.bf16 %v1253_v6, %v1253_v6  ;;  %v1353_v39 = vpack.c.bf16 %v1350_v7, %v1349_v57 }
 0x9b5   : > { %v2639_v41 = vpop.eup %2638  ;;  %2235 = vst.msk [vmem:[%s2907_s13 + $0x24] sm:$0xf] %vm1044_vm4, %v2274_v37  ;;  %v1508_v10 = vmul.f32 %v2637_v47, %v1484_v59  ;;  %v1604_v38 = vmul.f32 %v2637_v47, %v3167_v52 }
 0x9b6   : > { %2222 = vst.msk [vmem:[%s2907_s13 + $0x10] sm:$0xf] %vm1044_vm4, %v2269_v58  ;;  %v1255_v60 = vmul.f32 %v2639_v41, %v1231_v19  ;;  %v1493_v16 = vpop.xlane.xlu0 %1492  ;;  %1357 = vrot.lane.b32.xlu0 %v1353_v39, %s2737_s17  ;;  %v1351_v48 = vmul.f32 %v2639_v41, %v3115_v14 }
 0x9b7   : > { %v2276_v18 = vpack.c.bf16 %v1508_v10, %v1508_v10  ;;  %2644 = vrcp.f32 %v1493_v16 }
 0x9b8   : > { %v2271_v11 = vpack.c.bf16 %v1255_v60, %v1255_v60 }
 0x9b9   : > { %v2641_v46 = vpop.eup %2640  ;;  %2237 = vst.msk [vmem:[%s2907_s13 + $0x2c] sm:$0xf] %vm1044_vm4, %v2276_v18 }
 0x9ba   : > { %2224 = vst.msk [vmem:[%s2907_s13 + $0x18] sm:$0xf] %vm1044_vm4, %v2271_v11  ;;  %v1256_v59 = vmul.f32 %v2641_v46, %v1232_v22  ;;  %v1352_v19 = vmul.f32 %v2641_v46, %v3119_v17 }
 0x9bc   : > { %v2272_v61 = vpack.c.bf16 %v1256_v59, %v1256_v59  ;;  %v1354_v63 = vpack.c.bf16 %v1352_v19, %v1351_v48 }
 0x9bd   : > { %v2643_v4 = vpop.eup %2642 }
 0x9be   : > { %2225 = vst.msk [vmem:[%s2907_s13 + $0x1c] sm:$0xf] %vm1044_vm4, %v2272_v61  ;;  %v1505_v9 = vmul.f32 %v2643_v4, %v1481_v24  ;;  %1359 = vrot.lane.b32.xlu1 %v1354_v63, %s2737_s17  ;;  %v1601_v56 = vmul.f32 %v2643_v4, %v3165_v51 }
 0x9c0   : > { %v2273_v62 = vpack.c.bf16 %v1505_v9, %v1505_v9  ;;  %v1605_v22 = vpack.c.bf16 %v1602_v20, %v1601_v56 }
 0x9c1   : > { %v2645_v21 = vpop.eup %2644 }
 0x9c2   : > { %2234 = vst.msk [vmem:[%s2907_s13 + $0x20] sm:$0xf] %vm1044_vm4, %v2273_v62  ;;  %v1507_v14 = vmul.f32 %v2645_v21, %v1483_v26  ;;  %1609 = vrot.lane.b32.xlu1 %v1605_v22, %s2738_s19  ;;  %v1603_v17 = vmul.f32 %v2645_v21, %v3163_v50  ;;  %v2252_v21 = vld [vmem:[%s3419_s7] ss:$0 sm:$0xff] }
 0x9c4   : > { %v2275_v24 = vpack.c.bf16 %v1507_v14, %v1507_v14  ;;  %v1606_v23 = vpack.c.bf16 %v1604_v38, %v1603_v17 }
 0x9c6   : > { %2236 = vst.msk [vmem:[%s2907_s13 + $0x28] sm:$0xf] %vm1044_vm4, %v2275_v24  ;;  %1611 = vrot.lane.b32.xlu1 %v1606_v23, %s2738_s19 }
 0xa10   : > { %v1739_v51 = vpop.xlane.xlu0 %1738  ;;  %v1742_v53 = vpop.xlane.xlu1 %1741 }
 0xa11   : > { %2646 = vrcp.f32 %v1739_v51  ;;  %v2662_v51 = vld [vmem:[%s2900_s30 + $0x10] sm:$0xff] }
 0xa12   : > { %2648 = vrcp.f32 %v1742_v53 }
 0xa14   : > { %v1748_v25 = vpop.xlane.xlu1 %1747 }
 0xa15   : > { %v1745_v3 = vpop.xlane.xlu0 %1744  ;;  %2650 = vrcp.f32 %v1748_v25 }
 0xa16   : > { %2652 = vrcp.f32 %v1745_v3 }
 0xa18   : > { %v1009_v40 = vpop.xlane.xlu1 %1008 }
 0xa19   : > { %v1006_v26 = vpop.xlane.xlu0 %1005  ;;  %2654 = vrcp.f32 %v1009_v40  ;;  %v2663_v40 = vld [vmem:[%s2900_s30] sm:$0xff] }
 0xa1a   : > { %2656 = vrcp.f32 %v1006_v26 }
 0xa1b   : > { %v3291_v50 = vpop.eup %2646 }
 0xa1c   : > { %v3293_v52 = vpop.eup %2648  ;;  %v1757_v8 = vmul.f32 %v3291_v50, %v1733_v44  ;;  %v1015_v31 = vpop.xlane.xlu1 %1014 }
 0xa1d   : > { %v1758_v32 = vmul.f32 %v3293_v52, %v1734_v43  ;;  %v1012_v2 = vpop.xlane.xlu0 %1011  ;;  %2658 = vrcp.f32 %v1015_v31  ;;  %v2665_v31 = vld [vmem:[%s2900_s30 + $0x8] sm:$0xff] }
 0xa1e   : > { %v2277_v33 = vpack.c.bf16 %v1757_v8, %v1757_v8  ;;  %2660 = vrcp.f32 %v1012_v2 }
 0xa1f   : > { %v2651_v34 = vpop.eup %2650  ;;  %v2278_v45 = vpack.c.bf16 %v1758_v32, %v1758_v32 }
 0xa20   : > { %v2653_v35 = vpop.eup %2652  ;;  %2246 = vst.msk [vmem:[%s2907_s13 + $0x30] sm:$0xf] %vm1044_vm4, %v2277_v33  ;;  %v1760_v6 = vmul.f32 %v2651_v34, %v1736_v54 }
 0xa21   : > { %2247 = vst.msk [vmem:[%s2907_s13 + $0x34] sm:$0xf] %vm1044_vm4, %v2278_v45  ;;  %v1759_v42 = vmul.f32 %v2653_v35, %v1735_v55 }
 0xa22   : > { %v2280_v43 = vpack.c.bf16 %v1760_v6, %v1760_v6 }
 0xa23   : > { %v2655_v44 = vpop.eup %2654  ;;  %v2279_v36 = vpack.c.bf16 %v1759_v42, %v1759_v42 }
 0xa24   : > { %v2657_v57 = vpop.eup %2656  ;;  %2249 = vst.msk [vmem:[%s2907_s13 + $0x3c] sm:$0xf] %vm1044_vm4, %v2280_v43  ;;  %v1025_v7 = vmul.f32 %v2655_v44, %v1001_v0  ;;  %v1105_v37 = vmul.f32 %v2655_v44, %v3071_v30 }
 0xa25   : > { %2248 = vst.msk [vmem:[%s2907_s13 + $0x38] sm:$0xf] %vm1044_vm4, %v2279_v36  ;;  %v1024_v54 = vmul.f32 %v2657_v57, %v1000_v1  ;;  %v1104_v49 = vmul.f32 %v2657_v57, %v3067_v28 }
 0xa26   : > { %v2266_v55 = vpack.c.bf16 %v1025_v7, %v1025_v7 }
 0xa27   : > { %v2659_v47 = vpop.eup %2658  ;;  %v2265_v58 = vpack.c.bf16 %v1024_v54, %v1024_v54  ;;  %v1108_v39 = vpack.c.bf16 %v1105_v37, %v1104_v49 }
 0xa28   : > { %v2661_v41 = vpop.eup %2660  ;;  %1046 = vst.msk [vmem:[%s2907_s13 + $0x4] sm:$0xf] %vm1044_vm4, %v2266_v55  ;;  %v1027_v30 = vmul.f32 %v2659_v47, %v1003_v5  ;;  %v1358_v0 = vpop.permute.xlu0 %1357  ;;  %v1107_v10 = vmul.f32 %v2659_v47, %v3069_v29 }
 0xa29   : > { %1045 = vst.msk [vmem:[%s2907_s13] sm:$0xf] %vm1044_vm4, %v2265_v58  ;;  %v1026_v13 = vmul.f32 %v2661_v41, %v1002_v12  ;;  %v1106_v28 = vmul.f32 %v2661_v41, %v3065_v27  ;;  %v2604_v27 = vld [vmem:[%s3418_s6] sm:$0xff]   ;;  %v2605_v12 = vld [vmem:[%s3418_s6 + $0x8] sm:$0xff]  }
 0xa2a   : > { %1110 = vst.msk [vmem:[#allocation4] sm:$0xff] %vm907_vm2, %v1108_v39  ;;  %v2268_v1 = vpack.c.bf16 %v1027_v30, %v1027_v30  ;;  %2477 = vmatprep.subr.bf16.mxu1 %v2604_v27 }
 0xa2b   : > { %1364 = vst.msk [vmem:[#allocation4] sm:$0xff] %vm1363_vm5, %v1358_v0  ;;  %v2267_v60 = vpack.c.bf16 %v1026_v13, %v1026_v13  ;;  %v1109_v16 = vpack.c.bf16 %v1107_v10, %v1106_v28  ;;  %2478 = vmatpush3.bf16.msra.mxu1 %v2604_v27 }
 0xa2c   : > { %1048 = vst.msk [vmem:[%s2907_s13 + $0xc] sm:$0xf] %vm1044_vm4, %v2268_v1  ;;  %2479 = vmatprep.subr.bf16.mxu1 %v2605_v12 }
 0xa2d   : > { %1047 = vst.msk [vmem:[%s2907_s13 + $0x8] sm:$0xf] %vm1044_vm4, %v2267_v60 }
 0xa2e   : > { %1111 = vst.msk [vmem:[#allocation4 + $0x8] sm:$0xff] %vm907_vm2, %v1109_v16 }
 0xa2f   : > { %2480 = vmatpush3.bf16.msra.mxu1 %v2605_v12 }
 0xa30   : > { %v1360_v29 = vpop.permute.xlu1 %1359 }
 0xa31   : > { %1365 = vst.msk [vmem:[#allocation4 + $0x8] sm:$0xff] %vm1363_vm5, %v1360_v29 }
 0xa34   : > { %v1610_v15 = vpop.permute.xlu1 %1609 }
 0xa35   : > { %1616 = vst.msk [vmem:[#allocation4] sm:$0xff] %vm1615_vm6, %v1610_v15 }
 0xa38   : > { %v1612_v5 = vpop.permute.xlu1 %1611 }
 0xa39   : > { %1617 = vst.msk [vmem:[#allocation4 + $0x8] sm:$0xff] %vm1615_vm6, %v1612_v5 }
 0xa5a   : > { %v2475_v18 = vpop.f32.mrb[12].mxu1 }
 0xa5b   : > { %v1855_v11 = vmul.f32 %v2653_v35, %v2475_v18  ;;  %v1838_v46 = vpop.f32.mrb[13].mxu1 }
 0xa5c   : > { %v1853_v59 = vmul.f32 %v3291_v50, %v1838_v46  ;;  %v2476_v48 = vpop.f32.mrb[14].mxu1 }
 0xa5d   : > { %v1856_v19 = vmul.f32 %v2651_v34, %v2476_v48  ;;  %v1841_v61 = vpop.f32.mrb[15].mxu1 }
 0xa5e   : > { %v1854_v63 = vmul.f32 %v3293_v52, %v1841_v61  ;;  %v2664_v52 = vld [vmem:[%s2900_s30 + $0x18] sm:$0xff] }
 0xa5f   : > { %v1858_v4 = vpack.c.bf16 %v1856_v19, %v1855_v11 }
 0xa60   : > { %v1857_v9 = vpack.c.bf16 %v1854_v63, %v1853_v59 }
 0xa61   : > { %1863 = vrot.lane.b32.xlu1 %v1858_v4, %s2739_s28 }
 0xa62   : > { %1861 = vrot.lane.b32.xlu0 %v1857_v9, %s2739_s28 }
 0xad3   : > { %v1864_v56 = vpop.permute.xlu1 %1863 }
 0xad4   : > { %1869 = vst.msk [vmem:[#allocation4 + $0x8] sm:$0xff] %vm1867_vm7, %v1864_v56  ;;  %v1862_v20 = vpop.permute.xlu0 %1861 }
 0xad5   : > { %1868 = vst.msk [vmem:[#allocation4] sm:$0xff] %vm1867_vm7, %v1862_v20 }
 0xadb   : > { %v1871_v22 = vld [vmem:[#allocation4 + $0x8] sm:$0xff] }
 0xadc   : > { %v1870_v62 = vld [vmem:[#allocation4] sm:$0xff] }
 0xadd   : > { %2481 = vmatprep.mubr.msk.bf16.mxu1 %vm748_vm1, %v1870_v62 }
 0xade   : > { %2482 = vmatmul.mubr.msk.bf16.vlgmr.msra.gmra.mrb[16].mxu1 %vm748_vm1, %v1871_v22 }
 0xbb1   : > { %v2483_v14 = vpop.f32.mrb[16].mxu1 }
 0xbb2   : > { %v1944_v17 = vadd.f32 %v2483_v14, %v2252_v21  ;;  %v1935_v38 = vpop.f32.mrb[17].mxu1 }
 0xbb3   : > { %v1936_v24 = vadd.f32 %v2252_v21, %v1935_v38  ;;  %v2484_v23 = vpop.f32.mrb[18].mxu1 }
 0xbb4   : > { %v1952_v53 = vadd.f32 %v2662_v51, %v1944_v17  ;;  %v1947_v25 = vadd.f32 %v2484_v23, %v2252_v21  ;;  %v1938_v3 = vpop.f32.mrb[19].mxu1 }
 0xbb5   : > { %v1950_v26 = vadd.f32 %v2663_v40, %v1936_v24  ;;  %v1939_v50 = vadd.f32 %v2252_v21, %v1938_v3 }
 0xbb6   : > { %1956 = vst.msk [vmem:[%s2905_s29 + $0x10] sm:$0xff] %vm748_vm1, %v1952_v53  ;;  %v1953_v8 = vadd.f32 %v2664_v52, %v1947_v25 }
 0xbb7   : > { %1954 = vst.msk [vmem:[%s2905_s29] sm:$0xff] %vm748_vm1, %v1950_v26  ;;  %v1951_v32 = vadd.f32 %v2665_v31, %v1939_v50 }
 0xbb8   : > { %1957 = vst.msk [vmem:[%s2905_s29 + $0x18] sm:$0xff] %vm748_vm1, %v1953_v8 }
 0xbb9   : > { %1955 = vst.msk [vmem:[%s2905_s29 + $0x8] sm:$0xff] %vm748_vm1, %v1951_v32 }
 0xbba   : > { %s3454_s15 = sld [smem:[#allocation12_spill]]  ;;  %s3455_s14 = sld [smem:[#allocation21_spill]] }
 0xbbb   : > { %s2003_s11 = sshll.u32 %s2907_s13, 4  ;;  %s3457_s29 = sld [smem:[#allocation22_spill]]  ;;  %s2004_s11 = int_to_ptr.vmem [resolvable:$true] %s2003_s11 }
 0xbbc   : > { %s2740_s27 = smov 256   ;;  %s2741_s24 = smov 512  }
 0xbbd   : > { %2501 = sst [smem:[#allocation8]] (%p2857_p3), %s2740_s27  ;;  %s2742_s28 = smov 4  }
 0xbbe   : > { %2502 = sst [smem:[#allocation8 + $0x1]] (%p2857_p3), %s2741_s24  ;;  %s2743_s12 = smov 64  }
 0xbbf   : > { %2503 = sst [smem:[#allocation8 + $0x2]] (%p2857_p3), %s2742_s28  ;;  %s2744_s13 = smov [#allocation7]  }
 0xbc0   : > { %s2259_s23 = sshll.u32 %s3454_s15, 5  ;;  %2504 = sst [smem:[#allocation8 + $0x3]] (%p2857_p3), %s2743_s12 }
 0xbc1   : > { %s1984_s17 = sadd.s32 %s2259_s23, %s3455_s14  ;;  %2505 = sst [smem:[#allocation8 + $0x4]] (%p2857_p3), %s2743_s12 }
 0xbc2   : > { %s2260_s30 = sshll.u32 %s1984_s17, 6  ;;  %2506 = sst [smem:[#allocation8 + $0x5]] (%p2857_p3), %s2742_s28 }
 0xbc3   : > { %s1986_s20 = scalar_lea.hbm %s3457_s29, %s2260_s30  ;;  %s2745_s16 = smov 0  }
 0xbc4   : > { %2507 = dma.general (%p2857_p3), %s2004_s11, 1024, %s1986_s20, %s1968_s26, %s2744_s13, [#allocation8], %s2745_s16, 0  }
 0xbc5 PF: > { %s3458_s25 = sld [smem:[#allocation15_spill]]  ;;  %s3459_s15 = sld [smem:[#allocation10_spill]] }
 0xbcb   : > { %p2513_p1 = scmp.ge.s32.totalorder %s3458_s25, 2  ;;  %s2043_s23 = sand.u32 1, %s3459_s15  }
 0xbcc   : > { %s2044_s17 = scalar_lea.sflag [#allocation6], %s2043_s23 }
 0xbcd   : > { %p2510_p2 = pnand %p2513_p1, %p2866_p8 }
 0xbcf   : > { %2699 = dma.done.wait (!%p2510_p2), %s2044_s17, 1024  }
 0xbd0   : > { %2701 = vsyncadd (!%p2510_p2), %s2044_s17, 4294966272  ;;  %s25_s24 = sadd.s32 1, %s3458_s25   ;;  %s3461_s30 = sld [smem:[#allocation11_spill]] }
 0xbd1   : > { %p22_p4 = scmp.ge.s32.totalorder %s25_s24, 6   ;;  %s3462_s19 = sld [smem:[#allocation20_spill]] }
 0xbd2   : > { %s3463_s20 = sld [smem:[#allocation13_spill]]  ;;  %s3464_s21 = sld [smem:[#allocation14_spill]] }
 0xbd3   : > { %s3465_s22 = sld [smem:[#allocation16_spill]]  ;;  %s3466_s23 = sld [smem:[#allocation18_spill]] }
 0xbd4   : > { %s3467_s17 = smov %s2708_s18  ;;  %24 = sbr.rel (!%p22_p4) target bundleno = 7 (0x7), region = 125 }
 0xbd6   : > { %s3468_s18 = smov %s3461_s30 }
 0xbdb   :  { %2049 = vsyncpa [#allocation6], 1 }
 0xbdc   :  { %2051 = vsyncpa [#allocation6 + $0x1], 1 }

// kernel: tpu_custom_call.1
= control target key start
LH: loop header
LB: loop body
LE: loop exit
PB: predicated region body
PF: predicated region fallthrough
CT: control target
= control target key end

     0   :  { %s3406_s0 = inlined_call_operand.vmem [shape: f32[2,64,32], index: 0, kind: input, shape index: {}]   ;;  %s3407_s1 = inlined_call_operand.vmem [shape: bf16[2,64,32], index: 1, kind: input, shape index: {}]   ;;  %s3408_s2 = inlined_call_operand.vmem [shape: bf16[2,64,32], index: 2, kind: input, shape index: {}]   ;;  %s3409_s3 = inlined_call_operand.vmem [shape: bf16[32,32], index: 3, kind: input, shape index: {}]   ;;  %s3410_s4 = inlined_call_operand.vmem [shape: bf16[32,32], index: 4, kind: input, shape index: {}]   ;;  %s3411_s5 = inlined_call_operand.vmem [shape: bf16[32,32], index: 5, kind: input, shape index: {}]   ;;  %s3412_s6 = inlined_call_operand.vmem [shape: bf16[32,32], index: 6, kind: input, shape index: {}]   ;;  %s3413_s7 = inlined_call_operand.vmem [shape: f32[1,32], index: 7, kind: input, shape index: {}]   ;;  %s3414_s8 = inlined_call_operand.vmem [shape: f32[1,32], index: 8, kind: input, shape index: {}]   ;;  %s3415_s9 = inlined_call_operand.vmem [shape: f32[1,32], index: 9, kind: input, shape index: {}]   ;;  %s3416_s10 = inlined_call_operand.vmem [shape: f32[2,64,32], index: 10, kind: output, shape index: {0}]   ;;  %s3417_s11 = inlined_call_operand.hbm [shape: bf16[2,4,64,64], index: 11, kind: output, shape index: {1}]  }
   0x1   :  { %3432 = sst [smem:[#allocation22_spill]] %s3417_s11 }
   0x2   :  { %17 = vsyncpa [#allocation6], 0 }
   0x3   :  { %19 = vsyncpa [#allocation6 + $0x1], 0  ;;  %s2800_s17 = smov 0   ;;  %s2802_s18 = smov 0  }
   0x4   :  { %s2804_s19 = smov 0   ;;  %s2806_s20 = smov 0  }
   0x5   :  { %s2808_s21 = smov 0   ;;  %s2810_s22 = smov 0  }
   0x6   :  { %s2812_s23 = smov 0   ;;  %s2814_s24 = smov 0  }
   0x7 LB: > { %3433 = sst [smem:[#allocation10_spill]] %s2698_s17  ;;  %s2159_s25 = sadd.s32 4294967295, %s2726_s24   ;;  %s2726_s24 = sphi %s2814_s24, %s25_s24   ;;  %s2722_s23 = sphi %s2812_s23, %s3460_s23   ;;  %s2718_s22 = sphi %s2810_s22, %s3459_s22   ;;  %s2714_s21 = sphi %s2808_s21, %s3458_s21   ;;  %s2710_s20 = sphi %s2806_s20, %s3457_s20   ;;  %s2706_s19 = sphi %s2804_s19, %s3456_s19   ;;  %s2702_s18 = sphi %s2802_s18, %s3462_s18   ;;  %s2698_s17 = sphi %s2800_s17, %s3461_s17  }
   0x8   : > { %3434 = sst [smem:[#allocation11_spill]] %s2706_s19  ;;  %s2160_s26 = sadd.s32 4294967294, %s2726_s24  }
   0x9   : > { %3435 = sst [smem:[#allocation12_spill]] %s2714_s21  ;;  %s34_s27 = sadd.s32 1, %s2718_s22 }
   0xa   : > { %3436 = sst [smem:[#allocation13_spill]] %s2718_s22  ;;  %p35_p0 = scmp.ge.s32.totalorder %s34_s27, 2 }
   0xb   : > { %3437 = sst [smem:[#allocation14_spill]] %s2722_s23  ;;  %s37_s28 = sadd.s32 1, %s2722_s23 }
   0xc   : > { %3438 = sst [smem:[#allocation15_spill]] %s2726_s24  ;;  %p311_p1 = scmp.ne.s32.totalorder %s2706_s19, %s2702_s18 }
   0xd   : > { %p312_p2 = scmp.eq.s32.totalorder %s2159_s25, 3  ;;  %s3464_s27 = smov (%p35_p0, %s34_s27), 0 }
   0xe   : > { %3439 = sst [smem:[#allocation16_spill]] %s3464_s27  ;;  %s3466_s28 = smov (!%p35_p0, %s37_s28), %s2722_s23 }
   0xf   : > { %s297_s29 = ssub.s32 %s2718_s22, %s3464_s27  ;;  %p2851_p3 = por %p312_p2, %p311_p1 }
  0x10   : > { %p39_p4 = scmp.ge.s32.totalorder %s3466_s28, 2  ;;  %p317_p5 = scmp.ne.s32.totalorder %s2702_s18, %s2698_s17 }
  0x11   : > { %s3440_s30 = scalar_select %p2851_p3, 1, 0 }
  0x12   : > { %p318_p6 = scmp.eq.s32.totalorder %s2160_s26, 3  ;;  %p2163_p7 = scmp.ge.s32.totalorder %s2726_s24, 1 }
  0x13   : > { %3441 = sst [smem:[#allocation17_spill]] %s3440_s30  ;;  %s3468_s28 = smov (%p39_p4, %s3466_s28), 0 }
  0x14   : > { %3442 = sst [smem:[#allocation18_spill]] %s3468_s28  ;;  %p2860_p8 = por %p318_p6, %p317_p5 }
  0x15   : > { %p386_p9 = scmp.lt.s32.totalorder %s2726_s24, 5  ;;  %s296_s13 = ssub.s32 %s2722_s23, %s3468_s28 }
  0x16   : > { %s3443_s12 = scalar_select %p2860_p8, 1, 0 }
  0x17   : > { %s301_s14 = sadd.s32 1, %s2706_s19  ;;  %s298_s15 = sor.u32 %s297_s29, %s296_s13 }
  0x18   : > { %3444 = sst [smem:[#allocation19_spill]] %s3443_s12  ;;  %p387_p10 = pnand %p2163_p7, %p386_p9 }
  0x19   : > { %p299_p11 = scmp.eq.s32.totalorder %s298_s15, 0 }
  0x1a   : > { %390 = sbr.rel (%p387_p10) target bundleno = 3013 (0xbc5), region = 60 }
  0x1b   : > { %s2869_s16 = scalar_select %p299_p11, %s2706_s19, %s301_s14  }
  0x1d   : > { %3445 = sst [smem:[#allocation20_spill]] %s2869_s16 }
  0x21   : > { %s3427_s25 = sand.u32 1, %s2702_s18   ;;  %s2873_s26 = sshll.u32 %s2710_s20, 2 }
  0x22   : > { %3446 = sst [smem:[#allocation21_spill]] %s2873_s26  ;;  %s2164_s27 = sshll.u32 %s3427_s25, 6 }
  0x23   : > { %p450_p12 = scmp.lt.s32.totalorder %s2714_s21, 1  ;;  %p452_p13 = scmp.lt.s32.totalorder %s2873_s26, 7 }
  0x24   : > { %p2175_p0 = scmp.ne.s32.totalorder %s2710_s20, 0 }
  0x25   : > { %s451_s29 = scalar_select %p450_p12, %s2714_s21, 1 }
  0x26   : > { %s453_s13 = scalar_select %p452_p13, %s2873_s26, 7 }
  0x27   : > { %s2166_s15 = sshll.u32 %s451_s29, 3  ;;  %s2257_s14 = sshll.u32 %s451_s29, 5  ;;  %v2584_v0 = vld [vmem:[%s3410_s4] sm:$0xff] (!%p2175_p0)   ;;  %v2586_v2 = vld [vmem:[%s3410_s4 + $0x8] sm:$0xff] (!%p2175_p0)   ;;  %vm537_vm0 = vcmask (!%p2175_p0), 261120  }
  0x28   : > { %s455_s28 = sadd.s32 %s2166_s15, %s453_s13  ;;  %s2884_s16 = scalar_lea.vmem %s3407_s1, %s2257_s14  ;;  %v2585_v1 = vld [vmem:[%s3411_s5] sm:$0xff] (!%p2175_p0)   ;;  %2343 = vmatprep.subr.bf16.mxu0 (!%p2175_p0), %v2584_v0  ;;  %v2587_v3 = vld [vmem:[%s3411_s5 + $0x8] sm:$0xff] (!%p2175_p0)  }
  0x29   : > { %s2167_s19 = sshll.u32 %s455_s28, 3  ;;  %s2889_s24 = scalar_lea.vmem %s3408_s2, %s2257_s14  ;;  %2355 = vmatprep.subr.bf16.mxu1 (!%p2175_p0), %v2585_v1  ;;  %2344 = vmatpush3.bf16.msra.mxu0 (!%p2175_p0), %v2584_v0  ;;  %v2588_v4 = vld [vmem:[%s2884_s16] sm:$0xff] (!%p2175_p0)   ;;  %v2590_v6 = vld [vmem:[%s2884_s16 + $0x8] sm:$0xff] (!%p2175_p0)   ;;  %v2592_v8 = vld [vmem:[%s2884_s16 + $0x10] sm:$0xff] (!%p2175_p0)  }
  0x2a   : > { %s2894_s30 = scalar_lea.vmem %s3406_s0, %s2167_s19  ;;  %s2899_s29 = scalar_lea.vmem %s3416_s10, %s2167_s19  ;;  %2356 = vmatpush3.bf16.msra.mxu1 (!%p2175_p0), %v2585_v1  ;;  %2345 = vmatprep.subr.bf16.mxu0 (!%p2175_p0), %v2586_v2  ;;  %v2589_v5 = vld [vmem:[%s2889_s24] sm:$0xff] (!%p2175_p0)   ;;  %v2591_v7 = vld [vmem:[%s2889_s24 + $0x8] sm:$0xff] (!%p2175_p0)   ;;  %v2593_v9 = vld [vmem:[%s2889_s24 + $0x10] sm:$0xff] (!%p2175_p0)  }
  0x2b   : > { %s2901_s13 = scalar_lea.vmem [#allocation5], %s2164_s27  ;;  %484 = sbr.rel (%p2175_p0) target bundleno = 275 (0x113), region = 64  ;;  %2357 = vmatprep.subr.bf16.mxu1 (!%p2175_p0), %v2587_v3  ;;  %2347 = vmatprep.mubr.msk.bf16.mxu0 (!%p2175_p0), %vm537_vm0, %v2588_v4  ;;  %v2594_v10 = vld [vmem:[%s2884_s16 + $0x18] sm:$0xff] (!%p2175_p0)  }
  0x2c   : > { %2359 = vmatprep.mubr.msk.bf16.mxu1 (!%p2175_p0), %vm537_vm0, %v2589_v5  ;;  %v2595_v11 = vld [vmem:[%s2889_s24 + $0x18] sm:$0xff] (!%p2175_p0)  }
  0x2d   : > { %2346 = vmatpush3.bf16.msra.mxu0 (!%p2175_p0), %v2586_v2 }
  0x2e   : > { %2358 = vmatpush3.bf16.msra.mxu1 (!%p2175_p0), %v2587_v3 }
  0x30   : > { %2348 = vmatmul.mubr.msk.bf16.vlgmr.msra.gmra.mrb[0].mxu0 (!%p2175_p0), %vm537_vm0, %v2590_v6 }
  0x31   : > { %2360 = vmatmul.mubr.msk.bf16.vlgmr.msra.gmra.mrb[0].mxu1 (!%p2175_p0), %vm537_vm0, %v2591_v7  ;;  %2351 = vmatprep.mubr.msk.bf16.mxu0 (!%p2175_p0), %vm537_vm0, %v2592_v8 }
  0x32   : > { %2363 = vmatprep.mubr.msk.bf16.mxu1 %vm537_vm0, %v2593_v9 }
  0x38   : > { %2352 = vmatmul.mubr.msk.bf16.gmra.mrb[4].mxu0 %vm537_vm0, %v2594_v10 }
  0x39   : > { %2364 = vmatmul.mubr.msk.bf16.gmra.mrb[4].mxu1 %vm537_vm0, %v2595_v11 }
 0x103   : > { %v2349_v12 = vpop.f32.mrb[0].mxu0 }
 0x104   : > { %v2361_v13 = vpop.f32.mrb[0].mxu1  ;;  %v584_v14 = vpop.f32.mrb[1].mxu0 }
 0x105   : > { %v705_v15 = vpop.f32.mrb[1].mxu1  ;;  %v2350_v16 = vpop.f32.mrb[2].mxu0 }
 0x106   : > { %v616_v17 = vpack.c.bf16 %v2350_v16, %v2349_v12  ;;  %v2362_v18 = vpop.f32.mrb[2].mxu1  ;;  %v587_v19 = vpop.f32.mrb[3].mxu0 }
 0x107   : > { %v737_v20 = vpack.c.bf16 %v2362_v18, %v2361_v13  ;;  %v615_v21 = vpack.c.bf16 %v587_v19, %v584_v14  ;;  %v708_v22 = vpop.f32.mrb[3].mxu1 }
 0x108   : > { %620 = vst.msk [vmem:[#allocation2 + $0x8] sm:$0xff] %vm537_vm0, %v616_v17  ;;  %v736_v23 = vpack.c.bf16 %v708_v22, %v705_v15 }
 0x109   : > { %741 = vst.msk [vmem:[#allocation3 + $0x8] sm:$0xff] %vm537_vm0, %v737_v20  ;;  %619 = vst.msk [vmem:[#allocation2] sm:$0xff] %vm537_vm0, %v615_v21 }
 0x10a   : > { %740 = vst.msk [vmem:[#allocation3] sm:$0xff] %vm537_vm0, %v736_v23 }
 0x10b   : > { %v2353_v24 = vpop.f32.mrb[4].mxu0 }
 0x10c   : > { %v2365_v25 = vpop.f32.mrb[4].mxu1  ;;  %v600_v26 = vpop.f32.mrb[5].mxu0 }
 0x10d   : > { %v721_v27 = vpop.f32.mrb[5].mxu1  ;;  %v2354_v28 = vpop.f32.mrb[6].mxu0 }
 0x10e   : > { %v618_v29 = vpack.c.bf16 %v2354_v28, %v2353_v24  ;;  %v2366_v30 = vpop.f32.mrb[6].mxu1  ;;  %v603_v31 = vpop.f32.mrb[7].mxu0 }
 0x10f   : > { %v739_v32 = vpack.c.bf16 %v2366_v30, %v2365_v25  ;;  %v617_v33 = vpack.c.bf16 %v603_v31, %v600_v26  ;;  %v724_v34 = vpop.f32.mrb[7].mxu1 }
 0x110   : > { %622 = vst.msk [vmem:[#allocation2 + $0x18] sm:$0xff] %vm537_vm0, %v618_v29  ;;  %v738_v35 = vpack.c.bf16 %v724_v34, %v721_v27 }
 0x111   : > { %743 = vst.msk [vmem:[#allocation3 + $0x18] sm:$0xff] %vm537_vm0, %v739_v32  ;;  %621 = vst.msk [vmem:[#allocation2 + $0x10] sm:$0xff] %vm537_vm0, %v617_v33 }
 0x112   : > { %742 = vst.msk [vmem:[#allocation3 + $0x10] sm:$0xff] %vm537_vm0, %v738_v35 }
 0x113 PF: > { %v744_v36 = vld [vmem:[%s2894_s30] sm:$0xff]  ;;  %vm748_vm1 = vcmask 261120   ;;  %v746_v37 = vld [vmem:[%s2894_s30 + $0x10] sm:$0xff]  ;;  %v745_v38 = vld [vmem:[%s2894_s30 + $0x8] sm:$0xff]  ;;  %vm907_vm2 = vcmask 64512   ;;  %vm975_vm3 = vcmask 523264  }
 0x114   : > { %v749_v39 = vsel %vm748_vm1, %v744_v36, 0.0  ;;  %v755_v40 = vsel %vm748_vm1, %v746_v37, 0.0  ;;  %v747_v41 = vld [vmem:[%s2894_s30 + $0x18] sm:$0xff]  ;;  %v752_v42 = vsel %vm748_vm1, %v745_v38, 0.0  ;;  %v2596_v0 = vld [vmem:[%s3409_s3] sm:$0xff]   ;;  %v2597_v1 = vld [vmem:[%s3409_s3 + $0x8] sm:$0xff]  }
 0x115   : > { %750 = vadd.xlane.f32.xlu0 %v749_v39  ;;  %756 = vadd.xlane.f32.xlu1 %v755_v40  ;;  %v758_v43 = vsel %vm748_vm1, %v747_v41, 0.0  ;;  %v2962_v2 = vld [vmem:[#allocation2] sm:$0xff]  ;;  %v2964_v3 = vld [vmem:[#allocation2 + $0x8] sm:$0xff]  ;;  %s2728_s22 = smov 120   ;;  %s2729_s23 = smov 112   ;;  %vm1044_vm4 = vcmask 519168  }
 0x116   : > { %2367 = vmatprep.subr.bf16.mxu0 %v2596_v0  ;;  %2479 = vmatprep.subr.msk.bf16.mxu1 %vm907_vm2, %v2962_v2  ;;  %v915_v4 = vsel %vm907_vm2, %v2962_v2, 0  ;;  %v918_v5 = vsel %vm907_vm2, %v2964_v3, 0  ;;  %v2196_v23 = vld [vmem:[%s3414_s8] ss:$0 sm:$0xff]  ;;  %s2730_s11 = smov 104   ;;  %s2731_s17 = smov 8  }
 0x117   : > { %2368 = vmatpush3.bf16.msra.mxu0 %v2596_v0  ;;  %2376 = vmatpush3.bf16.xpose.msra.mxu1 %v915_v4  ;;  %v2980_v8 = vld [vmem:[#allocation2 + $0x18] sm:$0xff]  ;;  %v2197_v29 = vld [vmem:[%s3415_s9] ss:$0 sm:$0xff]  ;;  %s2732_s19 = smov 16   ;;  %vm1363_vm5 = vcmask 130112   ;;  %vm1615_vm6 = vcmask 195712  }
 0x118   : > { %2369 = vmatprep.subr.bf16.mxu0 %v2597_v1  ;;  %2480 = vmatprep.subr.msk.bf16.mxu1 %vm907_vm2, %v2964_v3  ;;  %v2974_v6 = vld [vmem:[#allocation2 + $0x10] sm:$0xff]  ;;  %s2733_s28 = smov 24   ;;  %vm1867_vm7 = vcmask 261312   ;;  %s3447_s25 = sand.u32 1, %s2702_s18  }
 0x119   : > { %753 = vadd.xlane.f32.xlu0 %v752_v42  ;;  %759 = vadd.xlane.f32.xlu1 %v758_v43  ;;  %v921_v7 = vsel %vm907_vm2, %v2974_v6, 0  ;;  %s1968_s26 = scalar_lea.sflag [#allocation6], %s3447_s25 }
 0x11b   : > { %2370 = vmatpush3.bf16.msra.mxu0 %v2597_v1 }
 0x11f   : > { %2378 = vmatpush3.bf16.xpose.msra.mxu1 %v918_v5 }
 0x120   : > { %2481 = vmatprep.subr.msk.bf16.mxu1 %vm907_vm2, %v2974_v6 }
 0x127   : > { %2380 = vmatpush3.bf16.xpose.msra.mxu1 %v921_v7 }
 0x128   : > { %2482 = vmatprep.subr.msk.bf16.mxu1 %vm907_vm2, %v2980_v8 }
 0x1a2   : > { %v751_v44 = vpop.xlane.xlu0 %750  ;;  %v757_v45 = vpop.xlane.xlu1 %756 }
 0x1a3   : > { %v762_v46 = vmul.f32 0.03125, %v751_v44  ;;  %v764_v47 = vmul.f32 0.03125, %v757_v45 }
 0x1a5   : > { %v766_v48 = vsub.f32 %v744_v36, %v762_v46  ;;  %v2948_v49 = vsub.f32 %v746_v37, %v764_v47 }
 0x1a6   : > { %v754_v50 = vpop.xlane.xlu0 %753  ;;  %v760_v51 = vpop.xlane.xlu1 %759 }
 0x1a7   : > { %v763_v52 = vmul.f32 0.03125, %v754_v50  ;;  %v765_v53 = vmul.f32 0.03125, %v760_v51  ;;  %v770_v54 = vmul.f32 %v766_v48, %v766_v48  ;;  %v772_v55 = vmul.f32 %v2948_v49, %v2948_v49 }
 0x1a9   : > { %v767_v56 = vsub.f32 %v745_v38, %v763_v52  ;;  %v769_v57 = vsub.f32 %v747_v41, %v765_v53  ;;  %v774_v58 = vsel %vm748_vm1, %v770_v54, 0.0  ;;  %v780_v59 = vsel %vm748_vm1, %v772_v55, 0.0 }
 0x1aa   : > { %775 = vadd.xlane.f32.xlu0 %v774_v58  ;;  %v924_v41 = vsel %vm907_vm2, %v2980_v8, 0  ;;  %v3017_v58 = vld [vmem:[#allocation3 + $0x10] sm:$0xff] }
 0x1ab   : > { %v771_v60 = vmul.f32 %v767_v56, %v767_v56  ;;  %v773_v61 = vmul.f32 %v769_v57, %v769_v57  ;;  %2382 = vmatpush3.bf16.xpose.msra.mxu1 %v924_v41 }
 0x1ad   : > { %v777_v62 = vsel %vm748_vm1, %v771_v60, 0.0  ;;  %v783_v63 = vsel %vm748_vm1, %v773_v61, 0.0 }
 0x1ae   : > { %781 = vadd.xlane.f32.xlu0 %v780_v59  ;;  %778 = vadd.xlane.f32.xlu1 %v777_v62  ;;  %v3025_v59 = vld [vmem:[#allocation3 + $0x18] sm:$0xff] }
 0x1b2   : > { %784 = vadd.xlane.f32.xlu1 %v783_v63 }
 0x237   : > { %v776_v9 = vpop.xlane.xlu0 %775 }
 0x238   : > { %v786_v10 = vmul.f32 0.03125, %v776_v9 }
 0x23a   : > { %v790_v11 = vadd.f32 1e-06, %v786_v10 }
 0x23b   : > { %v779_v12 = vpop.xlane.xlu1 %778  ;;  %v782_v13 = vpop.xlane.xlu0 %781 }
 0x23c   : > { %2600 = vrsqrt.f32 %v790_v11  ;;  %v787_v14 = vmul.f32 0.03125, %v779_v12  ;;  %v788_v15 = vmul.f32 0.03125, %v782_v13 }
 0x23e   : > { %v791_v16 = vadd.f32 1e-06, %v787_v14  ;;  %v792_v17 = vadd.f32 1e-06, %v788_v15 }
 0x23f   : > { %v785_v18 = vpop.xlane.xlu1 %784 }
 0x240   : > { %2602 = vrsqrt.f32 %v791_v16  ;;  %v789_v19 = vmul.f32 0.03125, %v785_v18 }
 0x241   : > { %2604 = vrsqrt.f32 %v792_v17 }
 0x242   : > { %v793_v20 = vadd.f32 1e-06, %v789_v19 }
 0x244   : > { %2606 = vrsqrt.f32 %v793_v20 }
 0x246   : > { %v2601_v21 = vpop.eup %2600 }
 0x247   : > { %v798_v22 = vmul.f32 %v2601_v21, %v766_v48 }
 0x249   : > { %v809_v27 = vmul.f32 %v2196_v23, %v798_v22 }
 0x24a   : > { %v2603_v24 = vpop.eup %2602 }
 0x24b   : > { %v2605_v25 = vpop.eup %2604  ;;  %v799_v26 = vmul.f32 %v2603_v24, %v767_v56  ;;  %v820_v33 = vadd.f32 %v2197_v29, %v809_v27  ;;  %v3007_v56 = vld [vmem:[#allocation3] sm:$0xff] }
 0x24c   : > { %v800_v28 = vmul.f32 %v2605_v25, %v2948_v49  ;;  %2387 = vmatprep.subr.bf16.mxu0 %v3007_v56 }
 0x24d   : > { %v810_v30 = vmul.f32 %v2196_v23, %v799_v26 }
 0x24e   : > { %v2607_v31 = vpop.eup %2606  ;;  %v811_v35 = vmul.f32 %v2196_v23, %v800_v28 }
 0x24f   : > { %v801_v32 = vmul.f32 %v2607_v31, %v769_v57  ;;  %v821_v34 = vadd.f32 %v2197_v29, %v810_v30  ;;  %v3011_v57 = vld [vmem:[#allocation3 + $0x8] sm:$0xff] }
 0x250   : > { %v822_v38 = vadd.f32 %v2197_v29, %v811_v35 }
 0x251   : > { %v824_v36 = vpack.c.bf16 %v821_v34, %v820_v33  ;;  %v812_v37 = vmul.f32 %v2196_v23, %v801_v32 }
 0x253   : > { %2371 = vmatprep.mubr.msk.bf16.mxu0 %vm748_vm1, %v824_v36  ;;  %v823_v39 = vadd.f32 %v2197_v29, %v812_v37 }
 0x255   : > { %v825_v40 = vpack.c.bf16 %v823_v39, %v822_v38 }
 0x257   : > { %2372 = vmatmul.mubr.msk.bf16.vlgmr.msra.gmra.mrb[0].mxu0 %vm748_vm1, %v825_v40 }
 0x258   : > { %2388 = vmatpush3.bf16.msra.mxu0 %v3007_v56 }
 0x259   : > { %2389 = vmatprep.subr.bf16.mxu0 %v3011_v57 }
 0x25c   : > { %2390 = vmatpush3.bf16.msra.mxu0 %v3011_v57 }
 0x25d   : > { %2391 = vmatprep.subr.bf16.mxu0 %v3017_v58 }
 0x260   : > { %2392 = vmatpush3.bf16.msra.mxu0 %v3017_v58 }
 0x261   : > { %2393 = vmatprep.subr.bf16.mxu0 %v3025_v59 }
 0x264   : > { %2394 = vmatpush3.bf16.msra.mxu0 %v3025_v59 }
 0x32a   : > { %v2373_v42 = vpop.f32.mrb[0].mxu0 }
 0x32b   : > { %v882_v43 = vpop.f32.mrb[1].mxu0 }
 0x32c   : > { %v2374_v44 = vpop.f32.mrb[2].mxu0 }
 0x32d   : > { %v2995_v45 = vpack.c.bf16 %v2374_v44, %v2373_v42  ;;  %v885_v46 = vpop.f32.mrb[3].mxu0 }
 0x32e   : > { %v2997_v47 = vpack.c.bf16 %v885_v46, %v882_v43 }
 0x330   : > { %2383 = vmatprep.mubr.msk.bf16.mxu1 %vm907_vm2, %v2997_v47 }
 0x331   : > { %2384 = vmatmul.mubr.msk.bf16.vlgmr.msra.gmra.mrb[0].mxu1 %vm907_vm2, %v2995_v45 }
 0x404   : > { %v2385_v48 = vpop.f32.mrb[0].mxu1 }
 0x405   : > { %v960_v49 = vpop.f32.mrb[1].mxu1  ;;  %v982_v54 = vsel %vm975_vm3, %v2385_v48, -inf }
 0x406   : > { %v2386_v50 = vpop.f32.mrb[2].mxu1  ;;  %v976_v51 = vsel %vm975_vm3, %v960_v49, -inf }
 0x407   : > { %977 = vmax.xlane.f32.xlu0 %v976_v51  ;;  %v963_v52 = vpop.f32.mrb[3].mxu1  ;;  %v985_v55 = vsel %vm975_vm3, %v2386_v50, -inf }
 0x408   : > { %v979_v53 = vsel %vm975_vm3, %v963_v52, -inf }
 0x409   : > { %980 = vmax.xlane.f32.xlu1 %v979_v53 }
 0x40b   : > { %983 = vmax.xlane.f32.xlu0 %v982_v54 }
 0x40d   : > { %986 = vmax.xlane.f32.xlu1 %v985_v55 }
 0x41e   : > { %1132 = vrot.lane.b32.xlu1 %v2964_v3, %s2728_s22 }
 0x421   : > { %1130 = vrot.lane.b32.xlu0 %v2962_v2, %s2728_s22 }
 0x422   : > { %1134 = vrot.lane.b32.xlu1 %v2974_v6, %s2728_s22 }
 0x425   : > { %1122 = vrot.lane.b32.xlu0 %v2997_v47, %s2728_s22 }
 0x426   : > { %1136 = vrot.lane.b32.xlu1 %v2980_v8, %s2728_s22 }
 0x429   : > { %1282 = vrot.lane.b32.xlu0 %v3007_v56, %s2728_s22 }
 0x42a   : > { %1124 = vrot.lane.b32.xlu1 %v2995_v45, %s2728_s22 }
 0x42e   : > { %1284 = vrot.lane.b32.xlu1 %v3011_v57, %s2728_s22 }
 0x432   : > { %1286 = vrot.lane.b32.xlu1 %v3017_v58, %s2728_s22 }
 0x494   : > { %v978_v60 = vpop.xlane.xlu0 %977 }
 0x495   : > { %v988_v62 = vsub.f32 %v960_v49, %v978_v60 }
 0x496   : > { %v981_v61 = vpop.xlane.xlu1 %980 }
 0x497   : > { %v989_v63 = vsub.f32 %v963_v52, %v981_v61 }
 0x498   : > { %v984_v0 = vpop.xlane.xlu0 %983 }
 0x499   : > { %v992_v1 = vpack.c.bf16 %v989_v63, %v988_v62  ;;  %v990_v7 = vsub.f32 %v2385_v48, %v984_v0 }
 0x49a   : > { %v987_v4 = vpop.xlane.xlu1 %986 }
 0x49b   : > { %v995_v5 = vmul.bf16 1069105081, %v992_v1  ;;  %v991_v9 = vsub.f32 %v2386_v50, %v987_v4 }
 0x49c   : > { %v1131_v10 = vpop.permute.xlu0 %1130 }
 0x49d   : > { %2608 = vpow.bf16 %v995_v5  ;;  %v993_v11 = vpack.c.bf16 %v991_v9, %v990_v7  ;;  %2483 = vmatprep.subr.msk.bf16.mxu0 %vm907_vm2, %v1131_v10  ;;  %v1145_v14 = vsel %vm907_vm2, %v1131_v10, 0 }
 0x49e   : > { %v1133_v17 = vpop.permute.xlu1 %1132 }
 0x49f   : > { %v998_v12 = vmul.bf16 1069105081, %v993_v11  ;;  %v1148_v18 = vsel %vm907_vm2, %v1133_v17, 0 }
 0x4a0   : > { %v1123_v16 = vpop.permute.xlu0 %1122 }
 0x4a1   : > { %2610 = vpow.bf16 %v998_v12 }
 0x4a2   : > { %v1135_v19 = vpop.permute.xlu1 %1134 }
 0x4a3   : > { %v1151_v20 = vsel %vm907_vm2, %v1135_v19, 0 }
 0x4a4   : > { %v1283_v24 = vpop.permute.xlu0 %1282 }
 0x4a5   : > { %2411 = vmatprep.subr.bf16.mxu1 %v1283_v24 }
 0x4a6   : > { %v1137_v21 = vpop.permute.xlu1 %1136  ;;  %2412 = vmatpush3.bf16.msra.mxu1 %v1283_v24 }
 0x4a7   : > { %v1154_v22 = vsel %vm907_vm2, %v1137_v21, 0 }
 0x4a8   : > { %v3042_v13 = vpop.eup %2608 }
 0x4a9   : > { %2395 = vmatprep.mubr.msk.bf16.mxu0 %vm975_vm3, %v3042_v13 }
 0x4aa   : > { %v1125_v23 = vpop.permute.xlu1 %1124 }
 0x4ac   : > { %v3047_v15 = vpop.eup %2610 }
 0x4ad   : > { %2396 = vmatmul.mubr.msk.bf16.vlgmr.msra.gmra.mrb[4].mxu0 %vm975_vm3, %v3047_v15 }
 0x4ae   : > { %2400 = vmatpush3.bf16.xpose.msra.mxu0 %v1145_v14  ;;  %2407 = vmatprep.mubr.msk.bf16.mxu0 %vm907_vm2, %v1123_v16  ;;  %v1285_v25 = vpop.permute.xlu1 %1284 }
 0x4af   : > { %2484 = vmatprep.subr.msk.bf16.mxu0 %vm907_vm2, %v1133_v17  ;;  %2413 = vmatprep.subr.bf16.mxu1 %v1285_v25 }
 0x4b0   : > { %2414 = vmatpush3.bf16.msra.mxu1 %v1285_v25 }
 0x4b2   : > { %v1287_v26 = vpop.permute.xlu1 %1286 }
 0x4b3   : > { %2415 = vmatprep.subr.bf16.mxu1 %v1287_v26 }
 0x4b4   : > { %2416 = vmatpush3.bf16.msra.mxu1 %v1287_v26 }
 0x4b6   : > { %2402 = vmatpush3.bf16.xpose.msra.mxu0 %v1148_v18 }
 0x4b7   : > { %2485 = vmatprep.subr.msk.bf16.mxu0 %vm907_vm2, %v1135_v19 }
 0x4be   : > { %2404 = vmatpush3.bf16.xpose.msra.mxu0 %v1151_v20 }
 0x4bf   : > { %2486 = vmatprep.subr.msk.bf16.mxu0 %vm907_vm2, %v1137_v21 }
 0x4c6   : > { %2406 = vmatpush3.bf16.xpose.msra.mxu0 %v1154_v22 }
 0x4cd   : > { %2408 = vmatmul.mubr.msk.bf16.vlgmr.msra.gmra.mrb[8].mxu0 %vm907_vm2, %v1125_v23 }
 0x580   : > { %v3059_v27 = vpop.f32.mrb[4].mxu0 }
 0x581   : > { %v3061_v28 = vpop.f32.mrb[5].mxu0 }
 0x582   : > { %v3063_v29 = vpop.f32.mrb[6].mxu0 }
 0x583   : > { %v3065_v30 = vpop.f32.mrb[7].mxu0 }
 0x5a0   : > { %v2409_v31 = vpop.f32.mrb[8].mxu0 }
 0x5a1   : > { %v1190_v32 = vpop.f32.mrb[9].mxu0  ;;  %v1211_v33 = vsel %vm975_vm3, %v2409_v31, -inf }
 0x5a2   : > { %1212 = vmax.xlane.f32.xlu0 %v1211_v33  ;;  %v2410_v34 = vpop.f32.mrb[10].mxu0  ;;  %v1205_v37 = vsel %vm975_vm3, %v1190_v32, -inf }
 0x5a3   : > { %v1193_v35 = vpop.f32.mrb[11].mxu0  ;;  %v1214_v38 = vsel %vm975_vm3, %v2410_v34, -inf }
 0x5a4   : > { %v1208_v36 = vsel %vm975_vm3, %v1193_v35, -inf }
 0x5a5   : > { %1209 = vmax.xlane.f32.xlu1 %v1208_v36 }
 0x5a6   : > { %1206 = vmax.xlane.f32.xlu0 %v1205_v37 }
 0x5aa   : > { %1215 = vmax.xlane.f32.xlu0 %v1214_v38 }
 0x5b6   : > { %1288 = vrot.lane.b32.xlu1 %v3025_v59, %s2728_s22 }
 0x5ba   : > { %1384 = vrot.lane.b32.xlu1 %v2964_v3, %s2729_s23 }
 0x5be   : > { %1388 = vrot.lane.b32.xlu1 %v2980_v8, %s2729_s23 }
 0x5c0   : > { %1382 = vrot.lane.b32.xlu0 %v2962_v2, %s2729_s23 }
 0x5c2   : > { %1376 = vrot.lane.b32.xlu1 %v2995_v45, %s2729_s23 }
 0x5c4   : > { %1386 = vrot.lane.b32.xlu0 %v2974_v6, %s2729_s23 }
 0x5c6   : > { %1536 = vrot.lane.b32.xlu1 %v3011_v57, %s2729_s23 }
 0x5c8   : > { %1374 = vrot.lane.b32.xlu0 %v2997_v47, %s2729_s23 }
 0x5ca   : > { %1538 = vrot.lane.b32.xlu1 %v3017_v58, %s2729_s23 }
 0x5cc   : > { %1534 = vrot.lane.b32.xlu0 %v3007_v56, %s2729_s23 }
 0x62f   : > { %v1213_v39 = vpop.xlane.xlu0 %1212 }
 0x630   : > { %v1219_v49 = vsub.f32 %v2409_v31, %v1213_v39 }
 0x632   : > { %v1210_v40 = vpop.xlane.xlu1 %1209 }
 0x633   : > { %v1218_v41 = vsub.f32 %v1193_v35, %v1210_v40  ;;  %v1207_v42 = vpop.xlane.xlu0 %1206 }
 0x634   : > { %v1217_v43 = vsub.f32 %v1190_v32, %v1207_v42 }
 0x636   : > { %v1221_v44 = vpack.c.bf16 %v1218_v41, %v1217_v43  ;;  %v1289_v46 = vpop.permute.xlu1 %1288 }
 0x637   : > { %v1216_v48 = vpop.xlane.xlu0 %1215  ;;  %2417 = vmatprep.subr.bf16.mxu1 %v1289_v46 }
 0x638   : > { %v1224_v50 = vmul.bf16 1069105081, %v1221_v44  ;;  %v1220_v51 = vsub.f32 %v2410_v34, %v1216_v48  ;;  %2418 = vmatpush3.bf16.msra.mxu1 %v1289_v46 }
 0x63a   : > { %2612 = vpow.bf16 %v1224_v50  ;;  %v1222_v52 = vpack.c.bf16 %v1220_v51, %v1219_v49  ;;  %v1385_v0 = vpop.permute.xlu1 %1384 }
 0x63b   : > { %v1383_v53 = vpop.permute.xlu0 %1382  ;;  %v1400_v1 = vsel %vm907_vm2, %v1385_v0, 0 }
 0x63c   : > { %v1227_v54 = vmul.bf16 1069105081, %v1222_v52  ;;  %2487 = vmatprep.subr.msk.bf16.mxu1 %vm907_vm2, %v1383_v53  ;;  %v1397_v61 = vsel %vm907_vm2, %v1383_v53, 0 }
 0x63e   : > { %2614 = vpow.bf16 %v1227_v54  ;;  %v1389_v5 = vpop.permute.xlu1 %1388 }
 0x63f   : > { %v1387_v55 = vpop.permute.xlu0 %1386  ;;  %v1406_v7 = vsel %vm907_vm2, %v1389_v5, 0 }
 0x640   : > { %v1403_v4 = vsel %vm907_vm2, %v1387_v55, 0 }
 0x642   : > { %v1377_v9 = vpop.permute.xlu1 %1376 }
 0x643   : > { %v1375_v63 = vpop.permute.xlu0 %1374 }
 0x645   : > { %v3092_v60 = vpop.eup %2612 }
 0x646   : > { %2419 = vmatprep.mubr.msk.bf16.mxu1 %vm975_vm3, %v3092_v60  ;;  %v1537_v11 = vpop.permute.xlu1 %1536 }
 0x647   : > { %v1535_v10 = vpop.permute.xlu0 %1534 }
 0x648   : > { %2435 = vmatprep.subr.bf16.mxu0 %v1535_v10 }
 0x649   : > { %v3097_v62 = vpop.eup %2614  ;;  %2436 = vmatpush3.bf16.msra.mxu0 %v1535_v10 }
 0x64a   : > { %2420 = vmatmul.mubr.msk.bf16.vlgmr.msra.gmra.mrb[4].mxu1 %vm975_vm3, %v3097_v62  ;;  %2437 = vmatprep.subr.bf16.mxu0 %v1537_v11  ;;  %v1539_v12 = vpop.permute.xlu1 %1538 }
 0x64b   : > { %2424 = vmatpush3.bf16.xpose.msra.mxu1 %v1397_v61  ;;  %2431 = vmatprep.mubr.msk.bf16.mxu1 %vm907_vm2, %v1375_v63 }
 0x64c   : > { %2488 = vmatprep.subr.msk.bf16.mxu1 %vm907_vm2, %v1385_v0 }
 0x64d   : > { %2438 = vmatpush3.bf16.msra.mxu0 %v1537_v11  ;;  %v1229_v11 = vunpack.c.l.bf16 %v3092_v60 }
 0x64e   : > { %2439 = vmatprep.subr.bf16.mxu0 %v1539_v12 }
 0x651   : > { %2440 = vmatpush3.bf16.msra.mxu0 %v1539_v12 }
 0x653   : > { %2426 = vmatpush3.bf16.xpose.msra.mxu1 %v1400_v1 }
 0x654   : > { %2489 = vmatprep.subr.msk.bf16.mxu1 %vm907_vm2, %v1387_v55 }
 0x65b   : > { %2428 = vmatpush3.bf16.xpose.msra.mxu1 %v1403_v4 }
 0x65c   : > { %2490 = vmatprep.subr.msk.bf16.mxu1 %vm907_vm2, %v1389_v5 }
 0x663   : > { %2430 = vmatpush3.bf16.xpose.msra.mxu1 %v1406_v7  ;;  %v1230_v7 = vunpack.c.h.bf16 %v3092_v60 }
 0x66a   : > { %2432 = vmatmul.mubr.msk.bf16.vlgmr.msra.gmra.mrb[8].mxu1 %vm907_vm2, %v1377_v9  ;;  %v1236_v9 = vsel %vm975_vm3, %v1230_v7, 0.0 }
 0x71d   : > { %v3109_v14 = vpop.f32.mrb[4].mxu1 }
 0x71e   : > { %v3111_v16 = vpop.f32.mrb[5].mxu1 }
 0x71f   : > { %v3113_v17 = vpop.f32.mrb[6].mxu1 }
 0x720   : > { %v3115_v18 = vpop.f32.mrb[7].mxu1 }
 0x73d   : > { %v2433_v19 = vpop.f32.mrb[8].mxu1 }
 0x73e   : > { %v1442_v20 = vpop.f32.mrb[9].mxu1  ;;  %v1463_v21 = vsel %vm975_vm3, %v2433_v19, -inf }
 0x73f   : > { %1464 = vmax.xlane.f32.xlu0 %v1463_v21  ;;  %v2434_v22 = vpop.f32.mrb[10].mxu1  ;;  %v1457_v25 = vsel %vm975_vm3, %v1442_v20, -inf }
 0x740   : > { %v1445_v23 = vpop.f32.mrb[11].mxu1  ;;  %v1466_v26 = vsel %vm975_vm3, %v2434_v22, -inf }
 0x741   : > { %v1460_v24 = vsel %vm975_vm3, %v1445_v23, -inf }
 0x742   : > { %1461 = vmax.xlane.f32.xlu1 %v1460_v24 }
 0x743   : > { %1458 = vmax.xlane.f32.xlu0 %v1457_v25 }
 0x747   : > { %1467 = vmax.xlane.f32.xlu0 %v1466_v26 }
 0x753   : > { %1540 = vrot.lane.b32.xlu1 %v3025_v59, %s2729_s23 }
 0x757   : > { %1636 = vrot.lane.b32.xlu1 %v2964_v3, %s2730_s11 }
 0x75b   : > { %1640 = vrot.lane.b32.xlu1 %v2980_v8, %s2730_s11 }
 0x75d   : > { %1634 = vrot.lane.b32.xlu0 %v2962_v2, %s2730_s11 }
 0x75f   : > { %1628 = vrot.lane.b32.xlu1 %v2995_v45, %s2730_s11 }
 0x761   : > { %1638 = vrot.lane.b32.xlu0 %v2974_v6, %s2730_s11 }
 0x763   : > { %1788 = vrot.lane.b32.xlu1 %v3011_v57, %s2730_s11 }
 0x765   : > { %1626 = vrot.lane.b32.xlu0 %v2997_v47, %s2730_s11 }
 0x767   : > { %1790 = vrot.lane.b32.xlu1 %v3017_v58, %s2730_s11 }
 0x7cc   : > { %v1465_v3 = vpop.xlane.xlu0 %1464 }
 0x7cd   : > { %v1471_v35 = vsub.f32 %v2433_v19, %v1465_v3  ;;  %v1231_v19 = vunpack.c.l.bf16 %v3097_v62 }
 0x7cf   : > { %v1462_v8 = vpop.xlane.xlu1 %1461  ;;  %v1239_v21 = vsel %vm975_vm3, %v1231_v19, 0.0 }
 0x7d0   : > { %v1470_v31 = vsub.f32 %v1445_v23, %v1462_v8  ;;  %v1459_v32 = vpop.xlane.xlu0 %1458 }
 0x7d1   : > { %v1469_v2 = vsub.f32 %v1442_v20, %v1459_v32 }
 0x7d3   : > { %v1473_v33 = vpack.c.bf16 %v1470_v31, %v1469_v2  ;;  %v1541_v34 = vpop.permute.xlu1 %1540 }
 0x7d4   : > { %v1468_v45 = vpop.xlane.xlu0 %1467  ;;  %2441 = vmatprep.subr.bf16.mxu0 %v1541_v34 }
 0x7d5   : > { %v1476_v6 = vmul.bf16 1069105081, %v1473_v33  ;;  %v1472_v36 = vsub.f32 %v2434_v22, %v1468_v45  ;;  %2442 = vmatpush3.bf16.msra.mxu0 %v1541_v34  ;;  %v1232_v22 = vunpack.c.h.bf16 %v3097_v62 }
 0x7d7   : > { %2616 = vpow.bf16 %v1476_v6  ;;  %v1474_v57 = vpack.c.bf16 %v1472_v36, %v1471_v35  ;;  %v1637_v42 = vpop.permute.xlu1 %1636  ;;  %v1242_v23 = vsel %vm975_vm3, %v1232_v22, 0.0 }
 0x7d8   : > { %v1635_v37 = vpop.permute.xlu0 %1634  ;;  %v1652_v43 = vsel %vm907_vm2, %v1637_v42, 0 }
 0x7d9   : > { %v1479_v47 = vmul.bf16 1069105081, %v1474_v57  ;;  %2491 = vmatprep.subr.msk.bf16.mxu0 %vm907_vm2, %v1635_v37  ;;  %v1649_v39 = vsel %vm907_vm2, %v1635_v37, 0 }
 0x7db   : > { %2618 = vpow.bf16 %v1479_v47  ;;  %v1641_v46 = vpop.permute.xlu1 %1640 }
 0x7dc   : > { %v1639_v58 = vpop.permute.xlu0 %1638  ;;  %v1658_v48 = vsel %vm907_vm2, %v1641_v46, 0 }
 0x7dd   : > { %v1655_v44 = vsel %vm907_vm2, %v1639_v58, 0 }
 0x7df   : > { %v1629_v49 = vpop.permute.xlu1 %1628 }
 0x7e0   : > { %v1627_v41 = vpop.permute.xlu0 %1626 }
 0x7e2   : > { %v3140_v38 = vpop.eup %2616 }
 0x7e3   : > { %2443 = vmatprep.mubr.msk.bf16.mxu0 %vm975_vm3, %v3140_v38  ;;  %v1482_v10 = vunpack.c.h.bf16 %v3140_v38  ;;  %v1481_v24 = vunpack.c.l.bf16 %v3140_v38  ;;  %v1789_v8 = vpop.permute.xlu1 %1788 }
 0x7e5   : > { %v1488_v12 = vsel %vm975_vm3, %v1482_v10, 0.0  ;;  %v1485_v25 = vsel %vm975_vm3, %v1481_v24, 0.0 }
 0x7e6   : > { %v3145_v40 = vpop.eup %2618 }
 0x7e7   : > { %2444 = vmatmul.mubr.msk.bf16.vlgmr.msra.gmra.mrb[12].mxu0 %vm975_vm3, %v3145_v40  ;;  %v1483_v26 = vunpack.c.l.bf16 %v3145_v40  ;;  %v1791_v31 = vpop.permute.xlu1 %1790 }
 0x7e8   : > { %2448 = vmatpush3.bf16.xpose.msra.mxu0 %v1649_v39  ;;  %2455 = vmatprep.mubr.msk.bf16.mxu0 %vm907_vm2, %v1627_v41 }
 0x7e9   : > { %2492 = vmatprep.subr.msk.bf16.mxu0 %vm907_vm2, %v1637_v42  ;;  %v1491_v3 = vsel %vm975_vm3, %v1483_v26, 0.0 }
 0x7f0   : > { %2450 = vmatpush3.bf16.xpose.msra.mxu0 %v1652_v43 }
 0x7f1   : > { %2493 = vmatprep.subr.msk.bf16.mxu0 %vm907_vm2, %v1639_v58 }
 0x7f8   : > { %2452 = vmatpush3.bf16.xpose.msra.mxu0 %v1655_v44 }
 0x7f9   : > { %2494 = vmatprep.subr.msk.bf16.mxu0 %vm907_vm2, %v1641_v46 }
 0x800   : > { %2454 = vmatpush3.bf16.xpose.msra.mxu0 %v1658_v48 }
 0x807   : > { %2456 = vmatmul.mubr.msk.bf16.vlgmr.msra.gmra.mrb[16].mxu0 %vm907_vm2, %v1629_v49 }
 0x8ba   : > { %v3157_v50 = vpop.f32.mrb[12].mxu0 }
 0x8bb   : > { %v3159_v51 = vpop.f32.mrb[13].mxu0 }
 0x8bc   : > { %v3161_v52 = vpop.f32.mrb[14].mxu0 }
 0x8bd   : > { %v3163_v53 = vpop.f32.mrb[15].mxu0 }
 0x8da   : > { %v2457_v54 = vpop.f32.mrb[16].mxu0 }
 0x8db   : > { %v1694_v55 = vpop.f32.mrb[17].mxu0  ;;  %v1715_v61 = vsel %vm975_vm3, %v2457_v54, -inf }
 0x8dc   : > { %1716 = vmax.xlane.f32.xlu0 %v1715_v61  ;;  %v2458_v63 = vpop.f32.mrb[18].mxu0  ;;  %v1709_v4 = vsel %vm975_vm3, %v1694_v55, -inf }
 0x8dd   : > { %v1697_v0 = vpop.f32.mrb[19].mxu0  ;;  %v1718_v5 = vsel %vm975_vm3, %v2458_v63, -inf }
 0x8de   : > { %v1712_v1 = vsel %vm975_vm3, %v1697_v0, -inf }
 0x8df   : > { %1713 = vmax.xlane.f32.xlu1 %v1712_v1  ;;  %v1000_v1 = vunpack.c.l.bf16 %v3042_v13 }
 0x8e0   : > { %1710 = vmax.xlane.f32.xlu0 %v1709_v4 }
 0x8e4   : > { %1719 = vmax.xlane.f32.xlu0 %v1718_v5  ;;  %v1003_v5 = vunpack.c.h.bf16 %v3047_v15 }
 0x8f0   : > { %1792 = vrot.lane.b32.xlu1 %v3025_v59, %s2730_s11  ;;  %v1484_v59 = vunpack.c.h.bf16 %v3145_v40 }
 0x8f2   : > { %v1494_v20 = vsel %vm975_vm3, %v1484_v59, 0.0 }
 0x8fa   : > { %1786 = vrot.lane.b32.xlu0 %v3007_v56, %s2730_s11  ;;  %v1233_v56 = vsel %vm975_vm3, %v1229_v11, 0.0 }
 0x914   : > { %1237 = vadd.xlane.f32.xlu1 %v1236_v9  ;;  %v1004_v9 = vsel %vm975_vm3, %v1000_v1, 0.0 }
 0x918   : > { %1489 = vadd.xlane.f32.xlu1 %v1488_v12  ;;  %v1002_v12 = vunpack.c.l.bf16 %v3047_v15 }
 0x919   : > { %1234 = vadd.xlane.f32.xlu0 %v1233_v56  ;;  %v1013_v56 = vsel %vm975_vm3, %v1003_v5, 0.0 }
 0x91c   : > { %1495 = vadd.xlane.f32.xlu1 %v1494_v20  ;;  %v1010_v20 = vsel %vm975_vm3, %v1002_v12, 0.0 }
 0x91d   : > { %1240 = vadd.xlane.f32.xlu0 %v1239_v21 }
 0x921   : > { %1243 = vadd.xlane.f32.xlu0 %v1242_v23 }
 0x925   : > { %1486 = vadd.xlane.f32.xlu0 %v1485_v25 }
 0x929   : > { %1492 = vadd.xlane.f32.xlu0 %v1491_v3 }
 0x969   : > { %v1717_v32 = vpop.xlane.xlu0 %1716 }
 0x96a   : > { %v1723_v36 = vsub.f32 %v2457_v54, %v1717_v32 }
 0x96c   : > { %v1714_v2 = vpop.xlane.xlu1 %1713 }
 0x96d   : > { %v1722_v33 = vsub.f32 %v1697_v0, %v1714_v2  ;;  %v1711_v34 = vpop.xlane.xlu0 %1710  ;;  %v1001_v0 = vunpack.c.h.bf16 %v3042_v13 }
 0x96e   : > { %v1721_v45 = vsub.f32 %v1694_v55, %v1711_v34 }
 0x96f   : > { %v1007_v4 = vsel %vm975_vm3, %v1001_v0, 0.0 }
 0x970   : > { %v1725_v35 = vpack.c.bf16 %v1722_v33, %v1721_v45  ;;  %v1793_v41 = vpop.permute.xlu1 %1792 }
 0x971   : > { %v1720_v6 = vpop.xlane.xlu0 %1719 }
 0x972   : > { %v1728_v57 = vmul.bf16 1069105081, %v1725_v35  ;;  %v1724_v37 = vsub.f32 %v2458_v63, %v1720_v6 }
 0x974   : > { %2620 = vpow.bf16 %v1728_v57  ;;  %v1726_v47 = vpack.c.bf16 %v1724_v37, %v1723_v36 }
 0x975   : > { %v1787_v58 = vpop.permute.xlu0 %1786 }
 0x976   : > { %v1731_v39 = vmul.bf16 1069105081, %v1726_v47  ;;  %2459 = vmatprep.subr.bf16.mxu1 %v1787_v58 }
 0x977   : > { %2460 = vmatpush3.bf16.msra.mxu1 %v1787_v58 }
 0x978   : > { %2622 = vpow.bf16 %v1731_v39  ;;  %2461 = vmatprep.subr.bf16.mxu1 %v1789_v8 }
 0x97b   : > { %2462 = vmatpush3.bf16.msra.mxu1 %v1789_v8 }
 0x97c   : > { %2463 = vmatprep.subr.bf16.mxu1 %v1791_v31 }
 0x97f   : > { %v3205_v42 = vpop.eup %2620  ;;  %2464 = vmatpush3.bf16.msra.mxu1 %v1791_v31 }
 0x980   : > { %2467 = vmatprep.mubr.msk.bf16.mxu1 %vm975_vm3, %v3205_v42  ;;  %2465 = vmatprep.subr.bf16.mxu1 %v1793_v41  ;;  %v1734_v43 = vunpack.c.h.bf16 %v3205_v42  ;;  %v1733_v44 = vunpack.c.l.bf16 %v3205_v42 }
 0x982   : > { %v1740_v46 = vsel %vm975_vm3, %v1734_v43, 0.0  ;;  %v1737_v48 = vsel %vm975_vm3, %v1733_v44, 0.0 }
 0x983   : > { %v3217_v49 = vpop.eup %2622  ;;  %1741 = vadd.xlane.f32.xlu1 %v1740_v46  ;;  %1738 = vadd.xlane.f32.xlu0 %v1737_v48 }
 0x984   : > { %2466 = vmatpush3.bf16.msra.mxu1 %v1793_v41  ;;  %v1736_v54 = vunpack.c.h.bf16 %v3217_v49  ;;  %v1735_v55 = vunpack.c.l.bf16 %v3217_v49 }
 0x986   : > { %v1746_v61 = vsel %vm975_vm3, %v1736_v54, 0.0  ;;  %v1743_v63 = vsel %vm975_vm3, %v1735_v55, 0.0 }
 0x987   : > { %2468 = vmatmul.mubr.msk.bf16.vlgmr.msra.gmra.mrb[12].mxu1 %vm975_vm3, %v3217_v49  ;;  %1747 = vadd.xlane.f32.xlu1 %v1746_v61 }
 0x988   : > { %1744 = vadd.xlane.f32.xlu0 %v1743_v63 }
 0x98b   : > { %1008 = vadd.xlane.f32.xlu1 %v1007_v4 }
 0x98c   : > { %1005 = vadd.xlane.f32.xlu0 %v1004_v9 }
 0x98f   : > { %1014 = vadd.xlane.f32.xlu1 %v1013_v56 }
 0x990   : > { %1011 = vadd.xlane.f32.xlu0 %v1010_v20 }
 0x9a1   : > { %v1238_v21 = vpop.xlane.xlu1 %1237 }
 0x9a2   : > { %2624 = vrcp.f32 %v1238_v21 }
 0x9a5   : > { %v1490_v23 = vpop.xlane.xlu1 %1489 }
 0x9a6   : > { %2626 = vrcp.f32 %v1490_v23  ;;  %v1235_v25 = vpop.xlane.xlu0 %1234 }
 0x9a7   : > { %2628 = vrcp.f32 %v1235_v25 }
 0x9a9   : > { %v1496_v3 = vpop.xlane.xlu1 %1495 }
 0x9aa   : > { %2630 = vrcp.f32 %v1496_v3  ;;  %v1241_v8 = vpop.xlane.xlu0 %1240 }
 0x9ab   : > { %2632 = vrcp.f32 %v1241_v8 }
 0x9ac   : > { %v2625_v31 = vpop.eup %2624 }
 0x9ad   : > { %v1254_v32 = vmul.f32 %v2625_v31, %v1230_v7  ;;  %v1350_v7 = vmul.f32 %v2625_v31, %v3115_v18 }
 0x9ae   : > { %v1244_v2 = vpop.xlane.xlu0 %1243 }
 0x9af   : > { %v2264_v33 = vpack.c.bf16 %v1254_v32, %v1254_v32  ;;  %2634 = vrcp.f32 %v1244_v2 }
 0x9b0   : > { %v2627_v34 = vpop.eup %2626 }
 0x9b1   : > { %v2629_v45 = vpop.eup %2628  ;;  %2217 = vst.msk [vmem:[%s2901_s13 + $0x14] sm:$0xf] %vm1044_vm4, %v2264_v33  ;;  %v1506_v35 = vmul.f32 %v2627_v34, %v1482_v10  ;;  %v1602_v20 = vmul.f32 %v2627_v34, %v3163_v53 }
 0x9b2   : > { %v1253_v6 = vmul.f32 %v2629_v45, %v1229_v11  ;;  %v1487_v36 = vpop.xlane.xlu0 %1486  ;;  %v1349_v57 = vmul.f32 %v2629_v45, %v3111_v16 }
 0x9b3   : > { %v2268_v37 = vpack.c.bf16 %v1506_v35, %v1506_v35  ;;  %2636 = vrcp.f32 %v1487_v36 }
 0x9b4   : > { %v2631_v47 = vpop.eup %2630  ;;  %v2263_v58 = vpack.c.bf16 %v1253_v6, %v1253_v6  ;;  %v1353_v39 = vpack.c.bf16 %v1350_v7, %v1349_v57 }
 0x9b5   : > { %v2633_v41 = vpop.eup %2632  ;;  %2229 = vst.msk [vmem:[%s2901_s13 + $0x24] sm:$0xf] %vm1044_vm4, %v2268_v37  ;;  %v1508_v10 = vmul.f32 %v2631_v47, %v1484_v59  ;;  %v1604_v38 = vmul.f32 %v2631_v47, %v3161_v52 }
 0x9b6   : > { %2216 = vst.msk [vmem:[%s2901_s13 + $0x10] sm:$0xf] %vm1044_vm4, %v2263_v58  ;;  %v1255_v60 = vmul.f32 %v2633_v41, %v1231_v19  ;;  %v1493_v16 = vpop.xlane.xlu0 %1492  ;;  %1357 = vrot.lane.b32.xlu0 %v1353_v39, %s2731_s17  ;;  %v1351_v48 = vmul.f32 %v2633_v41, %v3109_v14 }
 0x9b7   : > { %v2270_v18 = vpack.c.bf16 %v1508_v10, %v1508_v10  ;;  %2638 = vrcp.f32 %v1493_v16 }
 0x9b8   : > { %v2265_v11 = vpack.c.bf16 %v1255_v60, %v1255_v60 }
 0x9b9   : > { %v2635_v46 = vpop.eup %2634  ;;  %2231 = vst.msk [vmem:[%s2901_s13 + $0x2c] sm:$0xf] %vm1044_vm4, %v2270_v18 }
 0x9ba   : > { %2218 = vst.msk [vmem:[%s2901_s13 + $0x18] sm:$0xf] %vm1044_vm4, %v2265_v11  ;;  %v1256_v59 = vmul.f32 %v2635_v46, %v1232_v22  ;;  %v1352_v19 = vmul.f32 %v2635_v46, %v3113_v17 }
 0x9bc   : > { %v2266_v61 = vpack.c.bf16 %v1256_v59, %v1256_v59  ;;  %v1354_v63 = vpack.c.bf16 %v1352_v19, %v1351_v48 }
 0x9bd   : > { %v2637_v4 = vpop.eup %2636 }
 0x9be   : > { %2219 = vst.msk [vmem:[%s2901_s13 + $0x1c] sm:$0xf] %vm1044_vm4, %v2266_v61  ;;  %v1505_v9 = vmul.f32 %v2637_v4, %v1481_v24  ;;  %1359 = vrot.lane.b32.xlu1 %v1354_v63, %s2731_s17  ;;  %v1601_v56 = vmul.f32 %v2637_v4, %v3159_v51 }
 0x9c0   : > { %v2267_v62 = vpack.c.bf16 %v1505_v9, %v1505_v9  ;;  %v1605_v22 = vpack.c.bf16 %v1602_v20, %v1601_v56 }
 0x9c1   : > { %v2639_v21 = vpop.eup %2638 }
 0x9c2   : > { %2228 = vst.msk [vmem:[%s2901_s13 + $0x20] sm:$0xf] %vm1044_vm4, %v2267_v62  ;;  %v1507_v14 = vmul.f32 %v2639_v21, %v1483_v26  ;;  %1609 = vrot.lane.b32.xlu1 %v1605_v22, %s2732_s19  ;;  %v1603_v17 = vmul.f32 %v2639_v21, %v3157_v50  ;;  %v2246_v21 = vld [vmem:[%s3413_s7] ss:$0 sm:$0xff] }
 0x9c4   : > { %v2269_v24 = vpack.c.bf16 %v1507_v14, %v1507_v14  ;;  %v1606_v23 = vpack.c.bf16 %v1604_v38, %v1603_v17 }
 0x9c6   : > { %2230 = vst.msk [vmem:[%s2901_s13 + $0x28] sm:$0xf] %vm1044_vm4, %v2269_v24  ;;  %1611 = vrot.lane.b32.xlu1 %v1606_v23, %s2732_s19 }
 0xa10   : > { %v1739_v51 = vpop.xlane.xlu0 %1738  ;;  %v1742_v53 = vpop.xlane.xlu1 %1741 }
 0xa11   : > { %2640 = vrcp.f32 %v1739_v51  ;;  %v2656_v51 = vld [vmem:[%s2894_s30 + $0x10] sm:$0xff] }
 0xa12   : > { %2642 = vrcp.f32 %v1742_v53 }
 0xa14   : > { %v1748_v25 = vpop.xlane.xlu1 %1747 }
 0xa15   : > { %v1745_v3 = vpop.xlane.xlu0 %1744  ;;  %2644 = vrcp.f32 %v1748_v25 }
 0xa16   : > { %2646 = vrcp.f32 %v1745_v3 }
 0xa18   : > { %v1009_v40 = vpop.xlane.xlu1 %1008 }
 0xa19   : > { %v1006_v26 = vpop.xlane.xlu0 %1005  ;;  %2648 = vrcp.f32 %v1009_v40  ;;  %v2657_v40 = vld [vmem:[%s2894_s30] sm:$0xff] }
 0xa1a   : > { %2650 = vrcp.f32 %v1006_v26 }
 0xa1b   : > { %v3285_v50 = vpop.eup %2640 }
 0xa1c   : > { %v3287_v52 = vpop.eup %2642  ;;  %v1757_v8 = vmul.f32 %v3285_v50, %v1733_v44  ;;  %v1015_v31 = vpop.xlane.xlu1 %1014 }
 0xa1d   : > { %v1758_v32 = vmul.f32 %v3287_v52, %v1734_v43  ;;  %v1012_v2 = vpop.xlane.xlu0 %1011  ;;  %2652 = vrcp.f32 %v1015_v31  ;;  %v2659_v31 = vld [vmem:[%s2894_s30 + $0x8] sm:$0xff] }
 0xa1e   : > { %v2271_v33 = vpack.c.bf16 %v1757_v8, %v1757_v8  ;;  %2654 = vrcp.f32 %v1012_v2 }
 0xa1f   : > { %v2645_v34 = vpop.eup %2644  ;;  %v2272_v45 = vpack.c.bf16 %v1758_v32, %v1758_v32 }
 0xa20   : > { %v2647_v35 = vpop.eup %2646  ;;  %2240 = vst.msk [vmem:[%s2901_s13 + $0x30] sm:$0xf] %vm1044_vm4, %v2271_v33  ;;  %v1760_v6 = vmul.f32 %v2645_v34, %v1736_v54 }
 0xa21   : > { %2241 = vst.msk [vmem:[%s2901_s13 + $0x34] sm:$0xf] %vm1044_vm4, %v2272_v45  ;;  %v1759_v42 = vmul.f32 %v2647_v35, %v1735_v55 }
 0xa22   : > { %v2274_v43 = vpack.c.bf16 %v1760_v6, %v1760_v6 }
 0xa23   : > { %v2649_v44 = vpop.eup %2648  ;;  %v2273_v36 = vpack.c.bf16 %v1759_v42, %v1759_v42 }
 0xa24   : > { %v2651_v57 = vpop.eup %2650  ;;  %2243 = vst.msk [vmem:[%s2901_s13 + $0x3c] sm:$0xf] %vm1044_vm4, %v2274_v43  ;;  %v1025_v7 = vmul.f32 %v2649_v44, %v1001_v0  ;;  %v1105_v37 = vmul.f32 %v2649_v44, %v3065_v30 }
 0xa25   : > { %2242 = vst.msk [vmem:[%s2901_s13 + $0x38] sm:$0xf] %vm1044_vm4, %v2273_v36  ;;  %v1024_v54 = vmul.f32 %v2651_v57, %v1000_v1  ;;  %v1104_v49 = vmul.f32 %v2651_v57, %v3061_v28 }
 0xa26   : > { %v2260_v55 = vpack.c.bf16 %v1025_v7, %v1025_v7 }
 0xa27   : > { %v2653_v47 = vpop.eup %2652  ;;  %v2259_v58 = vpack.c.bf16 %v1024_v54, %v1024_v54  ;;  %v1108_v39 = vpack.c.bf16 %v1105_v37, %v1104_v49 }
 0xa28   : > { %v2655_v41 = vpop.eup %2654  ;;  %1046 = vst.msk [vmem:[%s2901_s13 + $0x4] sm:$0xf] %vm1044_vm4, %v2260_v55  ;;  %v1027_v30 = vmul.f32 %v2653_v47, %v1003_v5  ;;  %v1358_v0 = vpop.permute.xlu0 %1357  ;;  %v1107_v10 = vmul.f32 %v2653_v47, %v3063_v29 }
 0xa29   : > { %1045 = vst.msk [vmem:[%s2901_s13] sm:$0xf] %vm1044_vm4, %v2259_v58  ;;  %v1026_v13 = vmul.f32 %v2655_v41, %v1002_v12  ;;  %v1106_v28 = vmul.f32 %v2655_v41, %v3059_v27  ;;  %v2598_v27 = vld [vmem:[%s3412_s6] sm:$0xff]   ;;  %v2599_v12 = vld [vmem:[%s3412_s6 + $0x8] sm:$0xff]  }
 0xa2a   : > { %1110 = vst.msk [vmem:[#allocation4] sm:$0xff] %vm907_vm2, %v1108_v39  ;;  %v2262_v1 = vpack.c.bf16 %v1027_v30, %v1027_v30  ;;  %2471 = vmatprep.subr.bf16.mxu1 %v2598_v27 }
 0xa2b   : > { %1364 = vst.msk [vmem:[#allocation4] sm:$0xff] %vm1363_vm5, %v1358_v0  ;;  %v2261_v60 = vpack.c.bf16 %v1026_v13, %v1026_v13  ;;  %v1109_v16 = vpack.c.bf16 %v1107_v10, %v1106_v28  ;;  %2472 = vmatpush3.bf16.msra.mxu1 %v2598_v27 }
 0xa2c   : > { %1048 = vst.msk [vmem:[%s2901_s13 + $0xc] sm:$0xf] %vm1044_vm4, %v2262_v1  ;;  %2473 = vmatprep.subr.bf16.mxu1 %v2599_v12 }
 0xa2d   : > { %1047 = vst.msk [vmem:[%s2901_s13 + $0x8] sm:$0xf] %vm1044_vm4, %v2261_v60 }
 0xa2e   : > { %1111 = vst.msk [vmem:[#allocation4 + $0x8] sm:$0xff] %vm907_vm2, %v1109_v16 }
 0xa2f   : > { %2474 = vmatpush3.bf16.msra.mxu1 %v2599_v12 }
 0xa30   : > { %v1360_v29 = vpop.permute.xlu1 %1359 }
 0xa31   : > { %1365 = vst.msk [vmem:[#allocation4 + $0x8] sm:$0xff] %vm1363_vm5, %v1360_v29 }
 0xa34   : > { %v1610_v15 = vpop.permute.xlu1 %1609 }
 0xa35   : > { %1616 = vst.msk [vmem:[#allocation4] sm:$0xff] %vm1615_vm6, %v1610_v15 }
 0xa38   : > { %v1612_v5 = vpop.permute.xlu1 %1611 }
 0xa39   : > { %1617 = vst.msk [vmem:[#allocation4 + $0x8] sm:$0xff] %vm1615_vm6, %v1612_v5 }
 0xa5a   : > { %v2469_v18 = vpop.f32.mrb[12].mxu1 }
 0xa5b   : > { %v1855_v11 = vmul.f32 %v2647_v35, %v2469_v18  ;;  %v1838_v46 = vpop.f32.mrb[13].mxu1 }
 0xa5c   : > { %v1853_v59 = vmul.f32 %v3285_v50, %v1838_v46  ;;  %v2470_v48 = vpop.f32.mrb[14].mxu1 }
 0xa5d   : > { %v1856_v19 = vmul.f32 %v2645_v34, %v2470_v48  ;;  %v1841_v61 = vpop.f32.mrb[15].mxu1 }
 0xa5e   : > { %v1854_v63 = vmul.f32 %v3287_v52, %v1841_v61  ;;  %v2658_v52 = vld [vmem:[%s2894_s30 + $0x18] sm:$0xff] }
 0xa5f   : > { %v1858_v4 = vpack.c.bf16 %v1856_v19, %v1855_v11 }
 0xa60   : > { %v1857_v9 = vpack.c.bf16 %v1854_v63, %v1853_v59 }
 0xa61   : > { %1863 = vrot.lane.b32.xlu1 %v1858_v4, %s2733_s28 }
 0xa62   : > { %1861 = vrot.lane.b32.xlu0 %v1857_v9, %s2733_s28 }
 0xad3   : > { %v1864_v56 = vpop.permute.xlu1 %1863 }
 0xad4   : > { %1869 = vst.msk [vmem:[#allocation4 + $0x8] sm:$0xff] %vm1867_vm7, %v1864_v56  ;;  %v1862_v20 = vpop.permute.xlu0 %1861 }
 0xad5   : > { %1868 = vst.msk [vmem:[#allocation4] sm:$0xff] %vm1867_vm7, %v1862_v20 }
 0xadb   : > { %v1871_v22 = vld [vmem:[#allocation4 + $0x8] sm:$0xff] }
 0xadc   : > { %v1870_v62 = vld [vmem:[#allocation4] sm:$0xff] }
 0xadd   : > { %2475 = vmatprep.mubr.msk.bf16.mxu1 %vm748_vm1, %v1870_v62 }
 0xade   : > { %2476 = vmatmul.mubr.msk.bf16.vlgmr.msra.gmra.mrb[16].mxu1 %vm748_vm1, %v1871_v22 }
 0xbb1   : > { %v2477_v14 = vpop.f32.mrb[16].mxu1 }
 0xbb2   : > { %v1944_v17 = vadd.f32 %v2477_v14, %v2246_v21  ;;  %v1935_v38 = vpop.f32.mrb[17].mxu1 }
 0xbb3   : > { %v1936_v24 = vadd.f32 %v2246_v21, %v1935_v38  ;;  %v2478_v23 = vpop.f32.mrb[18].mxu1 }
 0xbb4   : > { %v1952_v53 = vadd.f32 %v2656_v51, %v1944_v17  ;;  %v1947_v25 = vadd.f32 %v2478_v23, %v2246_v21  ;;  %v1938_v3 = vpop.f32.mrb[19].mxu1 }
 0xbb5   : > { %v1950_v26 = vadd.f32 %v2657_v40, %v1936_v24  ;;  %v1939_v50 = vadd.f32 %v2246_v21, %v1938_v3 }
 0xbb6   : > { %1956 = vst.msk [vmem:[%s2899_s29 + $0x10] sm:$0xff] %vm748_vm1, %v1952_v53  ;;  %v1953_v8 = vadd.f32 %v2658_v52, %v1947_v25 }
 0xbb7   : > { %1954 = vst.msk [vmem:[%s2899_s29] sm:$0xff] %vm748_vm1, %v1950_v26  ;;  %v1951_v32 = vadd.f32 %v2659_v31, %v1939_v50 }
 0xbb8   : > { %1957 = vst.msk [vmem:[%s2899_s29 + $0x18] sm:$0xff] %vm748_vm1, %v1953_v8 }
 0xbb9   : > { %1955 = vst.msk [vmem:[%s2899_s29 + $0x8] sm:$0xff] %vm748_vm1, %v1951_v32 }
 0xbba   : > { %s3448_s15 = sld [smem:[#allocation12_spill]]  ;;  %s3449_s14 = sld [smem:[#allocation21_spill]] }
 0xbbb   : > { %s2003_s11 = sshll.u32 %s2901_s13, 4  ;;  %s3451_s29 = sld [smem:[#allocation22_spill]]  ;;  %s2004_s11 = int_to_ptr.vmem [resolvable:$true] %s2003_s11 }
 0xbbc   : > { %s2734_s27 = smov 256   ;;  %s2735_s24 = smov 512  }
 0xbbd   : > { %2495 = sst [smem:[#allocation8]] (%p2851_p3), %s2734_s27  ;;  %s2736_s28 = smov 4  }
 0xbbe   : > { %2496 = sst [smem:[#allocation8 + $0x1]] (%p2851_p3), %s2735_s24  ;;  %s2737_s12 = smov 64  }
 0xbbf   : > { %2497 = sst [smem:[#allocation8 + $0x2]] (%p2851_p3), %s2736_s28  ;;  %s2738_s13 = smov [#allocation7]  }
 0xbc0   : > { %s2253_s23 = sshll.u32 %s3448_s15, 5  ;;  %2498 = sst [smem:[#allocation8 + $0x3]] (%p2851_p3), %s2737_s12 }
 0xbc1   : > { %s1984_s17 = sadd.s32 %s2253_s23, %s3449_s14  ;;  %2499 = sst [smem:[#allocation8 + $0x4]] (%p2851_p3), %s2737_s12 }
 0xbc2   : > { %s2254_s30 = sshll.u32 %s1984_s17, 6  ;;  %2500 = sst [smem:[#allocation8 + $0x5]] (%p2851_p3), %s2736_s28 }
 0xbc3   : > { %s1986_s20 = scalar_lea.hbm %s3451_s29, %s2254_s30  ;;  %s2739_s16 = smov 0  }
 0xbc4   : > { %2501 = dma.general (%p2851_p3), %s2004_s11, 1024, %s1986_s20, %s1968_s26, %s2738_s13, [#allocation8], %s2739_s16, 0  }
 0xbc5 PF: > { %s3452_s25 = sld [smem:[#allocation15_spill]]  ;;  %s3453_s15 = sld [smem:[#allocation10_spill]] }
 0xbcb   : > { %p2507_p1 = scmp.ge.s32.totalorder %s3452_s25, 2  ;;  %s2043_s23 = sand.u32 1, %s3453_s15  }
 0xbcc   : > { %s2044_s17 = scalar_lea.sflag [#allocation6], %s2043_s23 }
 0xbcd   : > { %p2504_p2 = pnand %p2507_p1, %p2860_p8 }
 0xbcf   : > { %2693 = dma.done.wait (!%p2504_p2), %s2044_s17, 1024  }
 0xbd0   : > { %2695 = vsyncadd (!%p2504_p2), %s2044_s17, 4294966272  ;;  %s25_s24 = sadd.s32 1, %s3452_s25   ;;  %s3455_s30 = sld [smem:[#allocation11_spill]] }
 0xbd1   : > { %p22_p4 = scmp.ge.s32.totalorder %s25_s24, 6   ;;  %s3456_s19 = sld [smem:[#allocation20_spill]] }
 0xbd2   : > { %s3457_s20 = sld [smem:[#allocation13_spill]]  ;;  %s3458_s21 = sld [smem:[#allocation14_spill]] }
 0xbd3   : > { %s3459_s22 = sld [smem:[#allocation16_spill]]  ;;  %s3460_s23 = sld [smem:[#allocation18_spill]] }
 0xbd4   : > { %s3461_s17 = smov %s2702_s18  ;;  %24 = sbr.rel (!%p22_p4) target bundleno = 7 (0x7), region = 125 }
 0xbd6   : > { %s3462_s18 = smov %s3455_s30 }
 0xbdb   :  { %2049 = vsyncpa [#allocation6], 1 }
 0xbdc   :  { %2051 = vsyncpa [#allocation6 + $0x1], 1 }

</bundles_post_ra>
